<compile_context>
chip_gen: v5e
topology: v5e:2x2
jax: 0.10.0
libtpu: 0.0.40
codegen_flags: <defaults>
</compile_context>

<pallas_src>
import functools
import math

import jax
import jax.numpy as jnp
from jax.experimental import pallas as pl
from jax.experimental.pallas import tpu as pltpu


def _round_up(x, m):
    return ((x + m - 1) // m) * m


# -----------------------------------------------------------------------------
# Fused kernel: im2col staging -> one conv matmul -> masked max-pool -> MLP head.
#   refs = [x_flat_0 .. x_flat_{nb-1},                     (TB, L_pad_i*D) f32
#           w_conv, b_conv, mask, w1, b1, w2, b2,          replicated params
#           o_ref,                                         (TB, CLS_pad) f32
#           lhs_ref]                                       (P_pad*TB, KD_total) bf16 scratch
#   branch_layout: tuple of (lane_offset_in_lhs, k_max) per branch (static).
# -----------------------------------------------------------------------------
def _fused_multicomp_kernel(*refs, branch_layout, p_pad, d):
    nb = len(branch_layout)
    x_refs = refs[:nb]
    wc_ref, bc_ref, mask_ref, w1_ref, b1_ref, w2_ref, b2_ref = refs[nb:nb + 7]
    o_ref = refs[nb + 7]
    lhs_ref = refs[nb + 8]

    tb = o_ref.shape[0]

    # ---- stage fused im2col LHS (rows ordered (position, batch)) -------------
    # Every write is a static 2-D slice: rows [p*tb, (p+1)*tb) with tb % 8 == 0,
    # lanes [off, off + kmax*D).  Sources are static lane slices of the flat,
    # lane-dense inputs, so no reshapes / relayout chains are needed.
    # TODO(synk): for very long sequences (large P_pad) switch this unrolled
    # staging loop to a fori_loop / nested emit_pipeline.
    for bi in range(nb):
        off_kd, kmax = branch_layout[bi]
        wkd = kmax * d
        x_ref = x_refs[bi]
        for p in range(p_pad):
            lhs_ref[p * tb:(p + 1) * tb, off_kd:off_kd + wkd] = (
                x_ref[:, p * d:p * d + wkd].astype(jnp.bfloat16))

    # ---- all convs in ONE MXU matmul (block-diagonal RHS, f32 accumulation) --
    y = jnp.dot(lhs_ref[...], wc_ref[...], preferred_element_type=jnp.float32)
    y = jnp.maximum(y + bc_ref[...], 0.0)                 # bias + ReLU, 2-D lane-dense

    # ---- max-pool over time, masking positions past each conv's valid range --
    # (ReLU output >= 0, so zero-masking padded positions is exact.)
    nc = y.shape[1]
    feat = jnp.zeros((tb, nc), jnp.float32)
    for p in range(p_pad):
        feat = jnp.maximum(feat, y[p * tb:(p + 1) * tb, :] * mask_ref[p:p + 1, :])

    # ---- classifier head: fc1 -> ReLU -> fc2 -> exact sigmoid -----------------
    h = jnp.dot(feat.astype(jnp.bfloat16), w1_ref[...],
                preferred_element_type=jnp.float32) + b1_ref[...]
    h = jnp.maximum(h, 0.0)
    z = jnp.dot(h.astype(jnp.bfloat16), w2_ref[...],
                preferred_element_type=jnp.float32) + b2_ref[...]
    o_ref[...] = 1.0 / (1.0 + jnp.exp(-z))                # f32 exp + exact divide


# -----------------------------------------------------------------------------
# Wrapper: geometry, parameter packing, VMEM-budgeted batch tiling, pallas_call.
# -----------------------------------------------------------------------------
def multicomp_fused(xs, conv_branches, fc1_w, fc1_b, fc2_w, fc2_b):
    """xs: list of 3 embedded sequences (B, L_i, D) f32.
    conv_branches: 3 lists of (w[K, D, C], b[1, C])."""
    nb = len(xs)
    B = int(xs[0].shape[0])
    D = int(xs[0].shape[2])
    Ls = [int(x.shape[1]) for x in xs]

    # ---- static conv geometry -------------------------------------------------
    conv_infos = []                        # (branch, K, C, P_valid) in feature order
    for bi, convs in enumerate(conv_branches):
        for (w, _b) in convs:
            K = int(w.shape[0]); C = int(w.shape[2])
            conv_infos.append((bi, K, C, Ls[bi] - K + 1))
    kmax_branch = [max(K for (bb, K, _, _) in conv_infos if bb == bi) for bi in range(nb)]
    p_pad = _round_up(max(P for (_, _, _, P) in conv_infos), 8)
    lane_mult = 128 // math.gcd(D, 128)    # keep flat rows 128-lane dense
    l_pads = [_round_up(max(Ls[bi], p_pad + kmax_branch[bi] - 1), lane_mult)
              for bi in range(nb)]

    branch_off, off = [], 0
    for bi in range(nb):
        branch_off.append(off)
        off += kmax_branch[bi] * D
    kd_total = off                         # contraction dim of the fused conv matmul

    col_off, c_off = [], 0
    for (_, _, C, _) in conv_infos:
        col_off.append(c_off); c_off += C
    nc_total = c_off
    nc_pad = _round_up(nc_total, 128)      # lane-dense conv/pool/fc1 width

    hidden = int(fc1_w.shape[1]); cls = int(fc2_w.shape[1])
    h_pad = _round_up(hidden, 128)
    cls_pad = _round_up(cls, 128)          # lane-dense output store
    assert int(fc1_w.shape[0]) == nc_total

    # ---- parameter packing: block-diagonal conv RHS + padded head weights -----
    # TODO(synk): for repeated inference, pre-pack these once outside the step.
    w_big = jnp.zeros((kd_total, nc_pad), jnp.float32)
    b_big = jnp.zeros((1, nc_pad), jnp.float32)
    mask = jnp.zeros((p_pad, nc_pad), jnp.float32)
    ci = 0
    for bi, convs in enumerate(conv_branches):
        for (w, b) in convs:
            K = int(w.shape[0]); C = int(w.shape[2]); P = Ls[bi] - K + 1
            r0, c0 = branch_off[bi], col_off[ci]
            w_big = w_big.at[r0:r0 + K * D, c0:c0 + C].set(
                w.reshape(K * D, C).astype(jnp.float32))
            b_big = b_big.at[:, c0:c0 + C].set(b.reshape(1, C).astype(jnp.float32))
            valid = (jnp.arange(p_pad) < P).astype(jnp.float32)[:, None]
            mask = mask.at[:, c0:c0 + C].set(jnp.broadcast_to(valid, (p_pad, C)))
            ci += 1
    w_big = w_big.astype(jnp.bfloat16)

    w1 = (jnp.zeros((nc_pad, h_pad), jnp.float32)
          .at[:nc_total, :hidden].set(fc1_w.astype(jnp.float32)).astype(jnp.bfloat16))
    b1 = jnp.zeros((1, h_pad), jnp.float32).at[:, :hidden].set(
        fc1_b.reshape(1, hidden).astype(jnp.float32))
    w2 = (jnp.zeros((h_pad, cls_pad), jnp.float32)
          .at[:hidden, :cls].set(fc2_w.astype(jnp.float32)).astype(jnp.bfloat16))
    b2 = jnp.zeros((1, cls_pad), jnp.float32).at[:, :cls].set(
        fc2_b.reshape(1, cls).astype(jnp.float32))

    # ---- VMEM-budgeted batch block; guarantee >= 2 grid steps ------------------
    try:
        vmem_cap = int(pltpu.get_tpu_info().vmem_capacity_bytes)  # 64 MiB v7x, 128 MiB v5e/v6e
    except Exception:
        vmem_cap = 64 * 1024 * 1024
    vmem_limit = min(vmem_cap * 3 // 4, 96 * 1024 * 1024)
    weight_bytes = 2 * (kd_total * nc_pad * 2 + nc_pad * 4 + p_pad * nc_pad * 4
                        + nc_pad * h_pad * 2 + h_pad * 4 + h_pad * cls_pad * 2 + cls_pad * 4)
    per_row = (sum(lp * D * 4 for lp in l_pads) * 2   # double-buffered batched inputs
               + cls_pad * 4 * 2                      # double-buffered output block
               + p_pad * kd_total * 2                 # bf16 im2col scratch
               + p_pad * nc_pad * 4 * 2               # conv activations (+ headroom)
               + (nc_pad + h_pad + cls_pad) * 4)      # head activations
    budget = max(vmem_limit // 2 - weight_bytes, per_row * 8)
    tb = max(8, min(512, (budget // per_row) // 8 * 8))
    if B <= tb:                                       # force >= 2 steps (v7x megacore)
        tb = max(8, _round_up((B + 1) // 2, 8))
    b_pad = max(_round_up(B, tb), 2 * tb)
    grid = (b_pad // tb,)

    # ---- lane-dense flat inputs, zero-padded batch / length --------------------
    xs_flat = []
    for bi, x in enumerate(xs):
        x = jnp.pad(x.astype(jnp.float32),
                    ((0, b_pad - B), (0, l_pads[bi] - Ls[bi]), (0, 0)))
        xs_flat.append(x.reshape(b_pad, l_pads[bi] * D))

    weights = (w_big, b_big, mask, w1, b1, w2, b2)
    kernel = functools.partial(
        _fused_multicomp_kernel,
        branch_layout=tuple((branch_off[bi], kmax_branch[bi]) for bi in range(nb)),
        p_pad=p_pad, d=D)

    def _call(single_buffer_weights):
        def rep_spec(a):
            nd = a.ndim
            if single_buffer_weights:
                return pl.BlockSpec(a.shape, lambda i, _n=nd: (0,) * _n,
                                    pipeline_mode=pl.Buffered(1))
            return pl.BlockSpec(a.shape, lambda i, _n=nd: (0,) * _n)

        in_specs = ([pl.BlockSpec((tb, l_pads[bi] * D), lambda i: (i, 0))
                     for bi in range(nb)]
                    + [rep_spec(a) for a in weights])
        return pl.pallas_call(
            kernel,
            out_shape=jax.ShapeDtypeStruct((b_pad, cls_pad), jnp.float32),
            grid=grid,
            in_specs=in_specs,
            out_specs=pl.BlockSpec((tb, cls_pad), lambda i: (i, 0)),
            scratch_shapes=[pltpu.VMEM((p_pad * tb, kd_total), jnp.bfloat16)],
            compiler_params=pltpu.CompilerParams(
                dimension_semantics=("parallel",),
                vmem_limit_bytes=int(vmem_limit)),
        )(*xs_flat, *weights)

    try:
        out = _call(True)        # grid-invariant weights single-buffered
    except Exception:
        out = _call(False)       # pipeline_mode unsupported on this jax version
    return out[:B, :cls]


# -----------------------------------------------------------------------------
# Full MultiComp forward (glue: embedding gather, then the fused kernel).
# -----------------------------------------------------------------------------
def multicomp_forward(params, t_ids, dt_ids, dc_ids):
    x_t = jnp.take(params["title_embed"], t_ids, axis=0)        # (B, Lt, D)
    x_dt = jnp.take(params["desc_text_embed"], dt_ids, axis=0)   # (B, Ldt, D)
    x_dc = jnp.take(params["desc_code_embed"], dc_ids, axis=0)   # (B, Ldc, D)
    # nn.Dropout is identity at inference time.
    return multicomp_fused(
        [x_t, x_dt, x_dc],
        (params["convs_t"], params["convs_dt"], params["convs_dc"]),
        params["fc1_w"], params["fc1_b"], params["fc2_w"], params["fc2_b"])


# -----------------------------------------------------------------------------
# Pure-JAX f32 reference (same math) for a correctness check.
# -----------------------------------------------------------------------------
def multicomp_reference(params, t_ids, dt_ids, dc_ids):
    def branch(x, convs):
        B, L, D = x.shape
        outs = []
        for (w, b) in convs:
            K, _, C = w.shape
            P = L - K + 1
            wins = jnp.stack(
                [x[:, p:p + K, :].reshape(B, K * D) for p in range(P)], axis=1)  # (B, P, K*D)
            conv = jnp.einsum("bpf,fc->bpc", wins, w.reshape(K * D, C)) + b.reshape(1, 1, C)
            outs.append(jnp.max(jax.nn.relu(conv), axis=1))                       # (B, C)
        return outs

    x_t = jnp.take(params["title_embed"], t_ids, axis=0)
    x_dt = jnp.take(params["desc_text_embed"], dt_ids, axis=0)
    x_dc = jnp.take(params["desc_code_embed"], dc_ids, axis=0)
    feats = (branch(x_t, params["convs_t"]) + branch(x_dt, params["convs_dt"])
             + branch(x_dc, params["convs_dc"]))
    x = jnp.concatenate(feats, axis=1)
    h = jax.nn.relu(x @ params["fc1_w"] + params["fc1_b"][0])
    return jax.nn.sigmoid(h @ params["fc2_w"] + params["fc2_b"][0])


# -----------------------------------------------------------------------------
# Deterministic parameter construction (synthetic; no checkpoint load).
# -----------------------------------------------------------------------------
def make_params(key, *, embed_dim, title_embed_num, desc_text_embed_num,
                desc_code_embed_num, title_kernel_num, desc_text_kernel_num,
                desc_code_kernel_num, title_kernel_sizes, desc_text_kernel_sizes,
                desc_code_kernel_sizes, hidden_dim, class_num):
    keys = iter(jax.random.split(key, 64))

    def nrm(shape, scale=0.1):
        return (scale * jax.random.normal(next(keys), shape)).astype(jnp.float32)

    def conv_list(sizes, cnum):
        return [(nrm((K, embed_dim, cnum)), nrm((1, cnum))) for K in sizes]

    feat = (len(title_kernel_sizes) * title_kernel_num
            + len(desc_text_kernel_sizes) * desc_text_kernel_num
            + len(desc_code_kernel_sizes) * desc_code_kernel_num)

    return {
        "title_embed": nrm((title_embed_num, embed_dim)),
        "desc_text_embed": nrm((desc_text_embed_num, embed_dim)),
        "desc_code_embed": nrm((desc_code_embed_num, embed_dim)),
        "convs_t": conv_list(title_kernel_sizes, title_kernel_num),
        "convs_dt": conv_list(desc_text_kernel_sizes, desc_text_kernel_num),
        "convs_dc": conv_list(desc_code_kernel_sizes, desc_code_kernel_num),
        "fc1_w": nrm((feat, hidden_dim)),
        "fc1_b": nrm((1, hidden_dim)),
        "fc2_w": nrm((hidden_dim, class_num)),
        "fc2_b": nrm((1, class_num)),
    }


if __name__ == "__main__":
    # Small synthetic config consistent with the module's __init__.
    cfg = dict(
        embed_dim=32,
        title_embed_num=50, desc_text_embed_num=60, desc_code_embed_num=70,
        title_kernel_num=8, desc_text_kernel_num=8, desc_code_kernel_num=8,
        title_kernel_sizes=(2, 3), desc_text_kernel_sizes=(2, 3), desc_code_kernel_sizes=(2, 3),
        hidden_dim=32, class_num=8,
    )
    B, Lt, Ldt, Ldc = 2, 8, 12, 16

    key = jax.random.PRNGKey(0)
    k_params, k_t, k_dt, k_dc = jax.random.split(key, 4)
    params = make_params(k_params, **cfg)

    t_ids = jax.random.randint(k_t, (B, Lt), 0, cfg["title_embed_num"], dtype=jnp.int32)
    dt_ids = jax.random.randint(k_dt, (B, Ldt), 0, cfg["desc_text_embed_num"], dtype=jnp.int32)
    dc_ids = jax.random.randint(k_dc, (B, Ldc), 0, cfg["desc_code_embed_num"], dtype=jnp.int32)

    out = jax.block_until_ready(multicomp_forward(params, t_ids, dt_ids, dc_ids))
    ref = jax.block_until_ready(multicomp_reference(params, t_ids, dt_ids, dc_ids))

    assert out.shape == (B, cfg["class_num"])
    # Tolerance covers bf16 MXU inputs (f32 accumulation, exact f32 sigmoid).
    assert jnp.allclose(out, ref, atol=2e-2, rtol=2e-2), "Pallas output mismatch vs reference"

    print("KERNEL_OK")
</pallas_src>

<mosaic_0001>
module attributes {stable_mosaic.version = 11 : i64} {
  func.func @_fused_multicomp_kernel(%arg0: i32, %arg1: memref<8x640xf32, #tpu.memory_space<vmem>>, %arg2: memref<8x640xf32, #tpu.memory_space<vmem>>, %arg3: memref<8x640xf32, #tpu.memory_space<vmem>>, %arg4: memref<288x128xbf16, #tpu.memory_space<vmem>>, %arg5: memref<1x128xf32, #tpu.memory_space<vmem>>, %arg6: memref<16x128xf32, #tpu.memory_space<vmem>>, %arg7: memref<128x128xbf16, #tpu.memory_space<vmem>>, %arg8: memref<1x128xf32, #tpu.memory_space<vmem>>, %arg9: memref<128x128xbf16, #tpu.memory_space<vmem>>, %arg10: memref<1x128xf32, #tpu.memory_space<vmem>>, %arg11: memref<8x128xf32, #tpu.memory_space<vmem>>, %arg12: memref<128x288xbf16, #tpu.memory_space<vmem>>) attributes {dimension_semantics = [#tpu.dimension_semantics<parallel>], iteration_bounds = array<i64: 2>, scalar_prefetch = 0 : i64, scratch_operands = 1 : i64, tpu.core_type = #tpu.core_type<tc>, window_params = [{transform_indices = @transform_0, window_bounds = array<i64: 8, 640>}, {transform_indices = @transform_1, window_bounds = array<i64: 8, 640>}, {transform_indices = @transform_2, window_bounds = array<i64: 8, 640>}, {pipeline_mode = #tpu.pipeline_mode<synchronous>, transform_indices = @transform_3, window_bounds = array<i64: 288, 128>}, {pipeline_mode = #tpu.pipeline_mode<synchronous>, transform_indices = @transform_4, window_bounds = array<i64: 1, 128>}, {pipeline_mode = #tpu.pipeline_mode<synchronous>, transform_indices = @transform_5, window_bounds = array<i64: 16, 128>}, {pipeline_mode = #tpu.pipeline_mode<synchronous>, transform_indices = @transform_6, window_bounds = array<i64: 128, 128>}, {pipeline_mode = #tpu.pipeline_mode<synchronous>, transform_indices = @transform_7, window_bounds = array<i64: 1, 128>}, {pipeline_mode = #tpu.pipeline_mode<synchronous>, transform_indices = @transform_8, window_bounds = array<i64: 128, 128>}, {pipeline_mode = #tpu.pipeline_mode<synchronous>, transform_indices = @transform_9, window_bounds = array<i64: 1, 128>}, {transform_indices = @transform_10, window_bounds = array<i64: 8, 128>}]} {
    %c0 = arith.constant 0 : index
    %c0_0 = arith.constant 0 : index
    %0 = vector.load %arg1[%c0, %c0_0] : memref<8x640xf32, #tpu.memory_space<vmem>>, vector<8x96xf32>
    %1 = arith.truncf %0 : vector<8x96xf32> to vector<8x96xbf16>
    %c0_1 = arith.constant 0 : index
    %c0_2 = arith.constant 0 : index
    %2 = vector.load %arg12[%c0_1, %c0_2] : memref<128x288xbf16, #tpu.memory_space<vmem>>, vector<8x96xbf16>
    tpu.vector_store %arg12[%c0_1, %c0_2], %1 {strides = array<i32>} : memref<128x288xbf16, #tpu.memory_space<vmem>>, vector<8x96xbf16>,
    %c0_3 = arith.constant 0 : index
    %c32 = arith.constant 32 : index
    %3 = vector.load %arg1[%c0_3, %c32] : memref<8x640xf32, #tpu.memory_space<vmem>>, vector<8x96xf32>
    %4 = arith.truncf %3 : vector<8x96xf32> to vector<8x96xbf16>
    %c8 = arith.constant 8 : index
    %c0_4 = arith.constant 0 : index
    %5 = vector.load %arg12[%c8, %c0_4] : memref<128x288xbf16, #tpu.memory_space<vmem>>, vector<8x96xbf16>
    tpu.vector_store %arg12[%c8, %c0_4], %4 {strides = array<i32>} : memref<128x288xbf16, #tpu.memory_space<vmem>>, vector<8x96xbf16>,
    %c0_5 = arith.constant 0 : index
    %c64 = arith.constant 64 : index
    %6 = vector.load %arg1[%c0_5, %c64] : memref<8x640xf32, #tpu.memory_space<vmem>>, vector<8x96xf32>
    %7 = arith.truncf %6 : vector<8x96xf32> to vector<8x96xbf16>
    %c16 = arith.constant 16 : index
    %c0_6 = arith.constant 0 : index
    %8 = vector.load %arg12[%c16, %c0_6] : memref<128x288xbf16, #tpu.memory_space<vmem>>, vector<8x96xbf16>
    tpu.vector_store %arg12[%c16, %c0_6], %7 {strides = array<i32>} : memref<128x288xbf16, #tpu.memory_space<vmem>>, vector<8x96xbf16>,
    %c0_7 = arith.constant 0 : index
    %c96 = arith.constant 96 : index
    %9 = vector.load %arg1[%c0_7, %c96] : memref<8x640xf32, #tpu.memory_space<vmem>>, vector<8x96xf32>
    %10 = arith.truncf %9 : vector<8x96xf32> to vector<8x96xbf16>
    %c24 = arith.constant 24 : index
    %c0_8 = arith.constant 0 : index
    %11 = vector.load %arg12[%c24, %c0_8] : memref<128x288xbf16, #tpu.memory_space<vmem>>, vector<8x96xbf16>
    tpu.vector_store %arg12[%c24, %c0_8], %10 {strides = array<i32>} : memref<128x288xbf16, #tpu.memory_space<vmem>>, vector<8x96xbf16>,
    %c0_9 = arith.constant 0 : index
    %c128 = arith.constant 128 : index
    %12 = vector.load %arg1[%c0_9, %c128] : memref<8x640xf32, #tpu.memory_space<vmem>>, vector<8x96xf32>
    %13 = arith.truncf %12 : vector<8x96xf32> to vector<8x96xbf16>
    %c32_10 = arith.constant 32 : index
    %c0_11 = arith.constant 0 : index
    %14 = vector.load %arg12[%c32_10, %c0_11] : memref<128x288xbf16, #tpu.memory_space<vmem>>, vector<8x96xbf16>
    tpu.vector_store %arg12[%c32_10, %c0_11], %13 {strides = array<i32>} : memref<128x288xbf16, #tpu.memory_space<vmem>>, vector<8x96xbf16>,
    %c0_12 = arith.constant 0 : index
    %c160 = arith.constant 160 : index
    %15 = vector.load %arg1[%c0_12, %c160] : memref<8x640xf32, #tpu.memory_space<vmem>>, vector<8x96xf32>
    %16 = arith.truncf %15 : vector<8x96xf32> to vector<8x96xbf16>
    %c40 = arith.constant 40 : index
    %c0_13 = arith.constant 0 : index
    %17 = vector.load %arg12[%c40, %c0_13] : memref<128x288xbf16, #tpu.memory_space<vmem>>, vector<8x96xbf16>
    tpu.vector_store %arg12[%c40, %c0_13], %16 {strides = array<i32>} : memref<128x288xbf16, #tpu.memory_space<vmem>>, vector<8x96xbf16>,
    %c0_14 = arith.constant 0 : index
    %c192 = arith.constant 192 : index
    %18 = vector.load %arg1[%c0_14, %c192] : memref<8x640xf32, #tpu.memory_space<vmem>>, vector<8x96xf32>
    %19 = arith.truncf %18 : vector<8x96xf32> to vector<8x96xbf16>
    %c48 = arith.constant 48 : index
    %c0_15 = arith.constant 0 : index
    %20 = vector.load %arg12[%c48, %c0_15] : memref<128x288xbf16, #tpu.memory_space<vmem>>, vector<8x96xbf16>
    tpu.vector_store %arg12[%c48, %c0_15], %19 {strides = array<i32>} : memref<128x288xbf16, #tpu.memory_space<vmem>>, vector<8x96xbf16>,
    %c0_16 = arith.constant 0 : index
    %c224 = arith.constant 224 : index
    %21 = vector.load %arg1[%c0_16, %c224] : memref<8x640xf32, #tpu.memory_space<vmem>>, vector<8x96xf32>
    %22 = arith.truncf %21 : vector<8x96xf32> to vector<8x96xbf16>
    %c56 = arith.constant 56 : index
    %c0_17 = arith.constant 0 : index
    %23 = vector.load %arg12[%c56, %c0_17] : memref<128x288xbf16, #tpu.memory_space<vmem>>, vector<8x96xbf16>
    tpu.vector_store %arg12[%c56, %c0_17], %22 {strides = array<i32>} : memref<128x288xbf16, #tpu.memory_space<vmem>>, vector<8x96xbf16>,
    %c0_18 = arith.constant 0 : index
    %c256 = arith.constant 256 : index
    %24 = vector.load %arg1[%c0_18, %c256] : memref<8x640xf32, #tpu.memory_space<vmem>>, vector<8x96xf32>
    %25 = arith.truncf %24 : vector<8x96xf32> to vector<8x96xbf16>
    %c64_19 = arith.constant 64 : index
    %c0_20 = arith.constant 0 : index
    %26 = vector.load %arg12[%c64_19, %c0_20] : memref<128x288xbf16, #tpu.memory_space<vmem>>, vector<8x96xbf16>
    tpu.vector_store %arg12[%c64_19, %c0_20], %25 {strides = array<i32>} : memref<128x288xbf16, #tpu.memory_space<vmem>>, vector<8x96xbf16>,
    %c0_21 = arith.constant 0 : index
    %c288 = arith.constant 288 : index
    %27 = vector.load %arg1[%c0_21, %c288] : memref<8x640xf32, #tpu.memory_space<vmem>>, vector<8x96xf32>
    %28 = arith.truncf %27 : vector<8x96xf32> to vector<8x96xbf16>
    %c72 = arith.constant 72 : index
    %c0_22 = arith.constant 0 : index
    %29 = vector.load %arg12[%c72, %c0_22] : memref<128x288xbf16, #tpu.memory_space<vmem>>, vector<8x96xbf16>
    tpu.vector_store %arg12[%c72, %c0_22], %28 {strides = array<i32>} : memref<128x288xbf16, #tpu.memory_space<vmem>>, vector<8x96xbf16>,
    %c0_23 = arith.constant 0 : index
    %c320 = arith.constant 320 : index
    %30 = vector.load %arg1[%c0_23, %c320] : memref<8x640xf32, #tpu.memory_space<vmem>>, vector<8x96xf32>
    %31 = arith.truncf %30 : vector<8x96xf32> to vector<8x96xbf16>
    %c80 = arith.constant 80 : index
    %c0_24 = arith.constant 0 : index
    %32 = vector.load %arg12[%c80, %c0_24] : memref<128x288xbf16, #tpu.memory_space<vmem>>, vector<8x96xbf16>
    tpu.vector_store %arg12[%c80, %c0_24], %31 {strides = array<i32>} : memref<128x288xbf16, #tpu.memory_space<vmem>>, vector<8x96xbf16>,
    %c0_25 = arith.constant 0 : index
    %c352 = arith.constant 352 : index
    %33 = vector.load %arg1[%c0_25, %c352] : memref<8x640xf32, #tpu.memory_space<vmem>>, vector<8x96xf32>
    %34 = arith.truncf %33 : vector<8x96xf32> to vector<8x96xbf16>
    %c88 = arith.constant 88 : index
    %c0_26 = arith.constant 0 : index
    %35 = vector.load %arg12[%c88, %c0_26] : memref<128x288xbf16, #tpu.memory_space<vmem>>, vector<8x96xbf16>
    tpu.vector_store %arg12[%c88, %c0_26], %34 {strides = array<i32>} : memref<128x288xbf16, #tpu.memory_space<vmem>>, vector<8x96xbf16>,
    %c0_27 = arith.constant 0 : index
    %c384 = arith.constant 384 : index
    %36 = vector.load %arg1[%c0_27, %c384] : memref<8x640xf32, #tpu.memory_space<vmem>>, vector<8x96xf32>
    %37 = arith.truncf %36 : vector<8x96xf32> to vector<8x96xbf16>
    %c96_28 = arith.constant 96 : index
    %c0_29 = arith.constant 0 : index
    %38 = vector.load %arg12[%c96_28, %c0_29] : memref<128x288xbf16, #tpu.memory_space<vmem>>, vector<8x96xbf16>
    tpu.vector_store %arg12[%c96_28, %c0_29], %37 {strides = array<i32>} : memref<128x288xbf16, #tpu.memory_space<vmem>>, vector<8x96xbf16>,
    %c0_30 = arith.constant 0 : index
    %c416 = arith.constant 416 : index
    %39 = vector.load %arg1[%c0_30, %c416] : memref<8x640xf32, #tpu.memory_space<vmem>>, vector<8x96xf32>
    %40 = arith.truncf %39 : vector<8x96xf32> to vector<8x96xbf16>
    %c104 = arith.constant 104 : index
    %c0_31 = arith.constant 0 : index
    %41 = vector.load %arg12[%c104, %c0_31] : memref<128x288xbf16, #tpu.memory_space<vmem>>, vector<8x96xbf16>
    tpu.vector_store %arg12[%c104, %c0_31], %40 {strides = array<i32>} : memref<128x288xbf16, #tpu.memory_space<vmem>>, vector<8x96xbf16>,
    %c0_32 = arith.constant 0 : index
    %c448 = arith.constant 448 : index
    %42 = vector.load %arg1[%c0_32, %c448] : memref<8x640xf32, #tpu.memory_space<vmem>>, vector<8x96xf32>
    %43 = arith.truncf %42 : vector<8x96xf32> to vector<8x96xbf16>
    %c112 = arith.constant 112 : index
    %c0_33 = arith.constant 0 : index
    %44 = vector.load %arg12[%c112, %c0_33] : memref<128x288xbf16, #tpu.memory_space<vmem>>, vector<8x96xbf16>
    tpu.vector_store %arg12[%c112, %c0_33], %43 {strides = array<i32>} : memref<128x288xbf16, #tpu.memory_space<vmem>>, vector<8x96xbf16>,
    %c0_34 = arith.constant 0 : index
    %c480 = arith.constant 480 : index
    %45 = vector.load %arg1[%c0_34, %c480] : memref<8x640xf32, #tpu.memory_space<vmem>>, vector<8x96xf32>
    %46 = arith.truncf %45 : vector<8x96xf32> to vector<8x96xbf16>
    %c120 = arith.constant 120 : index
    %c0_35 = arith.constant 0 : index
    %47 = vector.load %arg12[%c120, %c0_35] : memref<128x288xbf16, #tpu.memory_space<vmem>>, vector<8x96xbf16>
    tpu.vector_store %arg12[%c120, %c0_35], %46 {strides = array<i32>} : memref<128x288xbf16, #tpu.memory_space<vmem>>, vector<8x96xbf16>,
    %c0_36 = arith.constant 0 : index
    %c0_37 = arith.constant 0 : index
    %48 = vector.load %arg2[%c0_36, %c0_37] : memref<8x640xf32, #tpu.memory_space<vmem>>, vector<8x96xf32>
    %49 = arith.truncf %48 : vector<8x96xf32> to vector<8x96xbf16>
    %c0_38 = arith.constant 0 : index
    %c96_39 = arith.constant 96 : index
    %50 = vector.load %arg12[%c0_38, %c96_39] : memref<128x288xbf16, #tpu.memory_space<vmem>>, vector<8x96xbf16>
    tpu.vector_store %arg12[%c0_38, %c96_39], %49 {strides = array<i32>} : memref<128x288xbf16, #tpu.memory_space<vmem>>, vector<8x96xbf16>,
    %c0_40 = arith.constant 0 : index
    %c32_41 = arith.constant 32 : index
    %51 = vector.load %arg2[%c0_40, %c32_41] : memref<8x640xf32, #tpu.memory_space<vmem>>, vector<8x96xf32>
    %52 = arith.truncf %51 : vector<8x96xf32> to vector<8x96xbf16>
    %c8_42 = arith.constant 8 : index
    %c96_43 = arith.constant 96 : index
    %53 = vector.load %arg12[%c8_42, %c96_43] : memref<128x288xbf16, #tpu.memory_space<vmem>>, vector<8x96xbf16>
    tpu.vector_store %arg12[%c8_42, %c96_43], %52 {strides = array<i32>} : memref<128x288xbf16, #tpu.memory_space<vmem>>, vector<8x96xbf16>,
    %c0_44 = arith.constant 0 : index
    %c64_45 = arith.constant 64 : index
    %54 = vector.load %arg2[%c0_44, %c64_45] : memref<8x640xf32, #tpu.memory_space<vmem>>, vector<8x96xf32>
    %55 = arith.truncf %54 : vector<8x96xf32> to vector<8x96xbf16>
    %c16_46 = arith.constant 16 : index
    %c96_47 = arith.constant 96 : index
    %56 = vector.load %arg12[%c16_46, %c96_47] : memref<128x288xbf16, #tpu.memory_space<vmem>>, vector<8x96xbf16>
    tpu.vector_store %arg12[%c16_46, %c96_47], %55 {strides = array<i32>} : memref<128x288xbf16, #tpu.memory_space<vmem>>, vector<8x96xbf16>,
    %c0_48 = arith.constant 0 : index
    %c96_49 = arith.constant 96 : index
    %57 = vector.load %arg2[%c0_48, %c96_49] : memref<8x640xf32, #tpu.memory_space<vmem>>, vector<8x96xf32>
    %58 = arith.truncf %57 : vector<8x96xf32> to vector<8x96xbf16>
    %c24_50 = arith.constant 24 : index
    %c96_51 = arith.constant 96 : index
    %59 = vector.load %arg12[%c24_50, %c96_51] : memref<128x288xbf16, #tpu.memory_space<vmem>>, vector<8x96xbf16>
    tpu.vector_store %arg12[%c24_50, %c96_51], %58 {strides = array<i32>} : memref<128x288xbf16, #tpu.memory_space<vmem>>, vector<8x96xbf16>,
    %c0_52 = arith.constant 0 : index
    %c128_53 = arith.constant 128 : index
    %60 = vector.load %arg2[%c0_52, %c128_53] : memref<8x640xf32, #tpu.memory_space<vmem>>, vector<8x96xf32>
    %61 = arith.truncf %60 : vector<8x96xf32> to vector<8x96xbf16>
    %c32_54 = arith.constant 32 : index
    %c96_55 = arith.constant 96 : index
    %62 = vector.load %arg12[%c32_54, %c96_55] : memref<128x288xbf16, #tpu.memory_space<vmem>>, vector<8x96xbf16>
    tpu.vector_store %arg12[%c32_54, %c96_55], %61 {strides = array<i32>} : memref<128x288xbf16, #tpu.memory_space<vmem>>, vector<8x96xbf16>,
    %c0_56 = arith.constant 0 : index
    %c160_57 = arith.constant 160 : index
    %63 = vector.load %arg2[%c0_56, %c160_57] : memref<8x640xf32, #tpu.memory_space<vmem>>, vector<8x96xf32>
    %64 = arith.truncf %63 : vector<8x96xf32> to vector<8x96xbf16>
    %c40_58 = arith.constant 40 : index
    %c96_59 = arith.constant 96 : index
    %65 = vector.load %arg12[%c40_58, %c96_59] : memref<128x288xbf16, #tpu.memory_space<vmem>>, vector<8x96xbf16>
    tpu.vector_store %arg12[%c40_58, %c96_59], %64 {strides = array<i32>} : memref<128x288xbf16, #tpu.memory_space<vmem>>, vector<8x96xbf16>,
    %c0_60 = arith.constant 0 : index
    %c192_61 = arith.constant 192 : index
    %66 = vector.load %arg2[%c0_60, %c192_61] : memref<8x640xf32, #tpu.memory_space<vmem>>, vector<8x96xf32>
    %67 = arith.truncf %66 : vector<8x96xf32> to vector<8x96xbf16>
    %c48_62 = arith.constant 48 : index
    %c96_63 = arith.constant 96 : index
    %68 = vector.load %arg12[%c48_62, %c96_63] : memref<128x288xbf16, #tpu.memory_space<vmem>>, vector<8x96xbf16>
    tpu.vector_store %arg12[%c48_62, %c96_63], %67 {strides = array<i32>} : memref<128x288xbf16, #tpu.memory_space<vmem>>, vector<8x96xbf16>,
    %c0_64 = arith.constant 0 : index
    %c224_65 = arith.constant 224 : index
    %69 = vector.load %arg2[%c0_64, %c224_65] : memref<8x640xf32, #tpu.memory_space<vmem>>, vector<8x96xf32>
    %70 = arith.truncf %69 : vector<8x96xf32> to vector<8x96xbf16>
    %c56_66 = arith.constant 56 : index
    %c96_67 = arith.constant 96 : index
    %71 = vector.load %arg12[%c56_66, %c96_67] : memref<128x288xbf16, #tpu.memory_space<vmem>>, vector<8x96xbf16>
    tpu.vector_store %arg12[%c56_66, %c96_67], %70 {strides = array<i32>} : memref<128x288xbf16, #tpu.memory_space<vmem>>, vector<8x96xbf16>,
    %c0_68 = arith.constant 0 : index
    %c256_69 = arith.constant 256 : index
    %72 = vector.load %arg2[%c0_68, %c256_69] : memref<8x640xf32, #tpu.memory_space<vmem>>, vector<8x96xf32>
    %73 = arith.truncf %72 : vector<8x96xf32> to vector<8x96xbf16>
    %c64_70 = arith.constant 64 : index
    %c96_71 = arith.constant 96 : index
    %74 = vector.load %arg12[%c64_70, %c96_71] : memref<128x288xbf16, #tpu.memory_space<vmem>>, vector<8x96xbf16>
    tpu.vector_store %arg12[%c64_70, %c96_71], %73 {strides = array<i32>} : memref<128x288xbf16, #tpu.memory_space<vmem>>, vector<8x96xbf16>,
    %c0_72 = arith.constant 0 : index
    %c288_73 = arith.constant 288 : index
    %75 = vector.load %arg2[%c0_72, %c288_73] : memref<8x640xf32, #tpu.memory_space<vmem>>, vector<8x96xf32>
    %76 = arith.truncf %75 : vector<8x96xf32> to vector<8x96xbf16>
    %c72_74 = arith.constant 72 : index
    %c96_75 = arith.constant 96 : index
    %77 = vector.load %arg12[%c72_74, %c96_75] : memref<128x288xbf16, #tpu.memory_space<vmem>>, vector<8x96xbf16>
    tpu.vector_store %arg12[%c72_74, %c96_75], %76 {strides = array<i32>} : memref<128x288xbf16, #tpu.memory_space<vmem>>, vector<8x96xbf16>,
    %c0_76 = arith.constant 0 : index
    %c320_77 = arith.constant 320 : index
    %78 = vector.load %arg2[%c0_76, %c320_77] : memref<8x640xf32, #tpu.memory_space<vmem>>, vector<8x96xf32>
    %79 = arith.truncf %78 : vector<8x96xf32> to vector<8x96xbf16>
    %c80_78 = arith.constant 80 : index
    %c96_79 = arith.constant 96 : index
    %80 = vector.load %arg12[%c80_78, %c96_79] : memref<128x288xbf16, #tpu.memory_space<vmem>>, vector<8x96xbf16>
    tpu.vector_store %arg12[%c80_78, %c96_79], %79 {strides = array<i32>} : memref<128x288xbf16, #tpu.memory_space<vmem>>, vector<8x96xbf16>,
    %c0_80 = arith.constant 0 : index
    %c352_81 = arith.constant 352 : index
    %81 = vector.load %arg2[%c0_80, %c352_81] : memref<8x640xf32, #tpu.memory_space<vmem>>, vector<8x96xf32>
    %82 = arith.truncf %81 : vector<8x96xf32> to vector<8x96xbf16>
    %c88_82 = arith.constant 88 : index
    %c96_83 = arith.constant 96 : index
    %83 = vector.load %arg12[%c88_82, %c96_83] : memref<128x288xbf16, #tpu.memory_space<vmem>>, vector<8x96xbf16>
    tpu.vector_store %arg12[%c88_82, %c96_83], %82 {strides = array<i32>} : memref<128x288xbf16, #tpu.memory_space<vmem>>, vector<8x96xbf16>,
    %c0_84 = arith.constant 0 : index
    %c384_85 = arith.constant 384 : index
    %84 = vector.load %arg2[%c0_84, %c384_85] : memref<8x640xf32, #tpu.memory_space<vmem>>, vector<8x96xf32>
    %85 = arith.truncf %84 : vector<8x96xf32> to vector<8x96xbf16>
    %c96_86 = arith.constant 96 : index
    %c96_87 = arith.constant 96 : index
    %86 = vector.load %arg12[%c96_86, %c96_87] : memref<128x288xbf16, #tpu.memory_space<vmem>>, vector<8x96xbf16>
    tpu.vector_store %arg12[%c96_86, %c96_87], %85 {strides = array<i32>} : memref<128x288xbf16, #tpu.memory_space<vmem>>, vector<8x96xbf16>,
    %c0_88 = arith.constant 0 : index
    %c416_89 = arith.constant 416 : index
    %87 = vector.load %arg2[%c0_88, %c416_89] : memref<8x640xf32, #tpu.memory_space<vmem>>, vector<8x96xf32>
    %88 = arith.truncf %87 : vector<8x96xf32> to vector<8x96xbf16>
    %c104_90 = arith.constant 104 : index
    %c96_91 = arith.constant 96 : index
    %89 = vector.load %arg12[%c104_90, %c96_91] : memref<128x288xbf16, #tpu.memory_space<vmem>>, vector<8x96xbf16>
    tpu.vector_store %arg12[%c104_90, %c96_91], %88 {strides = array<i32>} : memref<128x288xbf16, #tpu.memory_space<vmem>>, vector<8x96xbf16>,
    %c0_92 = arith.constant 0 : index
    %c448_93 = arith.constant 448 : index
    %90 = vector.load %arg2[%c0_92, %c448_93] : memref<8x640xf32, #tpu.memory_space<vmem>>, vector<8x96xf32>
    %91 = arith.truncf %90 : vector<8x96xf32> to vector<8x96xbf16>
    %c112_94 = arith.constant 112 : index
    %c96_95 = arith.constant 96 : index
    %92 = vector.load %arg12[%c112_94, %c96_95] : memref<128x288xbf16, #tpu.memory_space<vmem>>, vector<8x96xbf16>
    tpu.vector_store %arg12[%c112_94, %c96_95], %91 {strides = array<i32>} : memref<128x288xbf16, #tpu.memory_space<vmem>>, vector<8x96xbf16>,
    %c0_96 = arith.constant 0 : index
    %c480_97 = arith.constant 480 : index
    %93 = vector.load %arg2[%c0_96, %c480_97] : memref<8x640xf32, #tpu.memory_space<vmem>>, vector<8x96xf32>
    %94 = arith.truncf %93 : vector<8x96xf32> to vector<8x96xbf16>
    %c120_98 = arith.constant 120 : index
    %c96_99 = arith.constant 96 : index
    %95 = vector.load %arg12[%c120_98, %c96_99] : memref<128x288xbf16, #tpu.memory_space<vmem>>, vector<8x96xbf16>
    tpu.vector_store %arg12[%c120_98, %c96_99], %94 {strides = array<i32>} : memref<128x288xbf16, #tpu.memory_space<vmem>>, vector<8x96xbf16>,
    %c0_100 = arith.constant 0 : index
    %c0_101 = arith.constant 0 : index
    %96 = vector.load %arg3[%c0_100, %c0_101] : memref<8x640xf32, #tpu.memory_space<vmem>>, vector<8x96xf32>
    %97 = arith.truncf %96 : vector<8x96xf32> to vector<8x96xbf16>
    %c0_102 = arith.constant 0 : index
    %c192_103 = arith.constant 192 : index
    %98 = vector.load %arg12[%c0_102, %c192_103] : memref<128x288xbf16, #tpu.memory_space<vmem>>, vector<8x96xbf16>
    tpu.vector_store %arg12[%c0_102, %c192_103], %97 {strides = array<i32>} : memref<128x288xbf16, #tpu.memory_space<vmem>>, vector<8x96xbf16>,
    %c0_104 = arith.constant 0 : index
    %c32_105 = arith.constant 32 : index
    %99 = vector.load %arg3[%c0_104, %c32_105] : memref<8x640xf32, #tpu.memory_space<vmem>>, vector<8x96xf32>
    %100 = arith.truncf %99 : vector<8x96xf32> to vector<8x96xbf16>
    %c8_106 = arith.constant 8 : index
    %c192_107 = arith.constant 192 : index
    %101 = vector.load %arg12[%c8_106, %c192_107] : memref<128x288xbf16, #tpu.memory_space<vmem>>, vector<8x96xbf16>
    tpu.vector_store %arg12[%c8_106, %c192_107], %100 {strides = array<i32>} : memref<128x288xbf16, #tpu.memory_space<vmem>>, vector<8x96xbf16>,
    %c0_108 = arith.constant 0 : index
    %c64_109 = arith.constant 64 : index
    %102 = vector.load %arg3[%c0_108, %c64_109] : memref<8x640xf32, #tpu.memory_space<vmem>>, vector<8x96xf32>
    %103 = arith.truncf %102 : vector<8x96xf32> to vector<8x96xbf16>
    %c16_110 = arith.constant 16 : index
    %c192_111 = arith.constant 192 : index
    %104 = vector.load %arg12[%c16_110, %c192_111] : memref<128x288xbf16, #tpu.memory_space<vmem>>, vector<8x96xbf16>
    tpu.vector_store %arg12[%c16_110, %c192_111], %103 {strides = array<i32>} : memref<128x288xbf16, #tpu.memory_space<vmem>>, vector<8x96xbf16>,
    %c0_112 = arith.constant 0 : index
    %c96_113 = arith.constant 96 : index
    %105 = vector.load %arg3[%c0_112, %c96_113] : memref<8x640xf32, #tpu.memory_space<vmem>>, vector<8x96xf32>
    %106 = arith.truncf %105 : vector<8x96xf32> to vector<8x96xbf16>
    %c24_114 = arith.constant 24 : index
    %c192_115 = arith.constant 192 : index
    %107 = vector.load %arg12[%c24_114, %c192_115] : memref<128x288xbf16, #tpu.memory_space<vmem>>, vector<8x96xbf16>
    tpu.vector_store %arg12[%c24_114, %c192_115], %106 {strides = array<i32>} : memref<128x288xbf16, #tpu.memory_space<vmem>>, vector<8x96xbf16>,
    %c0_116 = arith.constant 0 : index
    %c128_117 = arith.constant 128 : index
    %108 = vector.load %arg3[%c0_116, %c128_117] : memref<8x640xf32, #tpu.memory_space<vmem>>, vector<8x96xf32>
    %109 = arith.truncf %108 : vector<8x96xf32> to vector<8x96xbf16>
    %c32_118 = arith.constant 32 : index
    %c192_119 = arith.constant 192 : index
    %110 = vector.load %arg12[%c32_118, %c192_119] : memref<128x288xbf16, #tpu.memory_space<vmem>>, vector<8x96xbf16>
    tpu.vector_store %arg12[%c32_118, %c192_119], %109 {strides = array<i32>} : memref<128x288xbf16, #tpu.memory_space<vmem>>, vector<8x96xbf16>,
    %c0_120 = arith.constant 0 : index
    %c160_121 = arith.constant 160 : index
    %111 = vector.load %arg3[%c0_120, %c160_121] : memref<8x640xf32, #tpu.memory_space<vmem>>, vector<8x96xf32>
    %112 = arith.truncf %111 : vector<8x96xf32> to vector<8x96xbf16>
    %c40_122 = arith.constant 40 : index
    %c192_123 = arith.constant 192 : index
    %113 = vector.load %arg12[%c40_122, %c192_123] : memref<128x288xbf16, #tpu.memory_space<vmem>>, vector<8x96xbf16>
    tpu.vector_store %arg12[%c40_122, %c192_123], %112 {strides = array<i32>} : memref<128x288xbf16, #tpu.memory_space<vmem>>, vector<8x96xbf16>,
    %c0_124 = arith.constant 0 : index
    %c192_125 = arith.constant 192 : index
    %114 = vector.load %arg3[%c0_124, %c192_125] : memref<8x640xf32, #tpu.memory_space<vmem>>, vector<8x96xf32>
    %115 = arith.truncf %114 : vector<8x96xf32> to vector<8x96xbf16>
    %c48_126 = arith.constant 48 : index
    %c192_127 = arith.constant 192 : index
    %116 = vector.load %arg12[%c48_126, %c192_127] : memref<128x288xbf16, #tpu.memory_space<vmem>>, vector<8x96xbf16>
    tpu.vector_store %arg12[%c48_126, %c192_127], %115 {strides = array<i32>} : memref<128x288xbf16, #tpu.memory_space<vmem>>, vector<8x96xbf16>,
    %c0_128 = arith.constant 0 : index
    %c224_129 = arith.constant 224 : index
    %117 = vector.load %arg3[%c0_128, %c224_129] : memref<8x640xf32, #tpu.memory_space<vmem>>, vector<8x96xf32>
    %118 = arith.truncf %117 : vector<8x96xf32> to vector<8x96xbf16>
    %c56_130 = arith.constant 56 : index
    %c192_131 = arith.constant 192 : index
    %119 = vector.load %arg12[%c56_130, %c192_131] : memref<128x288xbf16, #tpu.memory_space<vmem>>, vector<8x96xbf16>
    tpu.vector_store %arg12[%c56_130, %c192_131], %118 {strides = array<i32>} : memref<128x288xbf16, #tpu.memory_space<vmem>>, vector<8x96xbf16>,
    %c0_132 = arith.constant 0 : index
    %c256_133 = arith.constant 256 : index
    %120 = vector.load %arg3[%c0_132, %c256_133] : memref<8x640xf32, #tpu.memory_space<vmem>>, vector<8x96xf32>
    %121 = arith.truncf %120 : vector<8x96xf32> to vector<8x96xbf16>
    %c64_134 = arith.constant 64 : index
    %c192_135 = arith.constant 192 : index
    %122 = vector.load %arg12[%c64_134, %c192_135] : memref<128x288xbf16, #tpu.memory_space<vmem>>, vector<8x96xbf16>
    tpu.vector_store %arg12[%c64_134, %c192_135], %121 {strides = array<i32>} : memref<128x288xbf16, #tpu.memory_space<vmem>>, vector<8x96xbf16>,
    %c0_136 = arith.constant 0 : index
    %c288_137 = arith.constant 288 : index
    %123 = vector.load %arg3[%c0_136, %c288_137] : memref<8x640xf32, #tpu.memory_space<vmem>>, vector<8x96xf32>
    %124 = arith.truncf %123 : vector<8x96xf32> to vector<8x96xbf16>
    %c72_138 = arith.constant 72 : index
    %c192_139 = arith.constant 192 : index
    %125 = vector.load %arg12[%c72_138, %c192_139] : memref<128x288xbf16, #tpu.memory_space<vmem>>, vector<8x96xbf16>
    tpu.vector_store %arg12[%c72_138, %c192_139], %124 {strides = array<i32>} : memref<128x288xbf16, #tpu.memory_space<vmem>>, vector<8x96xbf16>,
    %c0_140 = arith.constant 0 : index
    %c320_141 = arith.constant 320 : index
    %126 = vector.load %arg3[%c0_140, %c320_141] : memref<8x640xf32, #tpu.memory_space<vmem>>, vector<8x96xf32>
    %127 = arith.truncf %126 : vector<8x96xf32> to vector<8x96xbf16>
    %c80_142 = arith.constant 80 : index
    %c192_143 = arith.constant 192 : index
    %128 = vector.load %arg12[%c80_142, %c192_143] : memref<128x288xbf16, #tpu.memory_space<vmem>>, vector<8x96xbf16>
    tpu.vector_store %arg12[%c80_142, %c192_143], %127 {strides = array<i32>} : memref<128x288xbf16, #tpu.memory_space<vmem>>, vector<8x96xbf16>,
    %c0_144 = arith.constant 0 : index
    %c352_145 = arith.constant 352 : index
    %129 = vector.load %arg3[%c0_144, %c352_145] : memref<8x640xf32, #tpu.memory_space<vmem>>, vector<8x96xf32>
    %130 = arith.truncf %129 : vector<8x96xf32> to vector<8x96xbf16>
    %c88_146 = arith.constant 88 : index
    %c192_147 = arith.constant 192 : index
    %131 = vector.load %arg12[%c88_146, %c192_147] : memref<128x288xbf16, #tpu.memory_space<vmem>>, vector<8x96xbf16>
    tpu.vector_store %arg12[%c88_146, %c192_147], %130 {strides = array<i32>} : memref<128x288xbf16, #tpu.memory_space<vmem>>, vector<8x96xbf16>,
    %c0_148 = arith.constant 0 : index
    %c384_149 = arith.constant 384 : index
    %132 = vector.load %arg3[%c0_148, %c384_149] : memref<8x640xf32, #tpu.memory_space<vmem>>, vector<8x96xf32>
    %133 = arith.truncf %132 : vector<8x96xf32> to vector<8x96xbf16>
    %c96_150 = arith.constant 96 : index
    %c192_151 = arith.constant 192 : index
    %134 = vector.load %arg12[%c96_150, %c192_151] : memref<128x288xbf16, #tpu.memory_space<vmem>>, vector<8x96xbf16>
    tpu.vector_store %arg12[%c96_150, %c192_151], %133 {strides = array<i32>} : memref<128x288xbf16, #tpu.memory_space<vmem>>, vector<8x96xbf16>,
    %c0_152 = arith.constant 0 : index
    %c416_153 = arith.constant 416 : index
    %135 = vector.load %arg3[%c0_152, %c416_153] : memref<8x640xf32, #tpu.memory_space<vmem>>, vector<8x96xf32>
    %136 = arith.truncf %135 : vector<8x96xf32> to vector<8x96xbf16>
    %c104_154 = arith.constant 104 : index
    %c192_155 = arith.constant 192 : index
    %137 = vector.load %arg12[%c104_154, %c192_155] : memref<128x288xbf16, #tpu.memory_space<vmem>>, vector<8x96xbf16>
    tpu.vector_store %arg12[%c104_154, %c192_155], %136 {strides = array<i32>} : memref<128x288xbf16, #tpu.memory_space<vmem>>, vector<8x96xbf16>,
    %c0_156 = arith.constant 0 : index
    %c448_157 = arith.constant 448 : index
    %138 = vector.load %arg3[%c0_156, %c448_157] : memref<8x640xf32, #tpu.memory_space<vmem>>, vector<8x96xf32>
    %139 = arith.truncf %138 : vector<8x96xf32> to vector<8x96xbf16>
    %c112_158 = arith.constant 112 : index
    %c192_159 = arith.constant 192 : index
    %140 = vector.load %arg12[%c112_158, %c192_159] : memref<128x288xbf16, #tpu.memory_space<vmem>>, vector<8x96xbf16>
    tpu.vector_store %arg12[%c112_158, %c192_159], %139 {strides = array<i32>} : memref<128x288xbf16, #tpu.memory_space<vmem>>, vector<8x96xbf16>,
    %c0_160 = arith.constant 0 : index
    %c480_161 = arith.constant 480 : index
    %141 = vector.load %arg3[%c0_160, %c480_161] : memref<8x640xf32, #tpu.memory_space<vmem>>, vector<8x96xf32>
    %142 = arith.truncf %141 : vector<8x96xf32> to vector<8x96xbf16>
    %c120_162 = arith.constant 120 : index
    %c192_163 = arith.constant 192 : index
    %143 = vector.load %arg12[%c120_162, %c192_163] : memref<128x288xbf16, #tpu.memory_space<vmem>>, vector<8x96xbf16>
    tpu.vector_store %arg12[%c120_162, %c192_163], %142 {strides = array<i32>} : memref<128x288xbf16, #tpu.memory_space<vmem>>, vector<8x96xbf16>,
    %c0_164 = arith.constant 0 : index
    %c0_165 = arith.constant 0 : index
    %144 = vector.load %arg12[%c0_164, %c0_165] : memref<128x288xbf16, #tpu.memory_space<vmem>>, vector<128x288xbf16>
    %c0_166 = arith.constant 0 : index
    %c0_167 = arith.constant 0 : index
    %145 = vector.load %arg4[%c0_166, %c0_167] : memref<288x128xbf16, #tpu.memory_space<vmem>>, vector<288x128xbf16>
    %cst = arith.constant dense<0.000000e+00> : vector<128x128xf32>
    %146 = tpu.matmul %144, %145, %cst {dimension_numbers = #tpu.dot_dimension_numbers<[1], [0], [0], [1], [0, 0, 1, 1], [], []>} : vector<128x288xbf16>, vector<288x128xbf16>, vector<128x128xf32> -> vector<128x128xf32>
    %c0_168 = arith.constant 0 : index
    %c0_169 = arith.constant 0 : index
    %147 = vector.load %arg5[%c0_168, %c0_169] : memref<1x128xf32, #tpu.memory_space<vmem>>, vector<1x128xf32>
    %148 = vector.broadcast %147 : vector<1x128xf32> to vector<128x128xf32>
    %149 = arith.addf %146, %148 : vector<128x128xf32>
    %cst_170 = arith.constant 0.000000e+00 : f32
    %150 = vector.broadcast %cst_170 : f32 to vector<128x128xf32>
    %151 = arith.maximumf %149, %150 : vector<128x128xf32>
    %cst_171 = arith.constant 0.000000e+00 : f32
    %152 = vector.broadcast %cst_171 : f32 to vector<8x128xf32>
    %153 = vector.extract_strided_slice %151 {offsets = [0, 0], sizes = [8, 128], strides = [1, 1]} : vector<128x128xf32> to vector<8x128xf32>
    %c0_172 = arith.constant 0 : index
    %c0_173 = arith.constant 0 : index
    %154 = vector.load %arg6[%c0_172, %c0_173] : memref<16x128xf32, #tpu.memory_space<vmem>>, vector<1x128xf32>
    %155 = vector.broadcast %154 : vector<1x128xf32> to vector<8x128xf32>
    %156 = arith.mulf %153, %155 : vector<8x128xf32>
    %157 = arith.maximumf %152, %156 : vector<8x128xf32>
    %158 = vector.extract_strided_slice %151 {offsets = [8, 0], sizes = [8, 128], strides = [1, 1]} : vector<128x128xf32> to vector<8x128xf32>
    %c1 = arith.constant 1 : index
    %c0_174 = arith.constant 0 : index
    %159 = vector.load %arg6[%c1, %c0_174] : memref<16x128xf32, #tpu.memory_space<vmem>>, vector<1x128xf32>
    %160 = vector.broadcast %159 : vector<1x128xf32> to vector<8x128xf32>
    %161 = arith.mulf %158, %160 : vector<8x128xf32>
    %162 = arith.maximumf %157, %161 : vector<8x128xf32>
    %163 = vector.extract_strided_slice %151 {offsets = [16, 0], sizes = [8, 128], strides = [1, 1]} : vector<128x128xf32> to vector<8x128xf32>
    %c2 = arith.constant 2 : index
    %c0_175 = arith.constant 0 : index
    %164 = vector.load %arg6[%c2, %c0_175] : memref<16x128xf32, #tpu.memory_space<vmem>>, vector<1x128xf32>
    %165 = vector.broadcast %164 : vector<1x128xf32> to vector<8x128xf32>
    %166 = arith.mulf %163, %165 : vector<8x128xf32>
    %167 = arith.maximumf %162, %166 : vector<8x128xf32>
    %168 = vector.extract_strided_slice %151 {offsets = [24, 0], sizes = [8, 128], strides = [1, 1]} : vector<128x128xf32> to vector<8x128xf32>
    %c3 = arith.constant 3 : index
    %c0_176 = arith.constant 0 : index
    %169 = vector.load %arg6[%c3, %c0_176] : memref<16x128xf32, #tpu.memory_space<vmem>>, vector<1x128xf32>
    %170 = vector.broadcast %169 : vector<1x128xf32> to vector<8x128xf32>
    %171 = arith.mulf %168, %170 : vector<8x128xf32>
    %172 = arith.maximumf %167, %171 : vector<8x128xf32>
    %173 = vector.extract_strided_slice %151 {offsets = [32, 0], sizes = [8, 128], strides = [1, 1]} : vector<128x128xf32> to vector<8x128xf32>
    %c4 = arith.constant 4 : index
    %c0_177 = arith.constant 0 : index
    %174 = vector.load %arg6[%c4, %c0_177] : memref<16x128xf32, #tpu.memory_space<vmem>>, vector<1x128xf32>
    %175 = vector.broadcast %174 : vector<1x128xf32> to vector<8x128xf32>
    %176 = arith.mulf %173, %175 : vector<8x128xf32>
    %177 = arith.maximumf %172, %176 : vector<8x128xf32>
    %178 = vector.extract_strided_slice %151 {offsets = [40, 0], sizes = [8, 128], strides = [1, 1]} : vector<128x128xf32> to vector<8x128xf32>
    %c5 = arith.constant 5 : index
    %c0_178 = arith.constant 0 : index
    %179 = vector.load %arg6[%c5, %c0_178] : memref<16x128xf32, #tpu.memory_space<vmem>>, vector<1x128xf32>
    %180 = vector.broadcast %179 : vector<1x128xf32> to vector<8x128xf32>
    %181 = arith.mulf %178, %180 : vector<8x128xf32>
    %182 = arith.maximumf %177, %181 : vector<8x128xf32>
    %183 = vector.extract_strided_slice %151 {offsets = [48, 0], sizes = [8, 128], strides = [1, 1]} : vector<128x128xf32> to vector<8x128xf32>
    %c6 = arith.constant 6 : index
    %c0_179 = arith.constant 0 : index
    %184 = vector.load %arg6[%c6, %c0_179] : memref<16x128xf32, #tpu.memory_space<vmem>>, vector<1x128xf32>
    %185 = vector.broadcast %184 : vector<1x128xf32> to vector<8x128xf32>
    %186 = arith.mulf %183, %185 : vector<8x128xf32>
    %187 = arith.maximumf %182, %186 : vector<8x128xf32>
    %188 = vector.extract_strided_slice %151 {offsets = [56, 0], sizes = [8, 128], strides = [1, 1]} : vector<128x128xf32> to vector<8x128xf32>
    %c7 = arith.constant 7 : index
    %c0_180 = arith.constant 0 : index
    %189 = vector.load %arg6[%c7, %c0_180] : memref<16x128xf32, #tpu.memory_space<vmem>>, vector<1x128xf32>
    %190 = vector.broadcast %189 : vector<1x128xf32> to vector<8x128xf32>
    %191 = arith.mulf %188, %190 : vector<8x128xf32>
    %192 = arith.maximumf %187, %191 : vector<8x128xf32>
    %193 = vector.extract_strided_slice %151 {offsets = [64, 0], sizes = [8, 128], strides = [1, 1]} : vector<128x128xf32> to vector<8x128xf32>
    %c8_181 = arith.constant 8 : index
    %c0_182 = arith.constant 0 : index
    %194 = vector.load %arg6[%c8_181, %c0_182] : memref<16x128xf32, #tpu.memory_space<vmem>>, vector<1x128xf32>
    %195 = vector.broadcast %194 : vector<1x128xf32> to vector<8x128xf32>
    %196 = arith.mulf %193, %195 : vector<8x128xf32>
    %197 = arith.maximumf %192, %196 : vector<8x128xf32>
    %198 = vector.extract_strided_slice %151 {offsets = [72, 0], sizes = [8, 128], strides = [1, 1]} : vector<128x128xf32> to vector<8x128xf32>
    %c9 = arith.constant 9 : index
    %c0_183 = arith.constant 0 : index
    %199 = vector.load %arg6[%c9, %c0_183] : memref<16x128xf32, #tpu.memory_space<vmem>>, vector<1x128xf32>
    %200 = vector.broadcast %199 : vector<1x128xf32> to vector<8x128xf32>
    %201 = arith.mulf %198, %200 : vector<8x128xf32>
    %202 = arith.maximumf %197, %201 : vector<8x128xf32>
    %203 = vector.extract_strided_slice %151 {offsets = [80, 0], sizes = [8, 128], strides = [1, 1]} : vector<128x128xf32> to vector<8x128xf32>
    %c10 = arith.constant 10 : index
    %c0_184 = arith.constant 0 : index
    %204 = vector.load %arg6[%c10, %c0_184] : memref<16x128xf32, #tpu.memory_space<vmem>>, vector<1x128xf32>
    %205 = vector.broadcast %204 : vector<1x128xf32> to vector<8x128xf32>
    %206 = arith.mulf %203, %205 : vector<8x128xf32>
    %207 = arith.maximumf %202, %206 : vector<8x128xf32>
    %208 = vector.extract_strided_slice %151 {offsets = [88, 0], sizes = [8, 128], strides = [1, 1]} : vector<128x128xf32> to vector<8x128xf32>
    %c11 = arith.constant 11 : index
    %c0_185 = arith.constant 0 : index
    %209 = vector.load %arg6[%c11, %c0_185] : memref<16x128xf32, #tpu.memory_space<vmem>>, vector<1x128xf32>
    %210 = vector.broadcast %209 : vector<1x128xf32> to vector<8x128xf32>
    %211 = arith.mulf %208, %210 : vector<8x128xf32>
    %212 = arith.maximumf %207, %211 : vector<8x128xf32>
    %213 = vector.extract_strided_slice %151 {offsets = [96, 0], sizes = [8, 128], strides = [1, 1]} : vector<128x128xf32> to vector<8x128xf32>
    %c12 = arith.constant 12 : index
    %c0_186 = arith.constant 0 : index
    %214 = vector.load %arg6[%c12, %c0_186] : memref<16x128xf32, #tpu.memory_space<vmem>>, vector<1x128xf32>
    %215 = vector.broadcast %214 : vector<1x128xf32> to vector<8x128xf32>
    %216 = arith.mulf %213, %215 : vector<8x128xf32>
    %217 = arith.maximumf %212, %216 : vector<8x128xf32>
    %218 = vector.extract_strided_slice %151 {offsets = [104, 0], sizes = [8, 128], strides = [1, 1]} : vector<128x128xf32> to vector<8x128xf32>
    %c13 = arith.constant 13 : index
    %c0_187 = arith.constant 0 : index
    %219 = vector.load %arg6[%c13, %c0_187] : memref<16x128xf32, #tpu.memory_space<vmem>>, vector<1x128xf32>
    %220 = vector.broadcast %219 : vector<1x128xf32> to vector<8x128xf32>
    %221 = arith.mulf %218, %220 : vector<8x128xf32>
    %222 = arith.maximumf %217, %221 : vector<8x128xf32>
    %223 = vector.extract_strided_slice %151 {offsets = [112, 0], sizes = [8, 128], strides = [1, 1]} : vector<128x128xf32> to vector<8x128xf32>
    %c14 = arith.constant 14 : index
    %c0_188 = arith.constant 0 : index
    %224 = vector.load %arg6[%c14, %c0_188] : memref<16x128xf32, #tpu.memory_space<vmem>>, vector<1x128xf32>
    %225 = vector.broadcast %224 : vector<1x128xf32> to vector<8x128xf32>
    %226 = arith.mulf %223, %225 : vector<8x128xf32>
    %227 = arith.maximumf %222, %226 : vector<8x128xf32>
    %228 = vector.extract_strided_slice %151 {offsets = [120, 0], sizes = [8, 128], strides = [1, 1]} : vector<128x128xf32> to vector<8x128xf32>
    %c15 = arith.constant 15 : index
    %c0_189 = arith.constant 0 : index
    %229 = vector.load %arg6[%c15, %c0_189] : memref<16x128xf32, #tpu.memory_space<vmem>>, vector<1x128xf32>
    %230 = vector.broadcast %229 : vector<1x128xf32> to vector<8x128xf32>
    %231 = arith.mulf %228, %230 : vector<8x128xf32>
    %232 = arith.maximumf %227, %231 : vector<8x128xf32>
    %233 = arith.truncf %232 : vector<8x128xf32> to vector<8x128xbf16>
    %c0_190 = arith.constant 0 : index
    %c0_191 = arith.constant 0 : index
    %234 = vector.load %arg7[%c0_190, %c0_191] : memref<128x128xbf16, #tpu.memory_space<vmem>>, vector<128x128xbf16>
    %cst_192 = arith.constant dense<0.000000e+00> : vector<8x128xf32>
    %235 = tpu.matmul %233, %234, %cst_192 {dimension_numbers = #tpu.dot_dimension_numbers<[1], [0], [0], [1], [0, 0, 1, 1], [], []>} : vector<8x128xbf16>, vector<128x128xbf16>, vector<8x128xf32> -> vector<8x128xf32>
    %c0_193 = arith.constant 0 : index
    %c0_194 = arith.constant 0 : index
    %236 = vector.load %arg8[%c0_193, %c0_194] : memref<1x128xf32, #tpu.memory_space<vmem>>, vector<1x128xf32>
    %237 = vector.broadcast %236 : vector<1x128xf32> to vector<8x128xf32>
    %238 = arith.addf %235, %237 : vector<8x128xf32>
    %cst_195 = arith.constant 0.000000e+00 : f32
    %239 = vector.broadcast %cst_195 : f32 to vector<8x128xf32>
    %240 = arith.maximumf %238, %239 : vector<8x128xf32>
    %241 = arith.truncf %240 : vector<8x128xf32> to vector<8x128xbf16>
    %c0_196 = arith.constant 0 : index
    %c0_197 = arith.constant 0 : index
    %242 = vector.load %arg9[%c0_196, %c0_197] : memref<128x128xbf16, #tpu.memory_space<vmem>>, vector<128x128xbf16>
    %cst_198 = arith.constant dense<0.000000e+00> : vector<8x128xf32>
    %243 = tpu.matmul %241, %242, %cst_198 {dimension_numbers = #tpu.dot_dimension_numbers<[1], [0], [0], [1], [0, 0, 1, 1], [], []>} : vector<8x128xbf16>, vector<128x128xbf16>, vector<8x128xf32> -> vector<8x128xf32>
    %c0_199 = arith.constant 0 : index
    %c0_200 = arith.constant 0 : index
    %244 = vector.load %arg10[%c0_199, %c0_200] : memref<1x128xf32, #tpu.memory_space<vmem>>, vector<1x128xf32>
    %245 = vector.broadcast %244 : vector<1x128xf32> to vector<8x128xf32>
    %246 = arith.addf %243, %245 : vector<8x128xf32>
    %cst_201 = arith.constant 0.000000e+00 : f32
    %247 = vector.broadcast %cst_201 : f32 to vector<8x128xf32>
    %248 = arith.subf %247, %246 : vector<8x128xf32>
    %249 = math.exp %248 : vector<8x128xf32>
    %cst_202 = arith.constant 1.000000e+00 : f32
    %250 = vector.broadcast %cst_202 : f32 to vector<8x128xf32>
    %251 = arith.addf %250, %249 : vector<8x128xf32>
    %cst_203 = arith.constant 1.000000e+00 : f32
    %252 = vector.broadcast %cst_203 : f32 to vector<8x128xf32>
    %253 = arith.divf %252, %251 : vector<8x128xf32>
    %c0_204 = arith.constant 0 : index
    %c0_205 = arith.constant 0 : index
    %254 = vector.load %arg11[%c0_204, %c0_205] : memref<8x128xf32, #tpu.memory_space<vmem>>, vector<8x128xf32>
    tpu.vector_store %arg11[%c0_204, %c0_205], %253 {strides = array<i32>} : memref<8x128xf32, #tpu.memory_space<vmem>>, vector<8x128xf32>,
    return
  }
  func.func @transform_0(%arg0: i32) -> (i32, i32) {
    %c0_i32 = arith.constant 0 : i32
    %c0_i32_0 = arith.constant 0 : i32
    return %arg0, %c0_i32 : i32, i32
  }
  func.func @transform_1(%arg0: i32) -> (i32, i32) {
    %c0_i32 = arith.constant 0 : i32
    %c0_i32_0 = arith.constant 0 : i32
    return %arg0, %c0_i32 : i32, i32
  }
  func.func @transform_2(%arg0: i32) -> (i32, i32) {
    %c0_i32 = arith.constant 0 : i32
    %c0_i32_0 = arith.constant 0 : i32
    return %arg0, %c0_i32 : i32, i32
  }
  func.func @transform_3(%arg0: i32) -> (i32, i32) {
    %c0_i32 = arith.constant 0 : i32
    %c0_i32_0 = arith.constant 0 : i32
    %c0_i32_1 = arith.constant 0 : i32
    return %c0_i32, %c0_i32_0 : i32, i32
  }
  func.func @transform_4(%arg0: i32) -> (i32, i32) {
    %c0_i32 = arith.constant 0 : i32
    %c0_i32_0 = arith.constant 0 : i32
    %c0_i32_1 = arith.constant 0 : i32
    return %c0_i32, %c0_i32_0 : i32, i32
  }
  func.func @transform_5(%arg0: i32) -> (i32, i32) {
    %c0_i32 = arith.constant 0 : i32
    %c0_i32_0 = arith.constant 0 : i32
    %c0_i32_1 = arith.constant 0 : i32
    return %c0_i32, %c0_i32_0 : i32, i32
  }
  func.func @transform_6(%arg0: i32) -> (i32, i32) {
    %c0_i32 = arith.constant 0 : i32
    %c0_i32_0 = arith.constant 0 : i32
    %c0_i32_1 = arith.constant 0 : i32
    return %c0_i32, %c0_i32_0 : i32, i32
  }
  func.func @transform_7(%arg0: i32) -> (i32, i32) {
    %c0_i32 = arith.constant 0 : i32
    %c0_i32_0 = arith.constant 0 : i32
    %c0_i32_1 = arith.constant 0 : i32
    return %c0_i32, %c0_i32_0 : i32, i32
  }
  func.func @transform_8(%arg0: i32) -> (i32, i32) {
    %c0_i32 = arith.constant 0 : i32
    %c0_i32_0 = arith.constant 0 : i32
    %c0_i32_1 = arith.constant 0 : i32
    return %c0_i32, %c0_i32_0 : i32, i32
  }
  func.func @transform_9(%arg0: i32) -> (i32, i32) {
    %c0_i32 = arith.constant 0 : i32
    %c0_i32_0 = arith.constant 0 : i32
    %c0_i32_1 = arith.constant 0 : i32
    return %c0_i32, %c0_i32_0 : i32, i32
  }
  func.func @transform_10(%arg0: i32) -> (i32, i32) {
    %c0_i32 = arith.constant 0 : i32
    %c0_i32_0 = arith.constant 0 : i32
    return %arg0, %c0_i32 : i32, i32
  }
}

module attributes {stable_mosaic.version = 11 : i64} {
  func.func @_fused_multicomp_kernel(%arg0: i32, %arg1: memref<8x640xf32, #tpu.memory_space<vmem>>, %arg2: memref<8x640xf32, #tpu.memory_space<vmem>>, %arg3: memref<8x640xf32, #tpu.memory_space<vmem>>, %arg4: memref<288x128xbf16, #tpu.memory_space<vmem>>, %arg5: memref<1x128xf32, #tpu.memory_space<vmem>>, %arg6: memref<16x128xf32, #tpu.memory_space<vmem>>, %arg7: memref<128x128xbf16, #tpu.memory_space<vmem>>, %arg8: memref<1x128xf32, #tpu.memory_space<vmem>>, %arg9: memref<128x128xbf16, #tpu.memory_space<vmem>>, %arg10: memref<1x128xf32, #tpu.memory_space<vmem>>, %arg11: memref<8x128xf32, #tpu.memory_space<vmem>>, %arg12: memref<128x288xbf16, #tpu.memory_space<vmem>>) attributes {dimension_semantics = [#tpu.dimension_semantics<parallel>], iteration_bounds = array<i64: 2>, scalar_prefetch = 0 : i64, scratch_operands = 1 : i64, tpu.core_type = #tpu.core_type<tc>, window_params = [{transform_indices = @transform_0, window_bounds = array<i64: 8, 640>}, {transform_indices = @transform_1, window_bounds = array<i64: 8, 640>}, {transform_indices = @transform_2, window_bounds = array<i64: 8, 640>}, {pipeline_mode = #tpu.pipeline_mode<synchronous>, transform_indices = @transform_3, window_bounds = array<i64: 288, 128>}, {pipeline_mode = #tpu.pipeline_mode<synchronous>, transform_indices = @transform_4, window_bounds = array<i64: 1, 128>}, {pipeline_mode = #tpu.pipeline_mode<synchronous>, transform_indices = @transform_5, window_bounds = array<i64: 16, 128>}, {pipeline_mode = #tpu.pipeline_mode<synchronous>, transform_indices = @transform_6, window_bounds = array<i64: 128, 128>}, {pipeline_mode = #tpu.pipeline_mode<synchronous>, transform_indices = @transform_7, window_bounds = array<i64: 1, 128>}, {pipeline_mode = #tpu.pipeline_mode<synchronous>, transform_indices = @transform_8, window_bounds = array<i64: 128, 128>}, {pipeline_mode = #tpu.pipeline_mode<synchronous>, transform_indices = @transform_9, window_bounds = array<i64: 1, 128>}, {transform_indices = @transform_10, window_bounds = array<i64: 8, 128>}]} {
    %c0 = arith.constant 0 : index
    %c0_0 = arith.constant 0 : index
    %0 = vector.load %arg1[%c0, %c0_0] : memref<8x640xf32, #tpu.memory_space<vmem>>, vector<8x96xf32>
    %1 = arith.truncf %0 : vector<8x96xf32> to vector<8x96xbf16>
    %c0_1 = arith.constant 0 : index
    %c0_2 = arith.constant 0 : index
    %2 = vector.load %arg12[%c0_1, %c0_2] : memref<128x288xbf16, #tpu.memory_space<vmem>>, vector<8x96xbf16>
    tpu.vector_store %arg12[%c0_1, %c0_2], %1 {strides = array<i32>} : memref<128x288xbf16, #tpu.memory_space<vmem>>, vector<8x96xbf16>,
    %c0_3 = arith.constant 0 : index
    %c32 = arith.constant 32 : index
    %3 = vector.load %arg1[%c0_3, %c32] : memref<8x640xf32, #tpu.memory_space<vmem>>, vector<8x96xf32>
    %4 = arith.truncf %3 : vector<8x96xf32> to vector<8x96xbf16>
    %c8 = arith.constant 8 : index
    %c0_4 = arith.constant 0 : index
    %5 = vector.load %arg12[%c8, %c0_4] : memref<128x288xbf16, #tpu.memory_space<vmem>>, vector<8x96xbf16>
    tpu.vector_store %arg12[%c8, %c0_4], %4 {strides = array<i32>} : memref<128x288xbf16, #tpu.memory_space<vmem>>, vector<8x96xbf16>,
    %c0_5 = arith.constant 0 : index
    %c64 = arith.constant 64 : index
    %6 = vector.load %arg1[%c0_5, %c64] : memref<8x640xf32, #tpu.memory_space<vmem>>, vector<8x96xf32>
    %7 = arith.truncf %6 : vector<8x96xf32> to vector<8x96xbf16>
    %c16 = arith.constant 16 : index
    %c0_6 = arith.constant 0 : index
    %8 = vector.load %arg12[%c16, %c0_6] : memref<128x288xbf16, #tpu.memory_space<vmem>>, vector<8x96xbf16>
    tpu.vector_store %arg12[%c16, %c0_6], %7 {strides = array<i32>} : memref<128x288xbf16, #tpu.memory_space<vmem>>, vector<8x96xbf16>,
    %c0_7 = arith.constant 0 : index
    %c96 = arith.constant 96 : index
    %9 = vector.load %arg1[%c0_7, %c96] : memref<8x640xf32, #tpu.memory_space<vmem>>, vector<8x96xf32>
    %10 = arith.truncf %9 : vector<8x96xf32> to vector<8x96xbf16>
    %c24 = arith.constant 24 : index
    %c0_8 = arith.constant 0 : index
    %11 = vector.load %arg12[%c24, %c0_8] : memref<128x288xbf16, #tpu.memory_space<vmem>>, vector<8x96xbf16>
    tpu.vector_store %arg12[%c24, %c0_8], %10 {strides = array<i32>} : memref<128x288xbf16, #tpu.memory_space<vmem>>, vector<8x96xbf16>,
    %c0_9 = arith.constant 0 : index
    %c128 = arith.constant 128 : index
    %12 = vector.load %arg1[%c0_9, %c128] : memref<8x640xf32, #tpu.memory_space<vmem>>, vector<8x96xf32>
    %13 = arith.truncf %12 : vector<8x96xf32> to vector<8x96xbf16>
    %c32_10 = arith.constant 32 : index
    %c0_11 = arith.constant 0 : index
    %14 = vector.load %arg12[%c32_10, %c0_11] : memref<128x288xbf16, #tpu.memory_space<vmem>>, vector<8x96xbf16>
    tpu.vector_store %arg12[%c32_10, %c0_11], %13 {strides = array<i32>} : memref<128x288xbf16, #tpu.memory_space<vmem>>, vector<8x96xbf16>,
    %c0_12 = arith.constant 0 : index
    %c160 = arith.constant 160 : index
    %15 = vector.load %arg1[%c0_12, %c160] : memref<8x640xf32, #tpu.memory_space<vmem>>, vector<8x96xf32>
    %16 = arith.truncf %15 : vector<8x96xf32> to vector<8x96xbf16>
    %c40 = arith.constant 40 : index
    %c0_13 = arith.constant 0 : index
    %17 = vector.load %arg12[%c40, %c0_13] : memref<128x288xbf16, #tpu.memory_space<vmem>>, vector<8x96xbf16>
    tpu.vector_store %arg12[%c40, %c0_13], %16 {strides = array<i32>} : memref<128x288xbf16, #tpu.memory_space<vmem>>, vector<8x96xbf16>,
    %c0_14 = arith.constant 0 : index
    %c192 = arith.constant 192 : index
    %18 = vector.load %arg1[%c0_14, %c192] : memref<8x640xf32, #tpu.memory_space<vmem>>, vector<8x96xf32>
    %19 = arith.truncf %18 : vector<8x96xf32> to vector<8x96xbf16>
    %c48 = arith.constant 48 : index
    %c0_15 = arith.constant 0 : index
    %20 = vector.load %arg12[%c48, %c0_15] : memref<128x288xbf16, #tpu.memory_space<vmem>>, vector<8x96xbf16>
    tpu.vector_store %arg12[%c48, %c0_15], %19 {strides = array<i32>} : memref<128x288xbf16, #tpu.memory_space<vmem>>, vector<8x96xbf16>,
    %c0_16 = arith.constant 0 : index
    %c224 = arith.constant 224 : index
    %21 = vector.load %arg1[%c0_16, %c224] : memref<8x640xf32, #tpu.memory_space<vmem>>, vector<8x96xf32>
    %22 = arith.truncf %21 : vector<8x96xf32> to vector<8x96xbf16>
    %c56 = arith.constant 56 : index
    %c0_17 = arith.constant 0 : index
    %23 = vector.load %arg12[%c56, %c0_17] : memref<128x288xbf16, #tpu.memory_space<vmem>>, vector<8x96xbf16>
    tpu.vector_store %arg12[%c56, %c0_17], %22 {strides = array<i32>} : memref<128x288xbf16, #tpu.memory_space<vmem>>, vector<8x96xbf16>,
    %c0_18 = arith.constant 0 : index
    %c256 = arith.constant 256 : index
    %24 = vector.load %arg1[%c0_18, %c256] : memref<8x640xf32, #tpu.memory_space<vmem>>, vector<8x96xf32>
    %25 = arith.truncf %24 : vector<8x96xf32> to vector<8x96xbf16>
    %c64_19 = arith.constant 64 : index
    %c0_20 = arith.constant 0 : index
    %26 = vector.load %arg12[%c64_19, %c0_20] : memref<128x288xbf16, #tpu.memory_space<vmem>>, vector<8x96xbf16>
    tpu.vector_store %arg12[%c64_19, %c0_20], %25 {strides = array<i32>} : memref<128x288xbf16, #tpu.memory_space<vmem>>, vector<8x96xbf16>,
    %c0_21 = arith.constant 0 : index
    %c288 = arith.constant 288 : index
    %27 = vector.load %arg1[%c0_21, %c288] : memref<8x640xf32, #tpu.memory_space<vmem>>, vector<8x96xf32>
    %28 = arith.truncf %27 : vector<8x96xf32> to vector<8x96xbf16>
    %c72 = arith.constant 72 : index
    %c0_22 = arith.constant 0 : index
    %29 = vector.load %arg12[%c72, %c0_22] : memref<128x288xbf16, #tpu.memory_space<vmem>>, vector<8x96xbf16>
    tpu.vector_store %arg12[%c72, %c0_22], %28 {strides = array<i32>} : memref<128x288xbf16, #tpu.memory_space<vmem>>, vector<8x96xbf16>,
    %c0_23 = arith.constant 0 : index
    %c320 = arith.constant 320 : index
    %30 = vector.load %arg1[%c0_23, %c320] : memref<8x640xf32, #tpu.memory_space<vmem>>, vector<8x96xf32>
    %31 = arith.truncf %30 : vector<8x96xf32> to vector<8x96xbf16>
    %c80 = arith.constant 80 : index
    %c0_24 = arith.constant 0 : index
    %32 = vector.load %arg12[%c80, %c0_24] : memref<128x288xbf16, #tpu.memory_space<vmem>>, vector<8x96xbf16>
    tpu.vector_store %arg12[%c80, %c0_24], %31 {strides = array<i32>} : memref<128x288xbf16, #tpu.memory_space<vmem>>, vector<8x96xbf16>,
    %c0_25 = arith.constant 0 : index
    %c352 = arith.constant 352 : index
    %33 = vector.load %arg1[%c0_25, %c352] : memref<8x640xf32, #tpu.memory_space<vmem>>, vector<8x96xf32>
    %34 = arith.truncf %33 : vector<8x96xf32> to vector<8x96xbf16>
    %c88 = arith.constant 88 : index
    %c0_26 = arith.constant 0 : index
    %35 = vector.load %arg12[%c88, %c0_26] : memref<128x288xbf16, #tpu.memory_space<vmem>>, vector<8x96xbf16>
    tpu.vector_store %arg12[%c88, %c0_26], %34 {strides = array<i32>} : memref<128x288xbf16, #tpu.memory_space<vmem>>, vector<8x96xbf16>,
    %c0_27 = arith.constant 0 : index
    %c384 = arith.constant 384 : index
    %36 = vector.load %arg1[%c0_27, %c384] : memref<8x640xf32, #tpu.memory_space<vmem>>, vector<8x96xf32>
    %37 = arith.truncf %36 : vector<8x96xf32> to vector<8x96xbf16>
    %c96_28 = arith.constant 96 : index
    %c0_29 = arith.constant 0 : index
    %38 = vector.load %arg12[%c96_28, %c0_29] : memref<128x288xbf16, #tpu.memory_space<vmem>>, vector<8x96xbf16>
    tpu.vector_store %arg12[%c96_28, %c0_29], %37 {strides = array<i32>} : memref<128x288xbf16, #tpu.memory_space<vmem>>, vector<8x96xbf16>,
    %c0_30 = arith.constant 0 : index
    %c416 = arith.constant 416 : index
    %39 = vector.load %arg1[%c0_30, %c416] : memref<8x640xf32, #tpu.memory_space<vmem>>, vector<8x96xf32>
    %40 = arith.truncf %39 : vector<8x96xf32> to vector<8x96xbf16>
    %c104 = arith.constant 104 : index
    %c0_31 = arith.constant 0 : index
    %41 = vector.load %arg12[%c104, %c0_31] : memref<128x288xbf16, #tpu.memory_space<vmem>>, vector<8x96xbf16>
    tpu.vector_store %arg12[%c104, %c0_31], %40 {strides = array<i32>} : memref<128x288xbf16, #tpu.memory_space<vmem>>, vector<8x96xbf16>,
    %c0_32 = arith.constant 0 : index
    %c448 = arith.constant 448 : index
    %42 = vector.load %arg1[%c0_32, %c448] : memref<8x640xf32, #tpu.memory_space<vmem>>, vector<8x96xf32>
    %43 = arith.truncf %42 : vector<8x96xf32> to vector<8x96xbf16>
    %c112 = arith.constant 112 : index
    %c0_33 = arith.constant 0 : index
    %44 = vector.load %arg12[%c112, %c0_33] : memref<128x288xbf16, #tpu.memory_space<vmem>>, vector<8x96xbf16>
    tpu.vector_store %arg12[%c112, %c0_33], %43 {strides = array<i32>} : memref<128x288xbf16, #tpu.memory_space<vmem>>, vector<8x96xbf16>,
    %c0_34 = arith.constant 0 : index
    %c480 = arith.constant 480 : index
    %45 = vector.load %arg1[%c0_34, %c480] : memref<8x640xf32, #tpu.memory_space<vmem>>, vector<8x96xf32>
    %46 = arith.truncf %45 : vector<8x96xf32> to vector<8x96xbf16>
    %c120 = arith.constant 120 : index
    %c0_35 = arith.constant 0 : index
    %47 = vector.load %arg12[%c120, %c0_35] : memref<128x288xbf16, #tpu.memory_space<vmem>>, vector<8x96xbf16>
    tpu.vector_store %arg12[%c120, %c0_35], %46 {strides = array<i32>} : memref<128x288xbf16, #tpu.memory_space<vmem>>, vector<8x96xbf16>,
    %c0_36 = arith.constant 0 : index
    %c0_37 = arith.constant 0 : index
    %48 = vector.load %arg2[%c0_36, %c0_37] : memref<8x640xf32, #tpu.memory_space<vmem>>, vector<8x96xf32>
    %49 = arith.truncf %48 : vector<8x96xf32> to vector<8x96xbf16>
    %c0_38 = arith.constant 0 : index
    %c96_39 = arith.constant 96 : index
    %50 = vector.load %arg12[%c0_38, %c96_39] : memref<128x288xbf16, #tpu.memory_space<vmem>>, vector<8x96xbf16>
    tpu.vector_store %arg12[%c0_38, %c96_39], %49 {strides = array<i32>} : memref<128x288xbf16, #tpu.memory_space<vmem>>, vector<8x96xbf16>,
    %c0_40 = arith.constant 0 : index
    %c32_41 = arith.constant 32 : index
    %51 = vector.load %arg2[%c0_40, %c32_41] : memref<8x640xf32, #tpu.memory_space<vmem>>, vector<8x96xf32>
    %52 = arith.truncf %51 : vector<8x96xf32> to vector<8x96xbf16>
    %c8_42 = arith.constant 8 : index
    %c96_43 = arith.constant 96 : index
    %53 = vector.load %arg12[%c8_42, %c96_43] : memref<128x288xbf16, #tpu.memory_space<vmem>>, vector<8x96xbf16>
    tpu.vector_store %arg12[%c8_42, %c96_43], %52 {strides = array<i32>} : memref<128x288xbf16, #tpu.memory_space<vmem>>, vector<8x96xbf16>,
    %c0_44 = arith.constant 0 : index
    %c64_45 = arith.constant 64 : index
    %54 = vector.load %arg2[%c0_44, %c64_45] : memref<8x640xf32, #tpu.memory_space<vmem>>, vector<8x96xf32>
    %55 = arith.truncf %54 : vector<8x96xf32> to vector<8x96xbf16>
    %c16_46 = arith.constant 16 : index
    %c96_47 = arith.constant 96 : index
    %56 = vector.load %arg12[%c16_46, %c96_47] : memref<128x288xbf16, #tpu.memory_space<vmem>>, vector<8x96xbf16>
    tpu.vector_store %arg12[%c16_46, %c96_47], %55 {strides = array<i32>} : memref<128x288xbf16, #tpu.memory_space<vmem>>, vector<8x96xbf16>,
    %c0_48 = arith.constant 0 : index
    %c96_49 = arith.constant 96 : index
    %57 = vector.load %arg2[%c0_48, %c96_49] : memref<8x640xf32, #tpu.memory_space<vmem>>, vector<8x96xf32>
    %58 = arith.truncf %57 : vector<8x96xf32> to vector<8x96xbf16>
    %c24_50 = arith.constant 24 : index
    %c96_51 = arith.constant 96 : index
    %59 = vector.load %arg12[%c24_50, %c96_51] : memref<128x288xbf16, #tpu.memory_space<vmem>>, vector<8x96xbf16>
    tpu.vector_store %arg12[%c24_50, %c96_51], %58 {strides = array<i32>} : memref<128x288xbf16, #tpu.memory_space<vmem>>, vector<8x96xbf16>,
    %c0_52 = arith.constant 0 : index
    %c128_53 = arith.constant 128 : index
    %60 = vector.load %arg2[%c0_52, %c128_53] : memref<8x640xf32, #tpu.memory_space<vmem>>, vector<8x96xf32>
    %61 = arith.truncf %60 : vector<8x96xf32> to vector<8x96xbf16>
    %c32_54 = arith.constant 32 : index
    %c96_55 = arith.constant 96 : index
    %62 = vector.load %arg12[%c32_54, %c96_55] : memref<128x288xbf16, #tpu.memory_space<vmem>>, vector<8x96xbf16>
    tpu.vector_store %arg12[%c32_54, %c96_55], %61 {strides = array<i32>} : memref<128x288xbf16, #tpu.memory_space<vmem>>, vector<8x96xbf16>,
    %c0_56 = arith.constant 0 : index
    %c160_57 = arith.constant 160 : index
    %63 = vector.load %arg2[%c0_56, %c160_57] : memref<8x640xf32, #tpu.memory_space<vmem>>, vector<8x96xf32>
    %64 = arith.truncf %63 : vector<8x96xf32> to vector<8x96xbf16>
    %c40_58 = arith.constant 40 : index
    %c96_59 = arith.constant 96 : index
    %65 = vector.load %arg12[%c40_58, %c96_59] : memref<128x288xbf16, #tpu.memory_space<vmem>>, vector<8x96xbf16>
    tpu.vector_store %arg12[%c40_58, %c96_59], %64 {strides = array<i32>} : memref<128x288xbf16, #tpu.memory_space<vmem>>, vector<8x96xbf16>,
    %c0_60 = arith.constant 0 : index
    %c192_61 = arith.constant 192 : index
    %66 = vector.load %arg2[%c0_60, %c192_61] : memref<8x640xf32, #tpu.memory_space<vmem>>, vector<8x96xf32>
    %67 = arith.truncf %66 : vector<8x96xf32> to vector<8x96xbf16>
    %c48_62 = arith.constant 48 : index
    %c96_63 = arith.constant 96 : index
    %68 = vector.load %arg12[%c48_62, %c96_63] : memref<128x288xbf16, #tpu.memory_space<vmem>>, vector<8x96xbf16>
    tpu.vector_store %arg12[%c48_62, %c96_63], %67 {strides = array<i32>} : memref<128x288xbf16, #tpu.memory_space<vmem>>, vector<8x96xbf16>,
    %c0_64 = arith.constant 0 : index
    %c224_65 = arith.constant 224 : index
    %69 = vector.load %arg2[%c0_64, %c224_65] : memref<8x640xf32, #tpu.memory_space<vmem>>, vector<8x96xf32>
    %70 = arith.truncf %69 : vector<8x96xf32> to vector<8x96xbf16>
    %c56_66 = arith.constant 56 : index
    %c96_67 = arith.constant 96 : index
    %71 = vector.load %arg12[%c56_66, %c96_67] : memref<128x288xbf16, #tpu.memory_space<vmem>>, vector<8x96xbf16>
    tpu.vector_store %arg12[%c56_66, %c96_67], %70 {strides = array<i32>} : memref<128x288xbf16, #tpu.memory_space<vmem>>, vector<8x96xbf16>,
    %c0_68 = arith.constant 0 : index
    %c256_69 = arith.constant 256 : index
    %72 = vector.load %arg2[%c0_68, %c256_69] : memref<8x640xf32, #tpu.memory_space<vmem>>, vector<8x96xf32>
    %73 = arith.truncf %72 : vector<8x96xf32> to vector<8x96xbf16>
    %c64_70 = arith.constant 64 : index
    %c96_71 = arith.constant 96 : index
    %74 = vector.load %arg12[%c64_70, %c96_71] : memref<128x288xbf16, #tpu.memory_space<vmem>>, vector<8x96xbf16>
    tpu.vector_store %arg12[%c64_70, %c96_71], %73 {strides = array<i32>} : memref<128x288xbf16, #tpu.memory_space<vmem>>, vector<8x96xbf16>,
    %c0_72 = arith.constant 0 : index
    %c288_73 = arith.constant 288 : index
    %75 = vector.load %arg2[%c0_72, %c288_73] : memref<8x640xf32, #tpu.memory_space<vmem>>, vector<8x96xf32>
    %76 = arith.truncf %75 : vector<8x96xf32> to vector<8x96xbf16>
    %c72_74 = arith.constant 72 : index
    %c96_75 = arith.constant 96 : index
    %77 = vector.load %arg12[%c72_74, %c96_75] : memref<128x288xbf16, #tpu.memory_space<vmem>>, vector<8x96xbf16>
    tpu.vector_store %arg12[%c72_74, %c96_75], %76 {strides = array<i32>} : memref<128x288xbf16, #tpu.memory_space<vmem>>, vector<8x96xbf16>,
    %c0_76 = arith.constant 0 : index
    %c320_77 = arith.constant 320 : index
    %78 = vector.load %arg2[%c0_76, %c320_77] : memref<8x640xf32, #tpu.memory_space<vmem>>, vector<8x96xf32>
    %79 = arith.truncf %78 : vector<8x96xf32> to vector<8x96xbf16>
    %c80_78 = arith.constant 80 : index
    %c96_79 = arith.constant 96 : index
    %80 = vector.load %arg12[%c80_78, %c96_79] : memref<128x288xbf16, #tpu.memory_space<vmem>>, vector<8x96xbf16>
    tpu.vector_store %arg12[%c80_78, %c96_79], %79 {strides = array<i32>} : memref<128x288xbf16, #tpu.memory_space<vmem>>, vector<8x96xbf16>,
    %c0_80 = arith.constant 0 : index
    %c352_81 = arith.constant 352 : index
    %81 = vector.load %arg2[%c0_80, %c352_81] : memref<8x640xf32, #tpu.memory_space<vmem>>, vector<8x96xf32>
    %82 = arith.truncf %81 : vector<8x96xf32> to vector<8x96xbf16>
    %c88_82 = arith.constant 88 : index
    %c96_83 = arith.constant 96 : index
    %83 = vector.load %arg12[%c88_82, %c96_83] : memref<128x288xbf16, #tpu.memory_space<vmem>>, vector<8x96xbf16>
    tpu.vector_store %arg12[%c88_82, %c96_83], %82 {strides = array<i32>} : memref<128x288xbf16, #tpu.memory_space<vmem>>, vector<8x96xbf16>,
    %c0_84 = arith.constant 0 : index
    %c384_85 = arith.constant 384 : index
    %84 = vector.load %arg2[%c0_84, %c384_85] : memref<8x640xf32, #tpu.memory_space<vmem>>, vector<8x96xf32>
    %85 = arith.truncf %84 : vector<8x96xf32> to vector<8x96xbf16>
    %c96_86 = arith.constant 96 : index
    %c96_87 = arith.constant 96 : index
    %86 = vector.load %arg12[%c96_86, %c96_87] : memref<128x288xbf16, #tpu.memory_space<vmem>>, vector<8x96xbf16>
    tpu.vector_store %arg12[%c96_86, %c96_87], %85 {strides = array<i32>} : memref<128x288xbf16, #tpu.memory_space<vmem>>, vector<8x96xbf16>,
    %c0_88 = arith.constant 0 : index
    %c416_89 = arith.constant 416 : index
    %87 = vector.load %arg2[%c0_88, %c416_89] : memref<8x640xf32, #tpu.memory_space<vmem>>, vector<8x96xf32>
    %88 = arith.truncf %87 : vector<8x96xf32> to vector<8x96xbf16>
    %c104_90 = arith.constant 104 : index
    %c96_91 = arith.constant 96 : index
    %89 = vector.load %arg12[%c104_90, %c96_91] : memref<128x288xbf16, #tpu.memory_space<vmem>>, vector<8x96xbf16>
    tpu.vector_store %arg12[%c104_90, %c96_91], %88 {strides = array<i32>} : memref<128x288xbf16, #tpu.memory_space<vmem>>, vector<8x96xbf16>,
    %c0_92 = arith.constant 0 : index
    %c448_93 = arith.constant 448 : index
    %90 = vector.load %arg2[%c0_92, %c448_93] : memref<8x640xf32, #tpu.memory_space<vmem>>, vector<8x96xf32>
    %91 = arith.truncf %90 : vector<8x96xf32> to vector<8x96xbf16>
    %c112_94 = arith.constant 112 : index
    %c96_95 = arith.constant 96 : index
    %92 = vector.load %arg12[%c112_94, %c96_95] : memref<128x288xbf16, #tpu.memory_space<vmem>>, vector<8x96xbf16>
    tpu.vector_store %arg12[%c112_94, %c96_95], %91 {strides = array<i32>} : memref<128x288xbf16, #tpu.memory_space<vmem>>, vector<8x96xbf16>,
    %c0_96 = arith.constant 0 : index
    %c480_97 = arith.constant 480 : index
    %93 = vector.load %arg2[%c0_96, %c480_97] : memref<8x640xf32, #tpu.memory_space<vmem>>, vector<8x96xf32>
    %94 = arith.truncf %93 : vector<8x96xf32> to vector<8x96xbf16>
    %c120_98 = arith.constant 120 : index
    %c96_99 = arith.constant 96 : index
    %95 = vector.load %arg12[%c120_98, %c96_99] : memref<128x288xbf16, #tpu.memory_space<vmem>>, vector<8x96xbf16>
    tpu.vector_store %arg12[%c120_98, %c96_99], %94 {strides = array<i32>} : memref<128x288xbf16, #tpu.memory_space<vmem>>, vector<8x96xbf16>,
    %c0_100 = arith.constant 0 : index
    %c0_101 = arith.constant 0 : index
    %96 = vector.load %arg3[%c0_100, %c0_101] : memref<8x640xf32, #tpu.memory_space<vmem>>, vector<8x96xf32>
    %97 = arith.truncf %96 : vector<8x96xf32> to vector<8x96xbf16>
    %c0_102 = arith.constant 0 : index
    %c192_103 = arith.constant 192 : index
    %98 = vector.load %arg12[%c0_102, %c192_103] : memref<128x288xbf16, #tpu.memory_space<vmem>>, vector<8x96xbf16>
    tpu.vector_store %arg12[%c0_102, %c192_103], %97 {strides = array<i32>} : memref<128x288xbf16, #tpu.memory_space<vmem>>, vector<8x96xbf16>,
    %c0_104 = arith.constant 0 : index
    %c32_105 = arith.constant 32 : index
    %99 = vector.load %arg3[%c0_104, %c32_105] : memref<8x640xf32, #tpu.memory_space<vmem>>, vector<8x96xf32>
    %100 = arith.truncf %99 : vector<8x96xf32> to vector<8x96xbf16>
    %c8_106 = arith.constant 8 : index
    %c192_107 = arith.constant 192 : index
    %101 = vector.load %arg12[%c8_106, %c192_107] : memref<128x288xbf16, #tpu.memory_space<vmem>>, vector<8x96xbf16>
    tpu.vector_store %arg12[%c8_106, %c192_107], %100 {strides = array<i32>} : memref<128x288xbf16, #tpu.memory_space<vmem>>, vector<8x96xbf16>,
    %c0_108 = arith.constant 0 : index
    %c64_109 = arith.constant 64 : index
    %102 = vector.load %arg3[%c0_108, %c64_109] : memref<8x640xf32, #tpu.memory_space<vmem>>, vector<8x96xf32>
    %103 = arith.truncf %102 : vector<8x96xf32> to vector<8x96xbf16>
    %c16_110 = arith.constant 16 : index
    %c192_111 = arith.constant 192 : index
    %104 = vector.load %arg12[%c16_110, %c192_111] : memref<128x288xbf16, #tpu.memory_space<vmem>>, vector<8x96xbf16>
    tpu.vector_store %arg12[%c16_110, %c192_111], %103 {strides = array<i32>} : memref<128x288xbf16, #tpu.memory_space<vmem>>, vector<8x96xbf16>,
    %c0_112 = arith.constant 0 : index
    %c96_113 = arith.constant 96 : index
    %105 = vector.load %arg3[%c0_112, %c96_113] : memref<8x640xf32, #tpu.memory_space<vmem>>, vector<8x96xf32>
    %106 = arith.truncf %105 : vector<8x96xf32> to vector<8x96xbf16>
    %c24_114 = arith.constant 24 : index
    %c192_115 = arith.constant 192 : index
    %107 = vector.load %arg12[%c24_114, %c192_115] : memref<128x288xbf16, #tpu.memory_space<vmem>>, vector<8x96xbf16>
    tpu.vector_store %arg12[%c24_114, %c192_115], %106 {strides = array<i32>} : memref<128x288xbf16, #tpu.memory_space<vmem>>, vector<8x96xbf16>,
    %c0_116 = arith.constant 0 : index
    %c128_117 = arith.constant 128 : index
    %108 = vector.load %arg3[%c0_116, %c128_117] : memref<8x640xf32, #tpu.memory_space<vmem>>, vector<8x96xf32>
    %109 = arith.truncf %108 : vector<8x96xf32> to vector<8x96xbf16>
    %c32_118 = arith.constant 32 : index
    %c192_119 = arith.constant 192 : index
    %110 = vector.load %arg12[%c32_118, %c192_119] : memref<128x288xbf16, #tpu.memory_space<vmem>>, vector<8x96xbf16>
    tpu.vector_store %arg12[%c32_118, %c192_119], %109 {strides = array<i32>} : memref<128x288xbf16, #tpu.memory_space<vmem>>, vector<8x96xbf16>,
    %c0_120 = arith.constant 0 : index
    %c160_121 = arith.constant 160 : index
    %111 = vector.load %arg3[%c0_120, %c160_121] : memref<8x640xf32, #tpu.memory_space<vmem>>, vector<8x96xf32>
    %112 = arith.truncf %111 : vector<8x96xf32> to vector<8x96xbf16>
    %c40_122 = arith.constant 40 : index
    %c192_123 = arith.constant 192 : index
    %113 = vector.load %arg12[%c40_122, %c192_123] : memref<128x288xbf16, #tpu.memory_space<vmem>>, vector<8x96xbf16>
    tpu.vector_store %arg12[%c40_122, %c192_123], %112 {strides = array<i32>} : memref<128x288xbf16, #tpu.memory_space<vmem>>, vector<8x96xbf16>,
    %c0_124 = arith.constant 0 : index
    %c192_125 = arith.constant 192 : index
    %114 = vector.load %arg3[%c0_124, %c192_125] : memref<8x640xf32, #tpu.memory_space<vmem>>, vector<8x96xf32>
    %115 = arith.truncf %114 : vector<8x96xf32> to vector<8x96xbf16>
    %c48_126 = arith.constant 48 : index
    %c192_127 = arith.constant 192 : index
    %116 = vector.load %arg12[%c48_126, %c192_127] : memref<128x288xbf16, #tpu.memory_space<vmem>>, vector<8x96xbf16>
    tpu.vector_store %arg12[%c48_126, %c192_127], %115 {strides = array<i32>} : memref<128x288xbf16, #tpu.memory_space<vmem>>, vector<8x96xbf16>,
    %c0_128 = arith.constant 0 : index
    %c224_129 = arith.constant 224 : index
    %117 = vector.load %arg3[%c0_128, %c224_129] : memref<8x640xf32, #tpu.memory_space<vmem>>, vector<8x96xf32>
    %118 = arith.truncf %117 : vector<8x96xf32> to vector<8x96xbf16>
    %c56_130 = arith.constant 56 : index
    %c192_131 = arith.constant 192 : index
    %119 = vector.load %arg12[%c56_130, %c192_131] : memref<128x288xbf16, #tpu.memory_space<vmem>>, vector<8x96xbf16>
    tpu.vector_store %arg12[%c56_130, %c192_131], %118 {strides = array<i32>} : memref<128x288xbf16, #tpu.memory_space<vmem>>, vector<8x96xbf16>,
    %c0_132 = arith.constant 0 : index
    %c256_133 = arith.constant 256 : index
    %120 = vector.load %arg3[%c0_132, %c256_133] : memref<8x640xf32, #tpu.memory_space<vmem>>, vector<8x96xf32>
    %121 = arith.truncf %120 : vector<8x96xf32> to vector<8x96xbf16>
    %c64_134 = arith.constant 64 : index
    %c192_135 = arith.constant 192 : index
    %122 = vector.load %arg12[%c64_134, %c192_135] : memref<128x288xbf16, #tpu.memory_space<vmem>>, vector<8x96xbf16>
    tpu.vector_store %arg12[%c64_134, %c192_135], %121 {strides = array<i32>} : memref<128x288xbf16, #tpu.memory_space<vmem>>, vector<8x96xbf16>,
    %c0_136 = arith.constant 0 : index
    %c288_137 = arith.constant 288 : index
    %123 = vector.load %arg3[%c0_136, %c288_137] : memref<8x640xf32, #tpu.memory_space<vmem>>, vector<8x96xf32>
    %124 = arith.truncf %123 : vector<8x96xf32> to vector<8x96xbf16>
    %c72_138 = arith.constant 72 : index
    %c192_139 = arith.constant 192 : index
    %125 = vector.load %arg12[%c72_138, %c192_139] : memref<128x288xbf16, #tpu.memory_space<vmem>>, vector<8x96xbf16>
    tpu.vector_store %arg12[%c72_138, %c192_139], %124 {strides = array<i32>} : memref<128x288xbf16, #tpu.memory_space<vmem>>, vector<8x96xbf16>,
    %c0_140 = arith.constant 0 : index
    %c320_141 = arith.constant 320 : index
    %126 = vector.load %arg3[%c0_140, %c320_141] : memref<8x640xf32, #tpu.memory_space<vmem>>, vector<8x96xf32>
    %127 = arith.truncf %126 : vector<8x96xf32> to vector<8x96xbf16>
    %c80_142 = arith.constant 80 : index
    %c192_143 = arith.constant 192 : index
    %128 = vector.load %arg12[%c80_142, %c192_143] : memref<128x288xbf16, #tpu.memory_space<vmem>>, vector<8x96xbf16>
    tpu.vector_store %arg12[%c80_142, %c192_143], %127 {strides = array<i32>} : memref<128x288xbf16, #tpu.memory_space<vmem>>, vector<8x96xbf16>,
    %c0_144 = arith.constant 0 : index
    %c352_145 = arith.constant 352 : index
    %129 = vector.load %arg3[%c0_144, %c352_145] : memref<8x640xf32, #tpu.memory_space<vmem>>, vector<8x96xf32>
    %130 = arith.truncf %129 : vector<8x96xf32> to vector<8x96xbf16>
    %c88_146 = arith.constant 88 : index
    %c192_147 = arith.constant 192 : index
    %131 = vector.load %arg12[%c88_146, %c192_147] : memref<128x288xbf16, #tpu.memory_space<vmem>>, vector<8x96xbf16>
    tpu.vector_store %arg12[%c88_146, %c192_147], %130 {strides = array<i32>} : memref<128x288xbf16, #tpu.memory_space<vmem>>, vector<8x96xbf16>,
    %c0_148 = arith.constant 0 : index
    %c384_149 = arith.constant 384 : index
    %132 = vector.load %arg3[%c0_148, %c384_149] : memref<8x640xf32, #tpu.memory_space<vmem>>, vector<8x96xf32>
    %133 = arith.truncf %132 : vector<8x96xf32> to vector<8x96xbf16>
    %c96_150 = arith.constant 96 : index
    %c192_151 = arith.constant 192 : index
    %134 = vector.load %arg12[%c96_150, %c192_151] : memref<128x288xbf16, #tpu.memory_space<vmem>>, vector<8x96xbf16>
    tpu.vector_store %arg12[%c96_150, %c192_151], %133 {strides = array<i32>} : memref<128x288xbf16, #tpu.memory_space<vmem>>, vector<8x96xbf16>,
    %c0_152 = arith.constant 0 : index
    %c416_153 = arith.constant 416 : index
    %135 = vector.load %arg3[%c0_152, %c416_153] : memref<8x640xf32, #tpu.memory_space<vmem>>, vector<8x96xf32>
    %136 = arith.truncf %135 : vector<8x96xf32> to vector<8x96xbf16>
    %c104_154 = arith.constant 104 : index
    %c192_155 = arith.constant 192 : index
    %137 = vector.load %arg12[%c104_154, %c192_155] : memref<128x288xbf16, #tpu.memory_space<vmem>>, vector<8x96xbf16>
    tpu.vector_store %arg12[%c104_154, %c192_155], %136 {strides = array<i32>} : memref<128x288xbf16, #tpu.memory_space<vmem>>, vector<8x96xbf16>,
    %c0_156 = arith.constant 0 : index
    %c448_157 = arith.constant 448 : index
    %138 = vector.load %arg3[%c0_156, %c448_157] : memref<8x640xf32, #tpu.memory_space<vmem>>, vector<8x96xf32>
    %139 = arith.truncf %138 : vector<8x96xf32> to vector<8x96xbf16>
    %c112_158 = arith.constant 112 : index
    %c192_159 = arith.constant 192 : index
    %140 = vector.load %arg12[%c112_158, %c192_159] : memref<128x288xbf16, #tpu.memory_space<vmem>>, vector<8x96xbf16>
    tpu.vector_store %arg12[%c112_158, %c192_159], %139 {strides = array<i32>} : memref<128x288xbf16, #tpu.memory_space<vmem>>, vector<8x96xbf16>,
    %c0_160 = arith.constant 0 : index
    %c480_161 = arith.constant 480 : index
    %141 = vector.load %arg3[%c0_160, %c480_161] : memref<8x640xf32, #tpu.memory_space<vmem>>, vector<8x96xf32>
    %142 = arith.truncf %141 : vector<8x96xf32> to vector<8x96xbf16>
    %c120_162 = arith.constant 120 : index
    %c192_163 = arith.constant 192 : index
    %143 = vector.load %arg12[%c120_162, %c192_163] : memref<128x288xbf16, #tpu.memory_space<vmem>>, vector<8x96xbf16>
    tpu.vector_store %arg12[%c120_162, %c192_163], %142 {strides = array<i32>} : memref<128x288xbf16, #tpu.memory_space<vmem>>, vector<8x96xbf16>,
    %c0_164 = arith.constant 0 : index
    %c0_165 = arith.constant 0 : index
    %144 = vector.load %arg12[%c0_164, %c0_165] : memref<128x288xbf16, #tpu.memory_space<vmem>>, vector<128x288xbf16>
    %c0_166 = arith.constant 0 : index
    %c0_167 = arith.constant 0 : index
    %145 = vector.load %arg4[%c0_166, %c0_167] : memref<288x128xbf16, #tpu.memory_space<vmem>>, vector<288x128xbf16>
    %cst = arith.constant dense<0.000000e+00> : vector<128x128xf32>
    %146 = tpu.matmul %144, %145, %cst {dimension_numbers = #tpu.dot_dimension_numbers<[1], [0], [0], [1], [0, 0, 1, 1], [], []>} : vector<128x288xbf16>, vector<288x128xbf16>, vector<128x128xf32> -> vector<128x128xf32>
    %c0_168 = arith.constant 0 : index
    %c0_169 = arith.constant 0 : index
    %147 = vector.load %arg5[%c0_168, %c0_169] : memref<1x128xf32, #tpu.memory_space<vmem>>, vector<1x128xf32>
    %148 = vector.broadcast %147 : vector<1x128xf32> to vector<128x128xf32>
    %149 = arith.addf %146, %148 : vector<128x128xf32>
    %cst_170 = arith.constant 0.000000e+00 : f32
    %150 = vector.broadcast %cst_170 : f32 to vector<128x128xf32>
    %151 = arith.maximumf %149, %150 : vector<128x128xf32>
    %cst_171 = arith.constant 0.000000e+00 : f32
    %152 = vector.broadcast %cst_171 : f32 to vector<8x128xf32>
    %153 = vector.extract_strided_slice %151 {offsets = [0, 0], sizes = [8, 128], strides = [1, 1]} : vector<128x128xf32> to vector<8x128xf32>
    %c0_172 = arith.constant 0 : index
    %c0_173 = arith.constant 0 : index
    %154 = vector.load %arg6[%c0_172, %c0_173] : memref<16x128xf32, #tpu.memory_space<vmem>>, vector<1x128xf32>
    %155 = vector.broadcast %154 : vector<1x128xf32> to vector<8x128xf32>
    %156 = arith.mulf %153, %155 : vector<8x128xf32>
    %157 = arith.maximumf %152, %156 : vector<8x128xf32>
    %158 = vector.extract_strided_slice %151 {offsets = [8, 0], sizes = [8, 128], strides = [1, 1]} : vector<128x128xf32> to vector<8x128xf32>
    %c1 = arith.constant 1 : index
    %c0_174 = arith.constant 0 : index
    %159 = vector.load %arg6[%c1, %c0_174] : memref<16x128xf32, #tpu.memory_space<vmem>>, vector<1x128xf32>
    %160 = vector.broadcast %159 : vector<1x128xf32> to vector<8x128xf32>
    %161 = arith.mulf %158, %160 : vector<8x128xf32>
    %162 = arith.maximumf %157, %161 : vector<8x128xf32>
    %163 = vector.extract_strided_slice %151 {offsets = [16, 0], sizes = [8, 128], strides = [1, 1]} : vector<128x128xf32> to vector<8x128xf32>
    %c2 = arith.constant 2 : index
    %c0_175 = arith.constant 0 : index
    %164 = vector.load %arg6[%c2, %c0_175] : memref<16x128xf32, #tpu.memory_space<vmem>>, vector<1x128xf32>
    %165 = vector.broadcast %164 : vector<1x128xf32> to vector<8x128xf32>
    %166 = arith.mulf %163, %165 : vector<8x128xf32>
    %167 = arith.maximumf %162, %166 : vector<8x128xf32>
    %168 = vector.extract_strided_slice %151 {offsets = [24, 0], sizes = [8, 128], strides = [1, 1]} : vector<128x128xf32> to vector<8x128xf32>
    %c3 = arith.constant 3 : index
    %c0_176 = arith.constant 0 : index
    %169 = vector.load %arg6[%c3, %c0_176] : memref<16x128xf32, #tpu.memory_space<vmem>>, vector<1x128xf32>
    %170 = vector.broadcast %169 : vector<1x128xf32> to vector<8x128xf32>
    %171 = arith.mulf %168, %170 : vector<8x128xf32>
    %172 = arith.maximumf %167, %171 : vector<8x128xf32>
    %173 = vector.extract_strided_slice %151 {offsets = [32, 0], sizes = [8, 128], strides = [1, 1]} : vector<128x128xf32> to vector<8x128xf32>
    %c4 = arith.constant 4 : index
    %c0_177 = arith.constant 0 : index
    %174 = vector.load %arg6[%c4, %c0_177] : memref<16x128xf32, #tpu.memory_space<vmem>>, vector<1x128xf32>
    %175 = vector.broadcast %174 : vector<1x128xf32> to vector<8x128xf32>
    %176 = arith.mulf %173, %175 : vector<8x128xf32>
    %177 = arith.maximumf %172, %176 : vector<8x128xf32>
    %178 = vector.extract_strided_slice %151 {offsets = [40, 0], sizes = [8, 128], strides = [1, 1]} : vector<128x128xf32> to vector<8x128xf32>
    %c5 = arith.constant 5 : index
    %c0_178 = arith.constant 0 : index
    %179 = vector.load %arg6[%c5, %c0_178] : memref<16x128xf32, #tpu.memory_space<vmem>>, vector<1x128xf32>
    %180 = vector.broadcast %179 : vector<1x128xf32> to vector<8x128xf32>
    %181 = arith.mulf %178, %180 : vector<8x128xf32>
    %182 = arith.maximumf %177, %181 : vector<8x128xf32>
    %183 = vector.extract_strided_slice %151 {offsets = [48, 0], sizes = [8, 128], strides = [1, 1]} : vector<128x128xf32> to vector<8x128xf32>
    %c6 = arith.constant 6 : index
    %c0_179 = arith.constant 0 : index
    %184 = vector.load %arg6[%c6, %c0_179] : memref<16x128xf32, #tpu.memory_space<vmem>>, vector<1x128xf32>
    %185 = vector.broadcast %184 : vector<1x128xf32> to vector<8x128xf32>
    %186 = arith.mulf %183, %185 : vector<8x128xf32>
    %187 = arith.maximumf %182, %186 : vector<8x128xf32>
    %188 = vector.extract_strided_slice %151 {offsets = [56, 0], sizes = [8, 128], strides = [1, 1]} : vector<128x128xf32> to vector<8x128xf32>
    %c7 = arith.constant 7 : index
    %c0_180 = arith.constant 0 : index
    %189 = vector.load %arg6[%c7, %c0_180] : memref<16x128xf32, #tpu.memory_space<vmem>>, vector<1x128xf32>
    %190 = vector.broadcast %189 : vector<1x128xf32> to vector<8x128xf32>
    %191 = arith.mulf %188, %190 : vector<8x128xf32>
    %192 = arith.maximumf %187, %191 : vector<8x128xf32>
    %193 = vector.extract_strided_slice %151 {offsets = [64, 0], sizes = [8, 128], strides = [1, 1]} : vector<128x128xf32> to vector<8x128xf32>
    %c8_181 = arith.constant 8 : index
    %c0_182 = arith.constant 0 : index
    %194 = vector.load %arg6[%c8_181, %c0_182] : memref<16x128xf32, #tpu.memory_space<vmem>>, vector<1x128xf32>
    %195 = vector.broadcast %194 : vector<1x128xf32> to vector<8x128xf32>
    %196 = arith.mulf %193, %195 : vector<8x128xf32>
    %197 = arith.maximumf %192, %196 : vector<8x128xf32>
    %198 = vector.extract_strided_slice %151 {offsets = [72, 0], sizes = [8, 128], strides = [1, 1]} : vector<128x128xf32> to vector<8x128xf32>
    %c9 = arith.constant 9 : index
    %c0_183 = arith.constant 0 : index
    %199 = vector.load %arg6[%c9, %c0_183] : memref<16x128xf32, #tpu.memory_space<vmem>>, vector<1x128xf32>
    %200 = vector.broadcast %199 : vector<1x128xf32> to vector<8x128xf32>
    %201 = arith.mulf %198, %200 : vector<8x128xf32>
    %202 = arith.maximumf %197, %201 : vector<8x128xf32>
    %203 = vector.extract_strided_slice %151 {offsets = [80, 0], sizes = [8, 128], strides = [1, 1]} : vector<128x128xf32> to vector<8x128xf32>
    %c10 = arith.constant 10 : index
    %c0_184 = arith.constant 0 : index
    %204 = vector.load %arg6[%c10, %c0_184] : memref<16x128xf32, #tpu.memory_space<vmem>>, vector<1x128xf32>
    %205 = vector.broadcast %204 : vector<1x128xf32> to vector<8x128xf32>
    %206 = arith.mulf %203, %205 : vector<8x128xf32>
    %207 = arith.maximumf %202, %206 : vector<8x128xf32>
    %208 = vector.extract_strided_slice %151 {offsets = [88, 0], sizes = [8, 128], strides = [1, 1]} : vector<128x128xf32> to vector<8x128xf32>
    %c11 = arith.constant 11 : index
    %c0_185 = arith.constant 0 : index
    %209 = vector.load %arg6[%c11, %c0_185] : memref<16x128xf32, #tpu.memory_space<vmem>>, vector<1x128xf32>
    %210 = vector.broadcast %209 : vector<1x128xf32> to vector<8x128xf32>
    %211 = arith.mulf %208, %210 : vector<8x128xf32>
    %212 = arith.maximumf %207, %211 : vector<8x128xf32>
    %213 = vector.extract_strided_slice %151 {offsets = [96, 0], sizes = [8, 128], strides = [1, 1]} : vector<128x128xf32> to vector<8x128xf32>
    %c12 = arith.constant 12 : index
    %c0_186 = arith.constant 0 : index
    %214 = vector.load %arg6[%c12, %c0_186] : memref<16x128xf32, #tpu.memory_space<vmem>>, vector<1x128xf32>
    %215 = vector.broadcast %214 : vector<1x128xf32> to vector<8x128xf32>
    %216 = arith.mulf %213, %215 : vector<8x128xf32>
    %217 = arith.maximumf %212, %216 : vector<8x128xf32>
    %218 = vector.extract_strided_slice %151 {offsets = [104, 0], sizes = [8, 128], strides = [1, 1]} : vector<128x128xf32> to vector<8x128xf32>
    %c13 = arith.constant 13 : index
    %c0_187 = arith.constant 0 : index
    %219 = vector.load %arg6[%c13, %c0_187] : memref<16x128xf32, #tpu.memory_space<vmem>>, vector<1x128xf32>
    %220 = vector.broadcast %219 : vector<1x128xf32> to vector<8x128xf32>
    %221 = arith.mulf %218, %220 : vector<8x128xf32>
    %222 = arith.maximumf %217, %221 : vector<8x128xf32>
    %223 = vector.extract_strided_slice %151 {offsets = [112, 0], sizes = [8, 128], strides = [1, 1]} : vector<128x128xf32> to vector<8x128xf32>
    %c14 = arith.constant 14 : index
    %c0_188 = arith.constant 0 : index
    %224 = vector.load %arg6[%c14, %c0_188] : memref<16x128xf32, #tpu.memory_space<vmem>>, vector<1x128xf32>
    %225 = vector.broadcast %224 : vector<1x128xf32> to vector<8x128xf32>
    %226 = arith.mulf %223, %225 : vector<8x128xf32>
    %227 = arith.maximumf %222, %226 : vector<8x128xf32>
    %228 = vector.extract_strided_slice %151 {offsets = [120, 0], sizes = [8, 128], strides = [1, 1]} : vector<128x128xf32> to vector<8x128xf32>
    %c15 = arith.constant 15 : index
    %c0_189 = arith.constant 0 : index
    %229 = vector.load %arg6[%c15, %c0_189] : memref<16x128xf32, #tpu.memory_space<vmem>>, vector<1x128xf32>
    %230 = vector.broadcast %229 : vector<1x128xf32> to vector<8x128xf32>
    %231 = arith.mulf %228, %230 : vector<8x128xf32>
    %232 = arith.maximumf %227, %231 : vector<8x128xf32>
    %233 = arith.truncf %232 : vector<8x128xf32> to vector<8x128xbf16>
    %c0_190 = arith.constant 0 : index
    %c0_191 = arith.constant 0 : index
    %234 = vector.load %arg7[%c0_190, %c0_191] : memref<128x128xbf16, #tpu.memory_space<vmem>>, vector<128x128xbf16>
    %cst_192 = arith.constant dense<0.000000e+00> : vector<8x128xf32>
    %235 = tpu.matmul %233, %234, %cst_192 {dimension_numbers = #tpu.dot_dimension_numbers<[1], [0], [0], [1], [0, 0, 1, 1], [], []>} : vector<8x128xbf16>, vector<128x128xbf16>, vector<8x128xf32> -> vector<8x128xf32>
    %c0_193 = arith.constant 0 : index
    %c0_194 = arith.constant 0 : index
    %236 = vector.load %arg8[%c0_193, %c0_194] : memref<1x128xf32, #tpu.memory_space<vmem>>, vector<1x128xf32>
    %237 = vector.broadcast %236 : vector<1x128xf32> to vector<8x128xf32>
    %238 = arith.addf %235, %237 : vector<8x128xf32>
    %cst_195 = arith.constant 0.000000e+00 : f32
    %239 = vector.broadcast %cst_195 : f32 to vector<8x128xf32>
    %240 = arith.maximumf %238, %239 : vector<8x128xf32>
    %241 = arith.truncf %240 : vector<8x128xf32> to vector<8x128xbf16>
    %c0_196 = arith.constant 0 : index
    %c0_197 = arith.constant 0 : index
    %242 = vector.load %arg9[%c0_196, %c0_197] : memref<128x128xbf16, #tpu.memory_space<vmem>>, vector<128x128xbf16>
    %cst_198 = arith.constant dense<0.000000e+00> : vector<8x128xf32>
    %243 = tpu.matmul %241, %242, %cst_198 {dimension_numbers = #tpu.dot_dimension_numbers<[1], [0], [0], [1], [0, 0, 1, 1], [], []>} : vector<8x128xbf16>, vector<128x128xbf16>, vector<8x128xf32> -> vector<8x128xf32>
    %c0_199 = arith.constant 0 : index
    %c0_200 = arith.constant 0 : index
    %244 = vector.load %arg10[%c0_199, %c0_200] : memref<1x128xf32, #tpu.memory_space<vmem>>, vector<1x128xf32>
    %245 = vector.broadcast %244 : vector<1x128xf32> to vector<8x128xf32>
    %246 = arith.addf %243, %245 : vector<8x128xf32>
    %cst_201 = arith.constant 0.000000e+00 : f32
    %247 = vector.broadcast %cst_201 : f32 to vector<8x128xf32>
    %248 = arith.subf %247, %246 : vector<8x128xf32>
    %249 = math.exp %248 : vector<8x128xf32>
    %cst_202 = arith.constant 1.000000e+00 : f32
    %250 = vector.broadcast %cst_202 : f32 to vector<8x128xf32>
    %251 = arith.addf %250, %249 : vector<8x128xf32>
    %cst_203 = arith.constant 1.000000e+00 : f32
    %252 = vector.broadcast %cst_203 : f32 to vector<8x128xf32>
    %253 = arith.divf %252, %251 : vector<8x128xf32>
    %c0_204 = arith.constant 0 : index
    %c0_205 = arith.constant 0 : index
    %254 = vector.load %arg11[%c0_204, %c0_205] : memref<8x128xf32, #tpu.memory_space<vmem>>, vector<8x128xf32>
    tpu.vector_store %arg11[%c0_204, %c0_205], %253 {strides = array<i32>} : memref<8x128xf32, #tpu.memory_space<vmem>>, vector<8x128xf32>,
    return
  }
  func.func @transform_0(%arg0: i32) -> (i32, i32) {
    %c0_i32 = arith.constant 0 : i32
    %c0_i32_0 = arith.constant 0 : i32
    return %arg0, %c0_i32 : i32, i32
  }
  func.func @transform_1(%arg0: i32) -> (i32, i32) {
    %c0_i32 = arith.constant 0 : i32
    %c0_i32_0 = arith.constant 0 : i32
    return %arg0, %c0_i32 : i32, i32
  }
  func.func @transform_2(%arg0: i32) -> (i32, i32) {
    %c0_i32 = arith.constant 0 : i32
    %c0_i32_0 = arith.constant 0 : i32
    return %arg0, %c0_i32 : i32, i32
  }
  func.func @transform_3(%arg0: i32) -> (i32, i32) {
    %c0_i32 = arith.constant 0 : i32
    %c0_i32_0 = arith.constant 0 : i32
    %c0_i32_1 = arith.constant 0 : i32
    return %c0_i32, %c0_i32_0 : i32, i32
  }
  func.func @transform_4(%arg0: i32) -> (i32, i32) {
    %c0_i32 = arith.constant 0 : i32
    %c0_i32_0 = arith.constant 0 : i32
    %c0_i32_1 = arith.constant 0 : i32
    return %c0_i32, %c0_i32_0 : i32, i32
  }
  func.func @transform_5(%arg0: i32) -> (i32, i32) {
    %c0_i32 = arith.constant 0 : i32
    %c0_i32_0 = arith.constant 0 : i32
    %c0_i32_1 = arith.constant 0 : i32
    return %c0_i32, %c0_i32_0 : i32, i32
  }
  func.func @transform_6(%arg0: i32) -> (i32, i32) {
    %c0_i32 = arith.constant 0 : i32
    %c0_i32_0 = arith.constant 0 : i32
    %c0_i32_1 = arith.constant 0 : i32
    return %c0_i32, %c0_i32_0 : i32, i32
  }
  func.func @transform_7(%arg0: i32) -> (i32, i32) {
    %c0_i32 = arith.constant 0 : i32
    %c0_i32_0 = arith.constant 0 : i32
    %c0_i32_1 = arith.constant 0 : i32
    return %c0_i32, %c0_i32_0 : i32, i32
  }
  func.func @transform_8(%arg0: i32) -> (i32, i32) {
    %c0_i32 = arith.constant 0 : i32
    %c0_i32_0 = arith.constant 0 : i32
    %c0_i32_1 = arith.constant 0 : i32
    return %c0_i32, %c0_i32_0 : i32, i32
  }
  func.func @transform_9(%arg0: i32) -> (i32, i32) {
    %c0_i32 = arith.constant 0 : i32
    %c0_i32_0 = arith.constant 0 : i32
    %c0_i32_1 = arith.constant 0 : i32
    return %c0_i32, %c0_i32_0 : i32, i32
  }
  func.func @transform_10(%arg0: i32) -> (i32, i32) {
    %c0_i32 = arith.constant 0 : i32
    %c0_i32_0 = arith.constant 0 : i32
    return %arg0, %c0_i32 : i32, i32
  }
}

</mosaic_0001>

<bundles_post_ra>
// kernel: tpu_custom_call.1
= control target key start
LH: loop header
LB: loop body
LE: loop exit
PB: predicated region body
PF: predicated region fallthrough
CT: control target
= control target key end

     0   :  { %s3103_s0 = inlined_call_operand.hbm [shape: f32[16,640], index: 0, kind: input, shape index: {}]   ;;  %s3104_s1 = inlined_call_operand.hbm [shape: f32[16,640], index: 1, kind: input, shape index: {}]   ;;  %s3105_s2 = inlined_call_operand.hbm [shape: f32[16,640], index: 2, kind: input, shape index: {}]   ;;  %s3106_s3 = inlined_call_operand.hbm [shape: bf16[288,128], index: 3, kind: input, shape index: {}]   ;;  %s3107_s4 = inlined_call_operand.vmem [shape: f32[1,128], index: 4, kind: input, shape index: {}]   ;;  %s3108_s5 = inlined_call_operand.hbm [shape: f32[16,128], index: 5, kind: input, shape index: {}]   ;;  %s3109_s6 = inlined_call_operand.hbm [shape: bf16[128,128], index: 6, kind: input, shape index: {}]   ;;  %s3110_s7 = inlined_call_operand.vmem [shape: f32[1,128], index: 7, kind: input, shape index: {}]   ;;  %s3111_s8 = inlined_call_operand.hbm [shape: bf16[128,128], index: 8, kind: input, shape index: {}]   ;;  %s3112_s9 = inlined_call_operand.vmem [shape: f32[1,128], index: 9, kind: input, shape index: {}]   ;;  %s3113_s10 = inlined_call_operand.hbm [shape: f32[16,128], index: 10, kind: output, shape index: {}]  }
   0x1   :  { %3125 = sst [smem:[#allocation27_spill]] %s3104_s1 }
   0x2   :  { %3126 = sst [smem:[#allocation28_spill]] %s3106_s3 }
   0x3   :  { %3127 = sst [smem:[#allocation29_spill]] %s3108_s5 }
   0x4   :  { %3128 = sst [smem:[#allocation30_spill]] %s3109_s6 }
   0x5   :  { %3129 = sst [smem:[#allocation31_spill]] %s3111_s8 }
   0x6   :  { %15 = vsyncpa [#allocation4], 0 }
   0x7   :  { %17 = vsyncpa [#allocation4 + $0x1], 0 }
   0x8   :  { %18 = vsyncpa [#allocation7], 0 }
   0x9   :  { %20 = vsyncpa [#allocation7 + $0x1], 0 }
   0xa   :  { %21 = vsyncpa [#allocation10], 0 }
   0xb   :  { %22 = vsyncpa [#allocation13], 0 }
   0xc   :  { %23 = vsyncpa [#allocation5], 0 }
   0xd   :  { %25 = vsyncpa [#allocation5 + $0x1], 0  ;;  %s2620_s13 = smov 0   ;;  %s2622_s14 = smov 0  }
   0xe   :  { %s2624_s15 = smov 0   ;;  %s2626_s16 = smov 0  }
   0xf LB: > { %3130 = sst [smem:[#allocation21_spill]] %s2540_s13  ;;  %s2644_s20 = sadd.s32 4294967295, %s2552_s16   ;;  %s2552_s16 = sphi %s2626_s16, %s3163_s16   ;;  %s2548_s15 = sphi %s2624_s15, %s3167_s15   ;;  %s2544_s14 = sphi %s2622_s14, %s3166_s14   ;;  %s2540_s13 = sphi %s2620_s13, %s3165_s13  }
  0x10   : > { %3131 = sst [smem:[#allocation22_spill]] %s2552_s16  ;;  %p1813_p0 = scmp.ge.s32.totalorder %s2552_s16, 1 }
  0x11   : > { %s3132_s3 = sld [smem:[#allocation28_spill]]  ;;  %p3121_p1 = scmp.eq.s32.totalorder %s2644_s20, 0 }
  0x12   : > { %p287_p2 = scmp.lt.s32.totalorder %s2552_s16, 3  ;;  %s2554_s22 = smov [#allocation9]  }
  0x13   : > { %s300_s23 = sshll.u32 %s2554_s22, 4  ;;  %s3134_s6 = sld [smem:[#allocation30_spill]]  ;;  %s301_s23 = int_to_ptr.vmem [resolvable:$true] %s300_s23 }
  0x14   : > { %p2649_p3 = pnand %p1813_p0, %p287_p2  ;;  %s2555_s28 = smov [#allocation12]  }
  0x15   : > { %s331_s29 = sshll.u32 %s2555_s28, 4  ;;  %s3114_s30 = smov 64   ;;  %s332_s29 = int_to_ptr.vmem [resolvable:$true] %s331_s29 }
  0x16   : > { %p2161_p4 = pneg %p2649_p3  ;;  %s3115_s11 = smov 4  }
  0x17   : > { %s298_s19 = sshll.u32 %s3132_s3, 4  ;;  %s1812_s12 = sadd.s32 4294967294, %s2552_s16   ;;  %s299_s19 = int_to_ptr.hbm [resolvable:$true] %s298_s19 }
  0x18   : > { %p2661_p6 = pnand %p2161_p4, %p3121_p1  ;;  %s2677_s17 = sadd.s32 1, %s2552_s16  }
  0x19   : > { %s329_s26 = sshll.u32 %s3134_s6, 4  ;;  %3136 = sst [smem:[#allocation23_spill]] %s2677_s17  ;;  %s330_s26 = int_to_ptr.hbm [resolvable:$true] %s329_s26 }
  0x1a   : > { %2164 = dma.hbm_to_vmem [thread:$0]  (!%p2661_p6), %s299_s19, 2304, %s301_s23, [#allocation10], %s3114_s30, %s3114_s30, %s3115_s11  }
  0x1b   : > { %2170 = dma.hbm_to_vmem [thread:$0]  (!%p2661_p6), %s330_s26, 1024, %s332_s29, [#allocation13], %s3114_s30, %s3114_s30, %s3115_s11  }
  0x1c   : > { %s35_s18 = ssub.s32 %s2552_s16, %s2677_s17  ;;  %s38_s22 = sadd.s32 1, %s2548_s15 }
  0x1d   : > { %p36_p7 = scmp.eq.s32.totalorder %s35_s18, 0  ;;  %p45_p8 = scmp.ne.s32.totalorder %s2548_s15, %s2544_s14 }
  0x1e   : > { %p46_p9 = scmp.eq.s32.totalorder %s2552_s16, 0  ;;  %p51_p10 = scmp.ne.s32.totalorder %s2544_s14, %s2540_s13 }
  0x1f   : > { %s2688_s19 = scalar_select %p36_p7, %s2548_s15, %s38_s22  }
  0x20   : > { %p47_p11 = por %p46_p9, %p45_p8  ;;  %p2692_p12 = por %p3121_p1, %p51_p10 }
  0x21   : > { %3137 = sst [smem:[#allocation24_spill]] %s2688_s19  ;;  %p274_p13 = scmp.eq.s32.totalorder %s2644_s20, 1 }
  0x22   : > { %p280_p0 = scmp.eq.s32.totalorder %s1812_s12, 1  ;;  %p2192_p2 = scmp.lt.s32.totalorder %s2552_s16, 2 }
  0x23   : > { %s3116_s24 = sand.u32 1, %s2548_s15   ;;  %p2699_p4 = por %p274_p13, %p45_p8 }
  0x24   : > { %p2703_p5 = por %p280_p0, %p51_p10  ;;  %s2709_s28 = smul.u32 40, %s3116_s24 }
  0x25   : > { %s3139_s25 = scalar_select %p2699_p4, 1, 0 }
  0x26   : > { %s3141_s26 = scalar_select %p2703_p5, 1, 0 }
  0x27   : > { %3140 = sst [smem:[#allocation25_spill]] %s3139_s25  ;;  %p2711_p7 = pnand %p2192_p2, %p47_p11 }
  0x28   : > { %3142 = sst [smem:[#allocation26_spill]] %s3141_s26  ;;  %s2716_s12 = smul.u32 40, %s2552_s16 }
  0x29   : > { %s385_s18 = sand.u32 1, %s2552_s16   ;;  %s3144_s1 = sld [smem:[#allocation27_spill]] }
  0x2a   : > { %s389_s6 = scalar_lea.vmem [#allocation6], %s2709_s28  ;;  %s2724_s24 = scalar_lea.sflag [#allocation7], %s385_s18 }
  0x2b   : > { %s398_s19 = sshll.u32 %s389_s6, 4  ;;  %p2328_p9 = pneg %p2711_p7  ;;  %s399_s19 = int_to_ptr.vmem [resolvable:$true] %s398_s19 }
  0x2f   : > { %s394_s11 = scalar_lea.hbm %s3144_s1, %s2716_s12 }
  0x30   : > { %s396_s3 = sshll.u32 %s394_s11, 4  ;;  %s2331_s11 = scalar_lea.hbm %s3144_s1, 80  ;;  %s397_s3 = int_to_ptr.hbm [resolvable:$true] %s396_s3 }
  0x31   : > { %s2324_s17 = sshra.s32 %s397_s3, 4  ;;  %s2325_s17 = int_to_ptr.hbm [resolvable:$true] %s2324_s17 }
  0x32   : > { %s2326_s26 = scalar_lea.hbm %s2325_s17, 40  ;;  %p2332_p13 = scmp.lt.s32.totalorder %s2325_s17, %s3144_s1 }
  0x33   : > { %p2327_p8 = scmp.ne.s32.totalorder %s2325_s17, %s2326_s26  ;;  %p2333_p0 = scmp.lt.s32.totalorder %s2331_s11, %s2326_s26 }
  0x35   : > { %p2329_p10 = pnand %p2328_p9, %p2327_p8  ;;  %p2334_p2 = por %p2333_p0, %p2332_p13 }
  0x37   : > { %p2330_p11 = pneg %p2329_p10 }
  0x39   : > { %p2335_p1 = pnand %p2334_p2, %p2330_p11 }
  0x3b   : > { %2338 = shalt.err (!%p2335_p1)
}
  0x3c   : > { %2180 = dma.hbm_to_vmem [thread:$0]  (!%p2711_p7), %s397_s3, 640, %s399_s19, %s2724_s24  }
  0x3d   : > { %s3145_s5 = sld [smem:[#allocation29_spill]]  ;;  %s2558_s30 = smov [#allocation11]  }
  0x3e   : > { %s317_s22 = sshll.u32 %s2558_s30, 4  ;;  %s3146_s8 = sld [smem:[#allocation31_spill]]  ;;  %s318_s22 = int_to_ptr.vmem [resolvable:$true] %s317_s22 }
  0x3f   : > { %s2559_s6 = smov 128   ;;  %s2560_s1 = smov 8  }
  0x40   : > { %s2561_s3 = smov [#allocation14]   ;;  %s3147_s13 = smov 4  }
  0x41   : > { %s348_s19 = sshll.u32 %s2561_s3, 4  ;;  %s3148_s18 = smov 64   ;;  %s349_s19 = int_to_ptr.vmem [resolvable:$true] %s348_s19 }
  0x42   : > { %s374_s17 = scalar_lea.hbm %s3103_s0, %s2716_s12  ;;  %s369_s26 = scalar_lea.vmem [#allocation3], %s2709_s28 }
  0x43   : > { %s315_s16 = sshll.u32 %s3145_s5, 4  ;;  %s376_s25 = sshll.u32 %s374_s17, 4  ;;  %s316_s16 = int_to_ptr.hbm [resolvable:$true] %s315_s16  ;;  %s377_s25 = int_to_ptr.hbm [resolvable:$true] %s376_s25 }
  0x44   : > { %s346_s11 = sshll.u32 %s3146_s8, 4  ;;  %s378_s8 = sshll.u32 %s369_s26, 4  ;;  %s347_s11 = int_to_ptr.hbm [resolvable:$true] %s346_s11  ;;  %s379_s8 = int_to_ptr.vmem [resolvable:$true] %s378_s8 }
  0x45   : > { %2167 = dma.hbm_to_vmem [thread:$0]  (!%p2661_p6), %s316_s16, 256, %s318_s22, [#allocation10], %s2559_s6, %s2559_s6, %s2560_s1  }
  0x46   : > { %2173 = dma.hbm_to_vmem [thread:$0]  (!%p2661_p6), %s347_s11, 1024, %s349_s19, [#allocation13], %s3148_s18, %s3148_s18, %s3147_s13  }
  0x47   : > { %s3149_s1 = sand.u32 1, %s2548_s15   ;;  %s2414_s22 = sshra.s32 %s377_s25, 4  ;;  %s2415_s22 = int_to_ptr.hbm [resolvable:$true] %s2414_s22 }
  0x48   : > { %s366_s16 = scalar_lea.sflag [#allocation4], %s3149_s1  ;;  %s2416_s6 = scalar_lea.hbm %s2415_s22, 40 }
  0x49   : > { %p2417_p1 = scmp.ne.s32.totalorder %s2415_s22, %s2416_s6  ;;  %s2421_s5 = scalar_lea.hbm %s3103_s0, 80 }
  0x4a   : > { %p2422_p6 = scmp.lt.s32.totalorder %s2415_s22, %s3103_s0  ;;  %p2423_p11 = scmp.lt.s32.totalorder %s2421_s5, %s2416_s6 }
  0x4b   : > { %p2419_p8 = pnand %p2417_p1, %p2328_p9 }
  0x4c   : > { %p2424_p13 = por %p2423_p11, %p2422_p6 }
  0x4d   : > { %p2420_p10 = pneg %p2419_p8 }
  0x4f   : > { %p2425_p0 = pnand %p2424_p13, %p2420_p10 }
  0x51   : > { %2428 = shalt.err (!%p2425_p0)
}
  0x52   : > { %2177 = dma.hbm_to_vmem [thread:$0]  (!%p2711_p7), %s377_s25, 640, %s379_s8, %s366_s16  }
  0x53   : > { %s414_s30 = scalar_lea.hbm %s3105_s2, %s2716_s12  ;;  %s409_s17 = scalar_lea.vmem [#allocation8], %s2709_s28 }
  0x54   : > { %s418_s26 = sshll.u32 %s409_s17, 4  ;;  %s416_s1 = sshll.u32 %s414_s30, 4  ;;  %s419_s26 = int_to_ptr.vmem [resolvable:$true] %s418_s26  ;;  %s417_s1 = int_to_ptr.hbm [resolvable:$true] %s416_s1 }
  0x55   : > { %s2444_s22 = sshra.s32 %s417_s1, 4  ;;  %s2451_s8 = scalar_lea.hbm %s3105_s2, 80  ;;  %s2445_s22 = int_to_ptr.hbm [resolvable:$true] %s2444_s22 }
  0x56   : > { %s2446_s6 = scalar_lea.hbm %s2445_s22, 40  ;;  %p2452_p10 = scmp.lt.s32.totalorder %s2445_s22, %s3105_s2 }
  0x57   : > { %p2447_p2 = scmp.ne.s32.totalorder %s2445_s22, %s2446_s6  ;;  %p2453_p6 = scmp.lt.s32.totalorder %s2451_s8, %s2446_s6 }
  0x59   : > { %p2449_p1 = pnand %p2447_p2, %p2328_p9  ;;  %p2454_p11 = por %p2453_p6, %p2452_p10 }
  0x5b   : > { %p2450_p8 = pneg %p2449_p1 }
  0x5d   : > { %p2455_p13 = pnand %p2454_p11, %p2450_p8 }
  0x5f   : > { %2458 = shalt.err (!%p2455_p13)
}
  0x60   : > { %2183 = dma.hbm_to_vmem [thread:$0]  (!%p2711_p7), %s417_s1, 640, %s419_s26, %s2724_s24  }
  0x61   : > { %427 = sbr.rel (%p2649_p3) target bundleno = 819 (0x333), region = 60  ;;  %s2791_s28 = sand.u32 (!%p2649_p3), 1, %s2544_s14  }
  0x62   : > { %s2136_s12 = smul.u32 (!%p2649_p3), 40, %s2791_s28  ;;  %s430_s5 = scalar_lea.sflag (!%p2649_p3), [#allocation4], %s2791_s28 }
  0x64   : > { %s2795_s3 = scalar_lea.vmem (!%p2649_p3), [#allocation3], %s2136_s12 }
  0x66   : > { %2519 = dma.done.wait (%p2692_p12), %s430_s5, 640  }
  0x67   : > { %2521 = vsyncadd (%p2692_p12), %s430_s5, 4294966656  ;;  %s439_s24 = sand.u32 1, %s2644_s20   ;;  %s2802_s29 = scalar_lea.vmem [#allocation6], %s2136_s12 }
  0x68   : > { %s440_s21 = scalar_lea.sflag [#allocation7], %s439_s24 }
  0x69   : > { %2523 = dma.done.wait (%p2692_p12), %s440_s21, 1280  }
  0x6a   : > { %2525 = vsyncadd (%p2692_p12), %s440_s21, 4294966016  ;;  %s2808_s19 = scalar_lea.vmem [#allocation8], %s2136_s12  ;;  %p3150_p3 = scmp.eq.s32.totalorder %s2644_s20, 0 }
  0x6c   : > { %2527 = dma.done.wait (%p3150_p3), [#allocation10], 2560   ;;  %p3151_p7 = pmov %p3150_p3 }
  0x6d   : > { %p3152_p9 = pmov %p3150_p3 }
  0x6e   : > { %2529 = vsyncadd (%p3151_p7), [#allocation10], 4294964736 }
  0x6f   : > { %2531 = dma.done.wait (%p3152_p9), [#allocation13], 2048   ;;  %p3153_p0 = pmov %p3150_p3 }
  0x70   : > { %v777_v0 = vld [vmem:[%s2808_s19] sm:$0xff]  ;;  %v645_v1 = vld [vmem:[%s2802_s29] sm:$0xff]  ;;  %s2562_s23 = smov 64   ;;  %s2563_s13 = smov 96   ;;  %v545_v6 = vld [vmem:[%s2795_s3 + $0x8] sm:$0xff]  ;;  %vm524_vm0 = vcmask 781312  }
  0x71   : > { %2533 = vsyncadd (%p3153_p0), [#allocation13], 4294965248  ;;  %v778_v2 = vpack.c.bf16 %v777_v0, %v777_v0  ;;  %v646_v3 = vpack.c.bf16 %v645_v1, %v645_v1  ;;  %v544_v4 = vld [vmem:[%s2795_s3] sm:$0xff]  ;;  %s2564_s18 = smov 32   ;;  %v668_v8 = vld [vmem:[%s2802_s29 + $0x8] sm:$0xff]  ;;  %v559_v14 = vpack.c.bf16 %v545_v6, %v545_v6  ;;  %vm540_vm1 = vcmask 523264  }
  0x72   : > { %v2821_v5 = vpack.c.bf16 %v544_v4, %v544_v4  ;;  %v546_v7 = vpack.c.bf16 %v545_v6, %v544_v4  ;;  %v2832_v9 = vpack.c.bf16 %v668_v8, %v645_v1  ;;  %v821_v10 = vld [vmem:[%s2808_s19 + $0x8] sm:$0xff]  ;;  %v691_v12 = vpack.c.bf16 %v668_v8, %v668_v8  ;;  %v576_v15 = vld [vmem:[%s2795_s3 + $0x10] sm:$0xff]  ;;  %v700_v17 = vld [vmem:[%s2802_s29 + $0x10] sm:$0xff]  ;;  %s1827_s27 = sshll.u32 %s2791_s28, 3  ;;  %s2069_s11 = sshll.u32 %s2644_s20, 3 }
  0x73   : > { %780 = vrot.lane.b32.xlu1 %v778_v2, %s2562_s23  ;;  %648 = vrot.lane.b32.xlu0 %v646_v3, %s2563_s13  ;;  %v2835_v11 = vpack.c.bf16 %v821_v10, %v777_v0  ;;  %v822_v13 = vpack.c.bf16 %v821_v10, %v821_v10  ;;  %v577_v16 = vpack.c.bf16 %v576_v15, %v545_v6  ;;  %v853_v19 = vld [vmem:[%s2808_s19 + $0x10] sm:$0xff]  ;;  %v2103_v23 = vld [vmem:[#allocation9 + $0x38] sm:$0xff]  ;;  %v2102_v25 = vld [vmem:[#allocation9 + $0x30] sm:$0xff]  ;;  %vm654_vm2 = vcmask 1044224   ;;  %s1656_s16 = scalar_lea.hbm %s3113_s10, %s2069_s11  ;;  %s520_s12 = scalar_lea.vmem [#allocation15], %s1827_s27 }
  0x74   : > { %529 = vrot.lane.b32.xlu2 %v2821_v5, %s2563_s13  ;;  %v2850_v18 = vpack.c.bf16 %v700_v17, %v668_v8  ;;  %v2853_v20 = vpack.c.bf16 %v853_v19, %v821_v10  ;;  %v723_v21 = vpack.c.bf16 %v700_v17, %v700_v17  ;;  %v854_v22 = vpack.c.bf16 %v853_v19, %v853_v19  ;;  %v2111_v24 = vld [vmem:[#allocation9 + $0x78] sm:$0xff]  ;;  %v2110_v26 = vld [vmem:[#allocation9 + $0x70] sm:$0xff]  ;;  %v2101_v29 = vld [vmem:[#allocation9 + $0x28] sm:$0xff]  ;;  %s1658_s5 = sshll.u32 %s520_s12, 4  ;;  %s1646_s20 = scalar_lea.sflag [#allocation5], %s2791_s28  ;;  %s1659_s5 = int_to_ptr.vmem [resolvable:$true] %s1658_s5 }
  0x75   : > { %1233 = vmatpush.bf16.msra.mxu0 %v2103_v23  ;;  %1282 = vmatpush.bf16.msra.mxu1 %v2111_v24  ;;  %v589_v27 = vpack.c.bf16 %v576_v15, %v576_v15  ;;  %v606_v28 = vld [vmem:[%s2795_s3 + $0x18] sm:$0xff]  ;;  %v732_v32 = vld [vmem:[%s2802_s29 + $0x18] sm:$0xff]  ;;  %v636_v39 = vld [vmem:[%s2795_s3 + $0x20] sm:$0xff]  ;;  %525 = vst.msk [vmem:[#allocation2] sm:$0xf] %vm524_vm0, %v2821_v5  ;;  %vm655_vm3 = vcmask 523268  }
  0x76   : > { %v2109_v30 = vld [vmem:[#allocation9 + $0x68] sm:$0xff]  ;;  %v607_v31 = vpack.c.bf16 %v606_v28, %v576_v15  ;;  %v2868_v33 = vpack.c.bf16 %v732_v32, %v700_v17  ;;  %v755_v36 = vpack.c.bf16 %v732_v32, %v732_v32  ;;  %v619_v38 = vpack.c.bf16 %v606_v28, %v606_v28  ;;  %v2100_v40 = vld [vmem:[#allocation9 + $0x20] sm:$0xff]  ;;  %557 = vst.msk [vmem:[#allocation2 + $0x30] sm:$0xf] %vm524_vm0, %v559_v14  ;;  %v2099_v45 = vld [vmem:[#allocation9 + $0x18] sm:$0xff]  ;;  %s1660_s3 = sshll.u32 %s1656_s16, 4  ;;  %s1661_s3 = int_to_ptr.hbm [resolvable:$true] %s1660_s3 }
  0x77   : > { %v885_v34 = vld [vmem:[%s2808_s19 + $0x18] sm:$0xff]  ;;  %v637_v41 = vpack.c.bf16 %v636_v39, %v606_v28  ;;  %v764_v42 = vld [vmem:[%s2802_s29 + $0x20] sm:$0xff]  ;;  %v2107_v46 = vld [vmem:[#allocation9 + $0x58] sm:$0xff]  ;;  %587 = vst.msk [vmem:[#allocation2 + $0x60] sm:$0xf] %vm524_vm0, %v589_v27  ;;  %vm785_vm4 = vcmask 1043968  }
  0x78   : > { %v2871_v35 = vpack.c.bf16 %v885_v34, %v853_v19  ;;  %v886_v37 = vpack.c.bf16 %v885_v34, %v885_v34  ;;  %v2108_v43 = vld [vmem:[#allocation9 + $0x60] sm:$0xff]  ;;  %v2887_v44 = vpack.c.bf16 %v764_v42, %v732_v32  ;;  %617 = vst.msk [vmem:[#allocation2 + $0x90] sm:$0xf] %vm524_vm0, %v619_v38  ;;  %v2098_v48 = vld [vmem:[#allocation9 + $0x10] sm:$0xff]  ;;  %v2097_v50 = vld [vmem:[#allocation9 + $0x8] sm:$0xff]  ;;  %vm786_vm5 = vcmask 261124  }
  0x79   : > { %1234 = vmatpush.bf16.msra.mxu0 %v2102_v25  ;;  %1283 = vmatpush.bf16.msra.mxu1 %v2110_v26  ;;  %v2106_v49 = vld [vmem:[#allocation9 + $0x50] sm:$0xff]  ;;  %v2105_v51 = vld [vmem:[#allocation9 + $0x48] sm:$0xff]  ;;  %v2096_v54 = vld [vmem:[#allocation9] sm:$0xff]  ;;  %vm651_vm6 = vcmask 785408   ;;  %vm551_vm9 = vcmask 261120   ;;  %s2488_s21 = sshra.s32 %s1661_s3, 4  ;;  %s2489_s21 = int_to_ptr.hbm [resolvable:$true] %s2488_s21 }
  0x7a   : > { %v2113_v52 = vld [vmem:[#allocation9 + $0x88] sm:$0xff]  ;;  %v2104_v56 = vld [vmem:[#allocation9 + $0x40] sm:$0xff]  ;;  %v899_v59 = vld [vmem:[%s2808_s19 + $0x20] sm:$0xff]  ;;  %s2490_s29 = scalar_lea.hbm %s2489_s21, 8  ;;  %p2495_p8 = scmp.lt.s32.totalorder %s2489_s21, %s3113_s10 }
  0x7b   : > { %792 = vrot.lane.b32.xlu1 %v778_v2, %s2564_s18  ;;  %661 = vrot.lane.b32.xlu0 %v646_v3, %s2562_s23  ;;  %v2112_v57 = vld [vmem:[#allocation9 + $0x80] sm:$0xff]  ;;  %v2900_v60 = vpack.c.bf16 %v899_v59, %v885_v34  ;;  %vm2904_vm7 = vmor %vm655_vm3, %vm654_vm2  ;;  %p2491_p12 = scmp.ne.s32.totalorder %s2489_s21, %s2490_s29 }
  0x7c   : > { %537 = vrot.lane.b32.xlu2 %v546_v7, %s2562_s23  ;;  %1337 = vmatpush.bf16.msra.mxu2 %v2113_v52  ;;  %vm2908_vm8 = vmor %vm786_vm5, %vm785_vm4 }
  0x7d   : > { %1235 = vmatpush.bf16.msra.mxu0 %v2101_v29  ;;  %1284 = vmatpush.bf16.msra.mxu1 %v2109_v30  ;;  %p2492_p2 = pnand %p2491_p12, %p2699_p4 }
  0x7f   : > { %p2493_p1 = pneg %p2492_p2 }
  0x80   : > { %1338 = vmatpush.bf16.msra.mxu2 %v2112_v57 }
  0x81   : > { %1236 = vmatpush.bf16.msra.mxu0 %v2100_v40  ;;  %1285 = vmatpush.bf16.msra.mxu1 %v2108_v43 }
  0x83   : > { %671 = vrot.lane.b32.xlu1 %v2832_v9, %s2564_s18  ;;  %548 = vrot.lane.b32.xlu0 %v546_v7, %s2564_s18 }
  0x84   : > { %806 = vrot.lane.b32.xlu2 %v2835_v11, %s2563_s13 }
  0x85   : > { %1237 = vmatpush.bf16.msra.mxu0 %v2099_v45  ;;  %1286 = vmatpush.bf16.msra.mxu1 %v2107_v46 }
  0x89   : > { %1238 = vmatpush.bf16.msra.mxu0 %v2098_v48  ;;  %1287 = vmatpush.bf16.msra.mxu1 %v2106_v49 }
  0x8b   : > { %693 = vrot.lane.b32.xlu1 %v691_v12, %s2562_s23  ;;  %684 = vrot.lane.b32.xlu0 %v691_v12, %s2563_s13 }
  0x8c   : > { %815 = vrot.lane.b32.xlu2 %v822_v13, %s2562_s23 }
  0x8d   : > { %1239 = vmatpush.bf16.msra.mxu0 %v2097_v50  ;;  %1288 = vmatpush.bf16.msra.mxu1 %v2105_v51 }
  0x91   : > { %1240 = vmatpush.bf16.msra.mxu0 %v2096_v54  ;;  %1289 = vmatpush.bf16.msra.mxu1 %v2104_v56 }
  0x93   : > { %561 = vrot.lane.b32.xlu1 %v559_v14, %s2563_s13  ;;  %824 = vrot.lane.b32.xlu0 %v822_v13, %s2564_s18 }
  0x94   : > { %569 = vrot.lane.b32.xlu2 %v577_v16, %s2562_s23 }
  0x9b   : > { %703 = vrot.lane.b32.xlu1 %v2850_v18, %s2564_s18  ;;  %579 = vrot.lane.b32.xlu0 %v577_v16, %s2564_s18 }
  0x9c   : > { %838 = vrot.lane.b32.xlu2 %v2853_v20, %s2563_s13 }
  0xa3   : > { %725 = vrot.lane.b32.xlu1 %v723_v21, %s2562_s23  ;;  %716 = vrot.lane.b32.xlu0 %v723_v21, %s2563_s13 }
  0xa4   : > { %847 = vrot.lane.b32.xlu2 %v854_v22, %s2562_s23 }
  0xab   : > { %591 = vrot.lane.b32.xlu1 %v589_v27, %s2563_s13  ;;  %856 = vrot.lane.b32.xlu0 %v854_v22, %s2564_s18 }
  0xac   : > { %599 = vrot.lane.b32.xlu2 %v607_v31, %s2562_s23 }
  0xb3   : > { %735 = vrot.lane.b32.xlu1 %v2868_v33, %s2564_s18  ;;  %609 = vrot.lane.b32.xlu0 %v607_v31, %s2564_s18 }
  0xb4   : > { %870 = vrot.lane.b32.xlu2 %v2871_v35, %s2563_s13 }
  0xbb   : > { %757 = vrot.lane.b32.xlu1 %v755_v36, %s2562_s23  ;;  %748 = vrot.lane.b32.xlu0 %v755_v36, %s2563_s13 }
  0xbc   : > { %879 = vrot.lane.b32.xlu2 %v886_v37, %s2562_s23 }
  0xc3   : > { %621 = vrot.lane.b32.xlu1 %v619_v38, %s2563_s13  ;;  %888 = vrot.lane.b32.xlu0 %v886_v37, %s2564_s18 }
  0xc4   : > { %629 = vrot.lane.b32.xlu2 %v637_v41, %s2562_s23 }
  0xcb   : > { %639 = vrot.lane.b32.xlu0 %v637_v41, %s2564_s18  ;;  %767 = vrot.lane.b32.xlu1 %v2887_v44, %s2564_s18 }
  0xcc   : > { %902 = vrot.lane.b32.xlu2 %v2900_v60, %s2563_s13  ;;  %s2494_s13 = scalar_lea.hbm %s3113_s10, 16 }
  0xcd   : > { %p2496_p10 = scmp.lt.s32.totalorder %s2494_s13, %s2490_s29 }
  0xce   : > { %v530_v47 = vpop.permute.xlu2 %529 }
  0xcf   : > { %532 = vst.msk [vmem:[#allocation2 + $0xc] sm:$0xf] %vm524_vm0, %v530_v47  ;;  %p2497_p6 = por %p2496_p10, %p2495_p8 }
  0xd1   : > { %p2498_p11 = pnand %p2497_p6, %p2493_p1 }
  0xd6   : > { %v538_v53 = vpop.permute.xlu2 %537 }
  0xd7   : > { %v539_v55 = vrot.slane %v538_v53, 4 }
  0xd9   : > { %v541_v58 = vsel %vm540_vm1, %v538_v53, %v539_v55 }
  0xda   : > { %543 = vst.msk [vmem:[#allocation2 + $0x18] sm:$0xf] %vm524_vm0, %v541_v58 }
  0xde   : > { %v807_v61 = vpop.permute.xlu2 %806 }
  0xdf   : > { %v808_v23 = vrot.slane %v807_v61, 4 }
  0xe1   : > { %v809_v36 = vsel %vm651_vm6, %v807_v61, %v808_v23 }
  0xe5   : > { %v781_v62 = vpop.permute.xlu1 %780  ;;  %v649_v63 = vpop.permute.xlu0 %648 }
  0xe6   : > { %v782_v0 = vrot.slane %v781_v62, 4  ;;  %v650_v2 = vrot.slane %v649_v63, 4  ;;  %v816_v6 = vpop.permute.xlu2 %815 }
  0xe7   : > { %v817_v39 = vrot.slane %v816_v6, 4 }
  0xe8   : > { %v783_v4 = vsel %vm540_vm1, %v782_v0, %v781_v62  ;;  %v652_v5 = vsel %vm651_vm6, %v650_v2, %v649_v63 }
  0xe9   : > { %657 = vst.msk [vmem:[#allocation2] sm:$0xff] %vm2904_vm7, %v652_v5  ;;  %v818_v42 = vsel %vm540_vm1, %v817_v39, %v816_v6 }
  0xea   : > { %788 = vst.msk [vmem:[#allocation2 + $0x4] sm:$0xff] %vm2908_vm8, %v783_v4 }
  0xed   : > { %v793_v7 = vpop.permute.xlu1 %792  ;;  %v662_v8 = vpop.permute.xlu0 %661 }
  0xee   : > { %v794_v10 = vrot.slane %v793_v7, 4  ;;  %v663_v12 = vrot.slane %v662_v8, 4  ;;  %v570_v15 = vpop.permute.xlu2 %569 }
  0xef   : > { %v571_v16 = vrot.slane %v570_v15, 4 }
  0xf0   : > { %v795_v13 = vsel %vm551_vm9, %v794_v10, %v793_v7  ;;  %v664_v14 = vsel %vm540_vm1, %v663_v12, %v662_v8  ;;  %v1830_v25 = vld [vmem:[#allocation2] sm:$0xf] }
  0xf1   : > { %666 = vst.msk [vmem:[#allocation2 + $0xc] sm:$0xff] %vm2904_vm7, %v664_v14  ;;  %v572_v24 = vsel %vm540_vm1, %v570_v15, %v571_v16  ;;  %v2072_v29 = vld [vmem:[#allocation2 + $0x4] sm:$0xf]  ;;  %v1838_v30 = vld [vmem:[#allocation2 + $0x8] sm:$0xf] }
  0xf2   : > { %797 = vst.msk [vmem:[#allocation2 + $0x10] sm:$0xff] %vm2908_vm8, %v795_v13 }
  0xf3   : > { %574 = vst.msk [vmem:[#allocation2 + $0x48] sm:$0xf] %vm524_vm0, %v572_v24 }
  0xf5   : > { %v672_v17 = vpop.permute.xlu1 %671  ;;  %v549_v19 = vpop.permute.xlu0 %548 }
  0xf6   : > { %v673_v21 = vrot.slane %v672_v17, 4  ;;  %v550_v22 = vrot.slane %v549_v19, 4 }
  0xf8   : > { %v674_v26 = vsel %vm551_vm9, %v673_v21, %v672_v17  ;;  %v552_v27 = vsel %vm551_vm9, %v549_v19, %v550_v22  ;;  %v2073_v28 = vld [vmem:[#allocation2 + $0x8] sm:$0xf0] }
  0xf9   : > { %676 = vst.msk [vmem:[#allocation2 + $0x18] sm:$0xff] %vm2904_vm7, %v674_v26  ;;  %v1831_v31 = vor.u32 %v2073_v28, %v1830_v25  ;;  %v1832_v32 = vld [vmem:[#allocation2 + $0xc] sm:$0xf0]  ;;  %v2074_v34 = vld [vmem:[#allocation2 + $0x10] sm:$0xf0] }
  0xfa   : > { %801 = vst.msk [vmem:[#allocation2 + $0x1c] sm:$0xff] %vm2908_vm8, %v2835_v11  ;;  %v1835_v37 = vor.u32 %v2072_v29, %v1832_v32  ;;  %v1839_v38 = vor.u32 %v2074_v34, %v1838_v30 }
  0xfb   : > { %554 = vst.msk [vmem:[#allocation2 + $0x24] sm:$0xf] %vm524_vm0, %v552_v27  ;;  %1241 = vmatmul.bf16.vlgmr.msra.gmra.mxu0 %v1831_v31 }
  0xfc   : > { %680 = vst.msk [vmem:[#allocation2 + $0x24] sm:$0xff] %vm2904_vm7, %v2832_v9  ;;  %1290 = vmatmul.bf16.vlgmr.msra.gmra.mxu1 %v1835_v37  ;;  %1996 = vmatmul.msk.bf16.vlgmr.msra.gmra.mxu2 %vm551_vm9, %v1839_v38  ;;  %v839_v9 = vpop.permute.xlu2 %838 }
  0xfd   : > { %811 = vst.msk [vmem:[#allocation2 + $0x28] sm:$0xff] %vm2908_vm8, %v809_v36  ;;  %v694_v40 = vpop.permute.xlu1 %693  ;;  %v685_v11 = vpop.permute.xlu0 %684  ;;  %v840_v4 = vrot.slane %v839_v9, 4 }
  0xfe   : > { %v686_v41 = vrot.slane %v685_v11, 4  ;;  %v695_v43 = vrot.slane %v694_v40, 4 }
  0xff   : > { %v841_v7 = vsel %vm651_vm6, %v839_v9, %v840_v4 }
 0x100   : > { %v687_v45 = vsel %vm651_vm6, %v686_v41, %v685_v11  ;;  %v696_v46 = vsel %vm540_vm1, %v695_v43, %v694_v40  ;;  %v1842_v48 = vld [vmem:[#allocation2 + $0x18] sm:$0xf] }
 0x101   : > { %689 = vst.msk [vmem:[#allocation2 + $0x30] sm:$0xff] %vm2904_vm7, %v687_v45  ;;  %v2075_v50 = vld [vmem:[#allocation2 + $0x1c] sm:$0xf]  ;;  %v1850_v51 = vld [vmem:[#allocation2 + $0x20] sm:$0xf] }
 0x102   : > { %820 = vst.msk [vmem:[#allocation2 + $0x34] sm:$0xff] %vm2908_vm8, %v818_v42 }
 0x103   : > { %v2076_v52 = vld [vmem:[#allocation2 + $0x20] sm:$0xf0] }
 0x104   : > { %v1844_v54 = vld [vmem:[#allocation2 + $0x24] sm:$0xf0]  ;;  %v2077_v55 = vld [vmem:[#allocation2 + $0x28] sm:$0xf0]  ;;  %v1843_v57 = vor.u32 %v2076_v52, %v1842_v48  ;;  %v848_v61 = vpop.permute.xlu2 %847 }
 0x105   : > { %v562_v47 = vpop.permute.xlu1 %561  ;;  %v825_v49 = vpop.permute.xlu0 %824  ;;  %v1847_v58 = vor.u32 %v2075_v50, %v1844_v54  ;;  %v1851_v59 = vor.u32 %v2077_v55, %v1850_v51  ;;  %v849_v8 = vrot.slane %v848_v61, 4 }
 0x106   : > { %564 = vst.msk [vmem:[#allocation2 + $0x3c] sm:$0xf] %vm524_vm0, %v562_v47  ;;  %v826_v53 = vrot.slane %v825_v49, 4 }
 0x107   : > { %698 = vst.msk [vmem:[#allocation2 + $0x3c] sm:$0xff] %vm2904_vm7, %v696_v46  ;;  %v850_v24 = vsel %vm540_vm1, %v849_v8, %v848_v61 }
 0x108   : > { %v827_v56 = vsel %vm551_vm9, %v826_v53, %v825_v49  ;;  %v1854_v13 = vld [vmem:[#allocation2 + $0x30] sm:$0xf] }
 0x109   : > { %829 = vst.msk [vmem:[#allocation2 + $0x40] sm:$0xff] %vm2908_vm8, %v827_v56  ;;  %v2078_v14 = vld [vmem:[#allocation2 + $0x34] sm:$0xf] }
 0x10b   : > { %1246 = vmatmul.bf16.gmra.mxu0 %v1843_v57 }
 0x10c   : > { %1295 = vmatmul.bf16.gmra.mxu1 %v1847_v58  ;;  %1997 = vmatmul.msk.bf16.gmra.mxu2 %vm551_vm9, %v1851_v59  ;;  %v600_v10 = vpop.permute.xlu2 %599 }
 0x10d   : > { %v704_v62 = vpop.permute.xlu1 %703  ;;  %v580_v63 = vpop.permute.xlu0 %579  ;;  %v601_v12 = vrot.slane %v600_v10, 4 }
 0x10e   : > { %v705_v0 = vrot.slane %v704_v62, 4  ;;  %v581_v2 = vrot.slane %v580_v63, 4  ;;  %v2079_v17 = vld [vmem:[#allocation2 + $0x38] sm:$0xf0] }
 0x10f   : > { %v602_v21 = vsel %vm540_vm1, %v600_v10, %v601_v12  ;;  %v1855_v26 = vor.u32 %v2079_v17, %v1854_v13 }
 0x110   : > { %v706_v5 = vsel %vm551_vm9, %v705_v0, %v704_v62  ;;  %v582_v6 = vsel %vm551_vm9, %v580_v63, %v581_v2  ;;  %v1856_v22 = vld [vmem:[#allocation2 + $0x3c] sm:$0xf0]  ;;  %v2080_v23 = vld [vmem:[#allocation2 + $0x40] sm:$0xf0]  ;;  %604 = vst.msk [vmem:[#allocation2 + $0x78] sm:$0xf] %vm524_vm0, %v602_v21 }
 0x111   : > { %708 = vst.msk [vmem:[#allocation2 + $0x48] sm:$0xff] %vm2904_vm7, %v706_v5  ;;  %v1859_v27 = vor.u32 %v2078_v14, %v1856_v22 }
 0x112   : > { %833 = vst.msk [vmem:[#allocation2 + $0x4c] sm:$0xff] %vm2908_vm8, %v2853_v20  ;;  %v1862_v20 = vld [vmem:[#allocation2 + $0x38] sm:$0xf] }
 0x113   : > { %584 = vst.msk [vmem:[#allocation2 + $0x54] sm:$0xf] %vm524_vm0, %v582_v6  ;;  %v1863_v28 = vor.u32 %v2080_v23, %v1862_v20 }
 0x114   : > { %712 = vst.msk [vmem:[#allocation2 + $0x54] sm:$0xff] %vm2904_vm7, %v2850_v18  ;;  %v871_v36 = vpop.permute.xlu2 %870 }
 0x115   : > { %843 = vst.msk [vmem:[#allocation2 + $0x58] sm:$0xff] %vm2908_vm8, %v841_v7  ;;  %v726_v15 = vpop.permute.xlu1 %725  ;;  %v717_v16 = vpop.permute.xlu0 %716  ;;  %v872_v43 = vrot.slane %v871_v36, 4 }
 0x116   : > { %v718_v19 = vrot.slane %v717_v16, 4  ;;  %v727_v18 = vrot.slane %v726_v15, 4 }
 0x117   : > { %v873_v52 = vsel %vm651_vm6, %v871_v36, %v872_v43 }
 0x118   : > { %v719_v25 = vsel %vm651_vm6, %v718_v19, %v717_v16  ;;  %v728_v29 = vsel %vm540_vm1, %v727_v18, %v726_v15  ;;  %v1866_v37 = vld [vmem:[#allocation2 + $0x48] sm:$0xf] }
 0x119   : > { %721 = vst.msk [vmem:[#allocation2 + $0x60] sm:$0xff] %vm2904_vm7, %v719_v25  ;;  %v2081_v38 = vld [vmem:[#allocation2 + $0x4c] sm:$0xf]  ;;  %v1874_v9 = vld [vmem:[#allocation2 + $0x50] sm:$0xf] }
 0x11a   : > { %852 = vst.msk [vmem:[#allocation2 + $0x64] sm:$0xff] %vm2908_vm8, %v850_v24 }
 0x11b   : > { %1251 = vmatmul.bf16.gmra.mxu0 %v1855_v26  ;;  %v2082_v11 = vld [vmem:[#allocation2 + $0x50] sm:$0xf0] }
 0x11c   : > { %1300 = vmatmul.bf16.gmra.mxu1 %v1859_v27  ;;  %1998 = vmatmul.msk.bf16.gmra.mxu2 %vm551_vm9, %v1863_v28  ;;  %v1868_v45 = vld [vmem:[#allocation2 + $0x54] sm:$0xf0]  ;;  %v2083_v46 = vld [vmem:[#allocation2 + $0x58] sm:$0xf0]  ;;  %v1867_v49 = vor.u32 %v2082_v11, %v1866_v37  ;;  %v880_v53 = vpop.permute.xlu2 %879 }
 0x11d   : > { %v592_v30 = vpop.permute.xlu1 %591  ;;  %v857_v31 = vpop.permute.xlu0 %856  ;;  %v1871_v50 = vor.u32 %v2081_v38, %v1868_v45  ;;  %v1875_v51 = vor.u32 %v2083_v46, %v1874_v9  ;;  %v881_v54 = vrot.slane %v880_v53, 4 }
 0x11e   : > { %594 = vst.msk [vmem:[#allocation2 + $0x6c] sm:$0xf] %vm524_vm0, %v592_v30  ;;  %v858_v32 = vrot.slane %v857_v31, 4 }
 0x11f   : > { %730 = vst.msk [vmem:[#allocation2 + $0x6c] sm:$0xff] %vm2904_vm7, %v728_v29  ;;  %v882_v57 = vsel %vm540_vm1, %v881_v54, %v880_v53 }
 0x120   : > { %v859_v34 = vsel %vm551_vm9, %v858_v32, %v857_v31  ;;  %v1878_v63 = vld [vmem:[#allocation2 + $0x60] sm:$0xf] }
 0x121   : > { %861 = vst.msk [vmem:[#allocation2 + $0x70] sm:$0xff] %vm2908_vm8, %v859_v34  ;;  %v2084_v0 = vld [vmem:[#allocation2 + $0x64] sm:$0xf]  ;;  %v1886_v2 = vld [vmem:[#allocation2 + $0x68] sm:$0xf] }
 0x124   : > { %v630_v61 = vpop.permute.xlu2 %629 }
 0x125   : > { %v736_v39 = vpop.permute.xlu1 %735  ;;  %v610_v40 = vpop.permute.xlu0 %609  ;;  %v631_v62 = vrot.slane %v630_v61, 4 }
 0x126   : > { %v737_v41 = vrot.slane %v736_v39, 4  ;;  %v611_v42 = vrot.slane %v610_v40, 4  ;;  %v2085_v6 = vld [vmem:[#allocation2 + $0x68] sm:$0xf0] }
 0x127   : > { %v632_v8 = vsel %vm540_vm1, %v630_v61, %v631_v62  ;;  %v1879_v14 = vor.u32 %v2085_v6, %v1878_v63 }
 0x128   : > { %v738_v47 = vsel %vm551_vm9, %v737_v41, %v736_v39  ;;  %v612_v48 = vsel %vm551_vm9, %v610_v40, %v611_v42  ;;  %v1880_v10 = vld [vmem:[#allocation2 + $0x6c] sm:$0xf0]  ;;  %v2086_v12 = vld [vmem:[#allocation2 + $0x70] sm:$0xf0]  ;;  %634 = vst.msk [vmem:[#allocation2 + $0xa8] sm:$0xf] %vm524_vm0, %v632_v8 }
 0x129   : > { %740 = vst.msk [vmem:[#allocation2 + $0x78] sm:$0xff] %vm2904_vm7, %v738_v47  ;;  %v1883_v15 = vor.u32 %v2084_v0, %v1880_v10  ;;  %v1887_v16 = vor.u32 %v2086_v12, %v1886_v2  ;;  %v2243_v2 = vld [vmem:[#allocation11 + $0x1] ss:$0 sm:$0xff] }
 0x12a   : > { %865 = vst.msk [vmem:[#allocation2 + $0x7c] sm:$0xff] %vm2908_vm8, %v2871_v35 }
 0x12b   : > { %1256 = vmatmul.bf16.gmra.mxu0 %v1867_v49  ;;  %614 = vst.msk [vmem:[#allocation2 + $0x84] sm:$0xf] %vm524_vm0, %v612_v48 }
 0x12c   : > { %1305 = vmatmul.bf16.gmra.mxu1 %v1871_v50  ;;  %1999 = vmatmul.msk.bf16.gmra.mxu2 %vm551_vm9, %v1875_v51  ;;  %744 = vst.msk [vmem:[#allocation2 + $0x84] sm:$0xff] %vm2904_vm7, %v2868_v33  ;;  %v903_v17 = vpop.permute.xlu2 %902  ;;  %v3036_v50 = vld [vmem:[%s3107_s4] ss:$0 sm:$0xff] }
 0x12d   : > { %875 = vst.msk [vmem:[#allocation2 + $0x88] sm:$0xff] %vm2908_vm8, %v873_v52  ;;  %v758_v55 = vpop.permute.xlu1 %757  ;;  %v749_v56 = vpop.permute.xlu0 %748  ;;  %v904_v23 = vrot.slane %v903_v17, 4 }
 0x12e   : > { %v750_v35 = vrot.slane %v749_v56, 4  ;;  %v759_v58 = vrot.slane %v758_v55, 4 }
 0x12f   : > { %v905_v25 = vsel %vm651_vm6, %v903_v17, %v904_v23 }
 0x130   : > { %v751_v59 = vsel %vm651_vm6, %v750_v35, %v749_v56  ;;  %v760_v33 = vsel %vm540_vm1, %v759_v58, %v758_v55  ;;  %v1890_v26 = vld [vmem:[#allocation2 + $0x78] sm:$0xf] }
 0x131   : > { %753 = vst.msk [vmem:[#allocation2 + $0x90] sm:$0xff] %vm2904_vm7, %v751_v59  ;;  %v2087_v28 = vld [vmem:[#allocation2 + $0x7c] sm:$0xf]  ;;  %v1898_v30 = vld [vmem:[#allocation2 + $0x80] sm:$0xf] }
 0x132   : > { %884 = vst.msk [vmem:[#allocation2 + $0x94] sm:$0xff] %vm2908_vm8, %v882_v57 }
 0x133   : > { %v2088_v27 = vld [vmem:[#allocation2 + $0x80] sm:$0xf0] }
 0x134   : > { %v1892_v29 = vld [vmem:[#allocation2 + $0x84] sm:$0xf0]  ;;  %v2089_v31 = vld [vmem:[#allocation2 + $0x88] sm:$0xf0]  ;;  %v1891_v32 = vor.u32 %v2088_v27, %v1890_v26  ;;  %v2245_v26 = vld [vmem:[#allocation11 + $0x3] ss:$0 sm:$0xff] }
 0x135   : > { %v622_v4 = vpop.permute.xlu1 %621  ;;  %v889_v5 = vpop.permute.xlu0 %888  ;;  %v1899_v34 = vor.u32 %v2089_v31, %v1898_v30 }
 0x136   : > { %624 = vst.msk [vmem:[#allocation2 + $0x9c] sm:$0xf] %vm524_vm0, %v622_v4  ;;  %v890_v7 = vrot.slane %v889_v5, 4 }
 0x137   : > { %762 = vst.msk [vmem:[#allocation2 + $0x9c] sm:$0xff] %vm2904_vm7, %v760_v33  ;;  %v2242_v33 = vld [vmem:[#allocation11] ss:$0 sm:$0xff] }
 0x138   : > { %v891_v13 = vsel %vm551_vm9, %v890_v7, %v889_v5  ;;  %v1902_v1 = vld [vmem:[#allocation2 + $0x90] sm:$0xf] }
 0x139   : > { %893 = vst.msk [vmem:[#allocation2 + $0xa0] sm:$0xff] %vm2908_vm8, %v891_v13  ;;  %v2090_v37 = vld [vmem:[#allocation2 + $0x94] sm:$0xf]  ;;  %v1910_v38 = vld [vmem:[#allocation2 + $0x98] sm:$0xf] }
 0x13b   : > { %1261 = vmatmul.bf16.gmra.mxu0 %v1879_v14 }
 0x13c   : > { %1310 = vmatmul.bf16.gmra.mxu1 %v1883_v15  ;;  %2000 = vmatmul.msk.bf16.gmra.mxu2 %vm551_vm9, %v1887_v16  ;;  %v2244_v16 = vld [vmem:[#allocation11 + $0x2] ss:$0 sm:$0xff] }
 0x13d   : > { %v640_v20 = vpop.permute.xlu0 %639  ;;  %v768_v19 = vpop.permute.xlu1 %767 }
 0x13e   : > { %v641_v21 = vrot.slane %v640_v20, 4  ;;  %v769_v22 = vrot.slane %v768_v19, 4  ;;  %v2091_v36 = vld [vmem:[#allocation2 + $0x98] sm:$0xf0] }
 0x13f   : > { %v1903_v39 = vor.u32 %v2091_v36, %v1902_v1  ;;  %v2246_v36 = vld [vmem:[#allocation11 + $0x4] ss:$0 sm:$0xff] }
 0x140   : > { %v642_v24 = vsel %vm551_vm9, %v640_v20, %v641_v21  ;;  %v770_v18 = vsel %vm551_vm9, %v769_v22, %v768_v19  ;;  %v2092_v3 = vld [vmem:[#allocation2 + $0xa0] sm:$0xf0] }
 0x141   : > { %644 = vst.msk [vmem:[#allocation2 + $0xb4] sm:$0xf] %vm524_vm0, %v642_v24  ;;  %v1911_v11 = vor.u32 %v2092_v3, %v1910_v38 }
 0x142   : > { %776 = vst.msk [vmem:[#allocation2 + $0xb4] sm:$0xff] %vm2904_vm7, %v2887_v44  ;;  %v1895_v44 = vor.u32 %v2087_v28, %v1892_v29 }
 0x143   : > { %772 = vst.msk [vmem:[#allocation2 + $0xa8] sm:$0xff] %vm2904_vm7, %v770_v18 }
 0x144   : > { %897 = vst.msk [vmem:[#allocation2 + $0xac] sm:$0xff] %vm2908_vm8, %v2900_v60  ;;  %v1904_v60 = vld [vmem:[#allocation2 + $0x9c] sm:$0xf0] }
 0x145   : > { %907 = vst.msk [vmem:[#allocation2 + $0xb8] sm:$0xff] %vm2908_vm8, %v905_v25  ;;  %v1907_v40 = vor.u32 %v2090_v37, %v1904_v60 }
 0x149   : > { %v2094_v42 = vld [vmem:[#allocation2 + $0xb0] sm:$0xf0] }
 0x14a   : > { %v1914_v41 = vld [vmem:[#allocation2 + $0xa8] sm:$0xf] }
 0x14b   : > { %1266 = vmatmul.bf16.gmra.mxu0 %v1891_v32  ;;  %v2093_v43 = vld [vmem:[#allocation2 + $0xac] sm:$0xf]  ;;  %v1922_v9 = vld [vmem:[#allocation2 + $0xb0] sm:$0xf]  ;;  %v1915_v47 = vor.u32 %v2094_v42, %v1914_v41 }
 0x14c   : > { %1315 = vmatmul.bf16.gmra.mxu1 %v1895_v44  ;;  %2001 = vmatmul.msk.bf16.gmra.mxu2 %vm551_vm9, %v1899_v34  ;;  %v1916_v45 = vld [vmem:[#allocation2 + $0xb4] sm:$0xf0]  ;;  %v2095_v46 = vld [vmem:[#allocation2 + $0xb8] sm:$0xf0] }
 0x14d   : > { %v1919_v48 = vor.u32 %v2093_v43, %v1916_v45  ;;  %v1923_v49 = vor.u32 %v2095_v46, %v1922_v9 }
 0x15b   : > { %1271 = vmatmul.bf16.gmra.mxu0 %v1903_v39 }
 0x15c   : > { %1320 = vmatmul.bf16.gmra.mxu1 %v1907_v40  ;;  %2002 = vmatmul.msk.bf16.gmra.mxu2 %vm551_vm9, %v1911_v11 }
 0x16b   : > { %1276 = vmatmul.bf16.gmra.mxu0 %v1915_v47 }
 0x16c   : > { %1325 = vmatmul.bf16.gmra.mxu1 %v1919_v48  ;;  %2003 = vmatmul.msk.bf16.gmra.mxu2 %vm551_vm9, %v1923_v49 }
 0x178   : > { %v1242_v51 = vpop.f32.mrf.mxu0 }
 0x179   : > { %v1243_v52 = vadd.f32 %v3036_v50, %v1242_v51  ;;  %v1291_v53 = vpop.f32.mrf.mxu1 }
 0x17b   : > { %v1292_v54 = vadd.f32 %v1291_v53, %v1243_v52  ;;  %v2121_v52 = vld [vmem:[#allocation12 + $0x38] sm:$0xff]  ;;  %v2120_v53 = vld [vmem:[#allocation12 + $0x30] sm:$0xff] }
 0x17c   : > { %1529 = vmatpush.bf16.msra.mxu3 %v2121_v52 }
 0x17f   : > { %v1340_v55 = vpop.f32.mrf.mxu2 }
 0x180   : > { %v1341_v56 = vadd.f32 %v1340_v55, %v1292_v54  ;;  %v1244_v35 = vpop.f32.mrf.mxu0  ;;  %1530 = vmatpush.bf16.msra.mxu3 %v2120_v53  ;;  %v2251_v53 = vld [vmem:[#allocation11 + $0x9] ss:$0 sm:$0xff] }
 0x181   : > { %v1245_v57 = vadd.f32 %v3036_v50, %v1244_v35  ;;  %v1293_v58 = vpop.f32.mrf.mxu1  ;;  %v2119_v35 = vld [vmem:[#allocation12 + $0x28] sm:$0xff] }
 0x182   : > { %v1380_v61 = vmax.f32 %v1341_v56, 0.0 }
 0x183   : > { %v1294_v59 = vadd.f32 %v1293_v58, %v1245_v57  ;;  %v2118_v57 = vld [vmem:[#allocation12 + $0x20] sm:$0xff] }
 0x184   : > { %v1398_v63 = vmul.f32 %v2242_v33, %v1380_v61  ;;  %1531 = vmatpush.bf16.msra.mxu3 %v2119_v35  ;;  %v2117_v33 = vld [vmem:[#allocation12 + $0x18] sm:$0xff] }
 0x186   : > { %v1399_v10 = vmax.f32 %v1398_v63, 0.0 }
 0x187   : > { %v1342_v62 = vpop.f32.mrf.mxu2 }
 0x188   : > { %v1343_v0 = vadd.f32 %v1342_v62, %v1294_v59  ;;  %v1247_v4 = vpop.f32.mrf.mxu0  ;;  %1532 = vmatpush.bf16.msra.mxu3 %v2118_v57  ;;  %v2116_v62 = vld [vmem:[#allocation12 + $0x10] sm:$0xff] }
 0x189   : > { %v1248_v5 = vadd.f32 %v3036_v50, %v1247_v4  ;;  %v1296_v6 = vpop.f32.mrf.mxu1 }
 0x18a   : > { %v1381_v7 = vmax.f32 %v1343_v0, 0.0 }
 0x18b   : > { %v1297_v8 = vadd.f32 %v1296_v6, %v1248_v5  ;;  %v2115_v6 = vld [vmem:[#allocation12 + $0x8] sm:$0xff] }
 0x18c   : > { %v1402_v12 = vmul.f32 %v2243_v2, %v1381_v7  ;;  %1533 = vmatpush.bf16.msra.mxu3 %v2117_v33 }
 0x18e   : > { %v1403_v13 = vmax.f32 %v1399_v10, %v1402_v12  ;;  %v2114_v10 = vld [vmem:[#allocation12] sm:$0xff] }
 0x18f   : > { %v1345_v14 = vpop.f32.mrf.mxu2 }
 0x190   : > { %v1346_v15 = vadd.f32 %v1345_v14, %v1297_v8  ;;  %v1249_v17 = vpop.f32.mrf.mxu0  ;;  %1534 = vmatpush.bf16.msra.mxu3 %v2116_v62  ;;  %v2126_v62 = vld [vmem:[#allocation14 + $0x20] sm:$0xff] }
 0x191   : > { %v1250_v20 = vadd.f32 %v3036_v50, %v1249_v17  ;;  %v1298_v19 = vpop.f32.mrf.mxu1 }
 0x192   : > { %v1382_v21 = vmax.f32 %v1346_v15, 0.0 }
 0x193   : > { %v1299_v22 = vadd.f32 %v1298_v19, %v1250_v20 }
 0x194   : > { %v1406_v23 = vmul.f32 %v2244_v16, %v1382_v21  ;;  %1535 = vmatpush.bf16.msra.mxu3 %v2115_v6 }
 0x196   : > { %v1407_v24 = vmax.f32 %v1403_v13, %v1406_v23 }
 0x197   : > { %v1347_v18 = vpop.f32.mrf.mxu2 }
 0x198   : > { %v1348_v25 = vadd.f32 %v1347_v18, %v1299_v22  ;;  %v1252_v27 = vpop.f32.mrf.mxu0  ;;  %1536 = vmatpush.bf16.msra.mxu3 %v2114_v10  ;;  %v2247_v22 = vld [vmem:[#allocation11 + $0x5] ss:$0 sm:$0xff] }
 0x199   : > { %v1253_v28 = vadd.f32 %v3036_v50, %v1252_v27  ;;  %v1301_v29 = vpop.f32.mrf.mxu1 }
 0x19a   : > { %v1383_v30 = vmax.f32 %v1348_v25, 0.0 }
 0x19b   : > { %v1302_v31 = vadd.f32 %v1301_v29, %v1253_v28  ;;  %v2248_v28 = vld [vmem:[#allocation11 + $0x6] ss:$0 sm:$0xff] }
 0x19c   : > { %v1410_v32 = vmul.f32 %v2245_v26, %v1383_v30  ;;  %v2129_v26 = vld [vmem:[#allocation14 + $0x38] sm:$0xff] }
 0x19d   : > { %1612 = vmatpush.bf16.msrb.mxu3 %v2129_v26 }
 0x19e   : > { %v3043_v44 = vmax.f32 %v1407_v24, %v1410_v32  ;;  %v2128_v32 = vld [vmem:[#allocation14 + $0x30] sm:$0xff] }
 0x19f   : > { %v1350_v34 = vpop.f32.mrf.mxu2 }
 0x1a0   : > { %v1351_v1 = vadd.f32 %v1350_v34, %v1302_v31  ;;  %v1254_v37 = vpop.f32.mrf.mxu0 }
 0x1a1   : > { %v1303_v60 = vpop.f32.mrf.mxu1  ;;  %v1255_v63 = vadd.f32 %v3036_v50, %v1254_v37  ;;  %1613 = vmatpush.bf16.msrb.mxu3 %v2128_v32  ;;  %v2257_v32 = vld [vmem:[#allocation11 + $0xf] ss:$0 sm:$0xff] }
 0x1a2   : > { %v1384_v38 = vmax.f32 %v1351_v1, 0.0 }
 0x1a3   : > { %v1304_v7 = vadd.f32 %v1303_v60, %v1255_v63 }
 0x1a4   : > { %v3045_v3 = vmul.f32 %v2246_v36, %v1384_v38  ;;  %v2249_v36 = vld [vmem:[#allocation11 + $0x7] ss:$0 sm:$0xff] }
 0x1a6   : > { %v1415_v39 = vmax.f32 %v3043_v44, %v3045_v3  ;;  %v2253_v3 = vld [vmem:[#allocation11 + $0xb] ss:$0 sm:$0xff] }
 0x1a7   : > { %v1352_v40 = vpop.f32.mrf.mxu2 }
 0x1a8   : > { %v1257_v11 = vpop.f32.mrf.mxu0  ;;  %v1353_v12 = vadd.f32 %v1352_v40, %v1304_v7 }
 0x1a9   : > { %v1306_v41 = vpop.f32.mrf.mxu1  ;;  %v1258_v4 = vadd.f32 %v3036_v50, %v1257_v11 }
 0x1aa   : > { %v1385_v21 = vmax.f32 %v1353_v12, 0.0 }
 0x1ab   : > { %v1307_v13 = vadd.f32 %v1306_v41, %v1258_v4 }
 0x1ac   : > { %v1418_v34 = vmul.f32 %v2247_v22, %v1385_v21 }
 0x1af   : > { %v1355_v42 = vpop.f32.mrf.mxu2 }
 0x1b0   : > { %v1259_v43 = vpop.f32.mrf.mxu0  ;;  %v1356_v15 = vadd.f32 %v1355_v42, %v1307_v13  ;;  %v2250_v42 = vld [vmem:[#allocation11 + $0x8] ss:$0 sm:$0xff] }
 0x1b1   : > { %v1308_v45 = vpop.f32.mrf.mxu1  ;;  %v1260_v8 = vadd.f32 %v3036_v50, %v1259_v43  ;;  %v2125_v13 = vld [vmem:[#allocation14 + $0x18] sm:$0xff] }
 0x1b2   : > { %v1386_v27 = vmax.f32 %v1356_v15, 0.0 }
 0x1b3   : > { %v1309_v16 = vadd.f32 %v1308_v45, %v1260_v8  ;;  %v2254_v8 = vld [vmem:[#allocation11 + $0xc] ss:$0 sm:$0xff] }
 0x1b4   : > { %v1422_v40 = vmul.f32 %v2248_v28, %v1386_v27 }
 0x1b7   : > { %v1357_v9 = vpop.f32.mrf.mxu2 }
 0x1b8   : > { %v1262_v46 = vpop.f32.mrf.mxu0  ;;  %v1358_v23 = vadd.f32 %v1357_v9, %v1309_v16 }
 0x1b9   : > { %v1311_v47 = vpop.f32.mrf.mxu1  ;;  %v1263_v14 = vadd.f32 %v3036_v50, %v1262_v46 }
 0x1ba   : > { %v1387_v1 = vmax.f32 %v1358_v23, 0.0 }
 0x1bb   : > { %v1312_v18 = vadd.f32 %v1311_v47, %v1263_v14  ;;  %v2127_v47 = vld [vmem:[#allocation14 + $0x28] sm:$0xff] }
 0x1bc   : > { %1614 = vmatpush.bf16.msrb.mxu3 %v2127_v47 }
 0x1bf   : > { %v1360_v48 = vpop.f32.mrf.mxu2 }
 0x1c0   : > { %v1264_v49 = vpop.f32.mrf.mxu0  ;;  %v1361_v29 = vadd.f32 %v1360_v48, %v1312_v18  ;;  %v1419_v48 = vmax.f32 %v1415_v39, %v1418_v34  ;;  %1615 = vmatpush.bf16.msrb.mxu3 %v2126_v62  ;;  %v2124_v18 = vld [vmem:[#allocation14 + $0x10] sm:$0xff] }
 0x1c1   : > { %v1313_v51 = vpop.f32.mrf.mxu1  ;;  %v1265_v20 = vadd.f32 %v3036_v50, %v1264_v49  ;;  %v1426_v49 = vmul.f32 %v2249_v36, %v1387_v1 }
 0x1c2   : > { %v1388_v41 = vmax.f32 %v1361_v29, 0.0  ;;  %v1423_v35 = vmax.f32 %v1419_v48, %v1422_v40  ;;  %v2122_v40 = vld [vmem:[#allocation14] sm:$0xff] }
 0x1c3   : > { %v1314_v30 = vadd.f32 %v1313_v51, %v1265_v20 }
 0x1c4   : > { %v1430_v57 = vmul.f32 %v2250_v42, %v1388_v41  ;;  %v1427_v63 = vmax.f32 %v1423_v35, %v1426_v49  ;;  %1616 = vmatpush.bf16.msrb.mxu3 %v2125_v13 }
 0x1c6   : > { %v1431_v7 = vmax.f32 %v1427_v63, %v1430_v57 }
 0x1c7   : > { %v1362_v54 = vpop.f32.mrf.mxu2 }
 0x1c8   : > { %v1267_v55 = vpop.f32.mrf.mxu0  ;;  %v1363_v37 = vadd.f32 %v1362_v54, %v1314_v30  ;;  %1617 = vmatpush.bf16.msrb.mxu3 %v2124_v18 }
 0x1c9   : > { %v1316_v56 = vpop.f32.mrf.mxu1  ;;  %v1268_v25 = vadd.f32 %v3036_v50, %v1267_v55 }
 0x1ca   : > { %v1389_v52 = vmax.f32 %v1363_v37, 0.0 }
 0x1cb   : > { %v1317_v60 = vadd.f32 %v1316_v56, %v1268_v25 }
 0x1cf   : > { %v1365_v58 = vpop.f32.mrf.mxu2 }
 0x1d0   : > { %v1269_v59 = vpop.f32.mrf.mxu0  ;;  %v1366_v43 = vadd.f32 %v1365_v58, %v1317_v60 }
 0x1d1   : > { %v1318_v61 = vpop.f32.mrf.mxu1  ;;  %v1270_v31 = vadd.f32 %v3036_v50, %v1269_v59  ;;  %v2252_v59 = vld [vmem:[#allocation11 + $0xa] ss:$0 sm:$0xff] }
 0x1d2   : > { %v1390_v58 = vmax.f32 %v1366_v43, 0.0 }
 0x1d3   : > { %v1319_v45 = vadd.f32 %v1318_v61, %v1270_v31 }
 0x1d7   : > { %v1367_v0 = vpop.f32.mrf.mxu2 }
 0x1d8   : > { %v1272_v2 = vpop.f32.mrf.mxu0  ;;  %v1368_v54 = vadd.f32 %v1367_v0, %v1319_v45  ;;  %v1438_v0 = vmul.f32 %v2252_v59, %v1390_v58 }
 0x1d9   : > { %v1321_v5 = vpop.f32.mrf.mxu1  ;;  %v1273_v38 = vadd.f32 %v3036_v50, %v1272_v2  ;;  %v1434_v2 = vmul.f32 %v2251_v53, %v1389_v52 }
 0x1da   : > { %v1391_v44 = vmax.f32 %v1368_v54, 0.0 }
 0x1db   : > { %v1322_v55 = vadd.f32 %v1321_v5, %v1273_v38  ;;  %v1435_v14 = vmax.f32 %v1431_v7, %v1434_v2  ;;  %v2123_v38 = vld [vmem:[#allocation14 + $0x8] sm:$0xff] }
 0x1dc   : > { %v1442_v15 = vmul.f32 %v2253_v3, %v1391_v44  ;;  %1618 = vmatpush.bf16.msrb.mxu3 %v2123_v38 }
 0x1dd   : > { %v1439_v21 = vmax.f32 %v1435_v14, %v1438_v0 }
 0x1df   : > { %v1370_v17 = vpop.f32.mrf.mxu2  ;;  %v1443_v25 = vmax.f32 %v1439_v21, %v1442_v15 }
 0x1e0   : > { %v1274_v19 = vpop.f32.mrf.mxu0  ;;  %v1371_v61 = vadd.f32 %v1370_v17, %v1322_v55  ;;  %v2255_v17 = vld [vmem:[#allocation11 + $0xd] ss:$0 sm:$0xff]  ;;  %1619 = vmatpush.bf16.msrb.mxu3 %v2122_v40 }
 0x1e1   : > { %v1323_v24 = vpop.f32.mrf.mxu1  ;;  %v1275_v9 = vadd.f32 %v3036_v50, %v1274_v19 }
 0x1e2   : > { %v1392_v5 = vmax.f32 %v1371_v61, 0.0 }
 0x1e3   : > { %v1324_v33 = vadd.f32 %v1323_v24, %v1275_v9  ;;  %v2256_v24 = vld [vmem:[#allocation11 + $0xe] ss:$0 sm:$0xff] }
 0x1e4   : > { %v1446_v22 = vmul.f32 %v2254_v8, %v1392_v5 }
 0x1e6   : > { %v1447_v29 = vmax.f32 %v1443_v25, %v1446_v22 }
 0x1e7   : > { %v1372_v11 = vpop.f32.mrf.mxu2 }
 0x1e8   : > { %v1277_v46 = vpop.f32.mrf.mxu0  ;;  %v1373_v39 = vadd.f32 %v1372_v11, %v1324_v33  ;;  %v2258_v11 = vld [vmem:[%s3110_s7] ss:$0 sm:$0xff] }
 0x1e9   : > { %v1326_v51 = vpop.f32.mrf.mxu1  ;;  %v1278_v56 = vadd.f32 %v3036_v50, %v1277_v46  ;;  %v2259_v46 = vld [vmem:[%s3112_s9] ss:$0 sm:$0xff] }
 0x1ea   : > { %v1393_v16 = vmax.f32 %v1373_v39, 0.0 }
 0x1eb   : > { %v1327_v4 = vadd.f32 %v1326_v51, %v1278_v56 }
 0x1ec   : > { %v1450_v26 = vmul.f32 %v2255_v17, %v1393_v16 }
 0x1ee   : > { %v1451_v34 = vmax.f32 %v1447_v29, %v1450_v26 }
 0x1ef   : > { %v1375_v6 = vpop.f32.mrf.mxu2 }
 0x1f0   : > { %v1376_v10 = vadd.f32 %v1375_v6, %v1327_v4  ;;  %v1279_v12 = vpop.f32.mrf.mxu0 }
 0x1f1   : > { %v1280_v20 = vadd.f32 %v3036_v50, %v1279_v12  ;;  %v1328_v19 = vpop.f32.mrf.mxu1 }
 0x1f2   : > { %v1394_v23 = vmax.f32 %v1376_v10, 0.0 }
 0x1f3   : > { %v1329_v27 = vadd.f32 %v1328_v19, %v1280_v20 }
 0x1f4   : > { %v1454_v30 = vmul.f32 %v2256_v24, %v1394_v23 }
 0x1f6   : > { %v1455_v50 = vmax.f32 %v1451_v34, %v1454_v30 }
 0x1f7   : > { %v1377_v28 = vpop.f32.mrf.mxu2 }
 0x1f8   : > { %v1378_v31 = vadd.f32 %v1377_v28, %v1329_v27 }
 0x1fa   : > { %v1395_v1 = vmax.f32 %v1378_v31, 0.0 }
 0x1fc   : > { %v1458_v36 = vmul.f32 %v2257_v32, %v1395_v1 }
 0x1fe   : > { %v1459_v37 = vmax.f32 %v1455_v50, %v1458_v36 }
 0x200   : > { %v1460_v60 = vpack.c.bf16 %v1459_v37, %v1459_v37 }
 0x202   : > { %1537 = vmatmul.bf16.vlgmr.msra.gmra.mxu3 %v1460_v60 }
 0x285   : > { %v1538_v41 = vpop.f32.mrf.mxu3 }
 0x286   : > { %v1539_v42 = vadd.f32 %v2258_v11, %v1538_v41 }
 0x288   : > { %v1542_v43 = vmax.f32 %v1539_v42, 0.0 }
 0x28a   : > { %v1543_v45 = vpack.c.bf16 %v1542_v43, %v1542_v43 }
 0x28c   : > { %1620 = vmatmul.bf16.vlgmr.msrb.gmra.mxu3 %v1543_v45 }
 0x28d   : > { %v1540_v9 = vpop.f32.mrf.mxu3 }
 0x30f   : > { %v1621_v47 = vpop.f32.mrf.mxu3 }
 0x310   : > { %v1622_v48 = vadd.f32 %v2259_v46, %v1621_v47 }
 0x312   : > { %v1625_v49 = vsub.f32 0.0, %v1622_v48 }
 0x314   : > { %v1626_v51 = vmul.f32 1.442695, %v1625_v49 }
 0x316   : > { %2260 = vpow2.f32 %v1626_v51 }
 0x317   : > { %v1623_v52 = vpop.f32.mrf.mxu3 }
 0x31c   : > { %v2261_v53 = vpop.eup %2260 }
 0x31d   : > { %v1628_v54 = vadd.f32 1.0, %v2261_v53 }
 0x31f   : > { %2262 = vrcp.f32 %v1628_v54  ;;  %v1640_v57 = vand.u32 2147483648, %v1628_v54  ;;  %v1638_v59 = vand.u32 2147483647, %v1628_v54  ;;  %vm1634_vm11 = vweird.f32 %v1628_v54 }
 0x321   : > { %v1641_v33 = vor.u32 1.1754944e-38, %v1640_v57  ;;  %vm1639_vm13 = vcmp.eq.f32.partialorder %v1638_v59, 8.507059e+37 }
 0x325   : > { %v2263_v55 = vpop.eup %2262 }
 0x326   : > { %v1630_v56 = vmul.f32 %v2263_v55, %v1628_v54  ;;  %vm1635_vm10 = vweird.f32 %v2263_v55 }
 0x327   : > { %vm1636_vm12 = vmor %vm1634_vm11, %vm1635_vm10 }
 0x328   : > { %v1631_v35 = vsub.f32 1.0, %v1630_v56 }
 0x32a   : > { %v1632_v58 = vmul.f32 %v2263_v55, %v1631_v35 }
 0x32c   : > { %v1633_v61 = vadd.f32 %v2263_v55, %v1632_v58 }
 0x32e   : > { %v1637_v62 = vsel %vm1636_vm12, %v2263_v55, %v1633_v61 }
 0x32f   : > { %v1642_v63 = vsel %vm1639_vm13, %v1641_v33, %v1637_v62 }
 0x330   : > { %1644 = vst [vmem:[%s520_s12] sm:$0xff] %v1642_v63 }
 0x331   : > { %2501 = shalt.err (!%p2498_p11)
}
 0x332   : > { %2159 = dma.vmem_to_hbm [thread:$0]  (%p2699_p4), %s1659_s5, 128, %s1661_s3, %s1646_s20  }
 0x333 PF: > { %s3159_s28 = sld [smem:[#allocation21_spill]] }
 0x334   : > { %s3161_s26 = sld [smem:[#allocation22_spill]] }
 0x339   : > { %s1672_s1 = sand.u32 1, %s3159_s28  }
 0x33a   : > { %p3162_p13 = scmp.ge.s32.totalorder %s3161_s26, 2  ;;  %s1673_s22 = scalar_lea.sflag [#allocation5], %s1672_s1 }
 0x33c   : > { %p2185_p3 = pnand %p3162_p13, %p2703_p5 }
 0x33e   : > { %p2186_p7 = pneg %p2185_p3 }
 0x340   : > { %2535 = dma.done.wait (%p2186_p7), %s1673_s22, 128  }
 0x341   : > { %2537 = vsyncadd (%p2186_p7), %s1673_s22, 4294967168  ;;  %s3163_s16 = sld [smem:[#allocation23_spill]]  ;;  %s3165_s13 = smov %s2544_s14 }
 0x342   : > { %s3164_s6 = sld [smem:[#allocation24_spill]]  ;;  %s3166_s14 = smov %s2548_s15 }
 0x347   : > { %p28_p9 = scmp.ge.s32.totalorder %s3163_s16, 4  }
 0x348   : > { %s3167_s15 = smov %s3164_s6 }
 0x349   :  { %30 = sbr.rel (!%p28_p9) target bundleno = 15 (0xf), region = 145 }
 0x34e   :  { %1679 = vsyncpa [#allocation4], 1 }
 0x34f   :  { %1681 = vsyncpa [#allocation4 + $0x1], 1 }
 0x350   :  { %1682 = vsyncpa [#allocation7], 1 }
 0x351   :  { %1684 = vsyncpa [#allocation7 + $0x1], 1 }
 0x352   :  { %1685 = vsyncpa [#allocation10], 1 }
 0x353   :  { %1686 = vsyncpa [#allocation13], 1 }
 0x354   :  { %1687 = vsyncpa [#allocation5], 1 }
 0x355   :  { %1689 = vsyncpa [#allocation5 + $0x1], 1 }

// kernel: tpu_custom_call.1
= control target key start
LH: loop header
LB: loop body
LE: loop exit
PB: predicated region body
PF: predicated region fallthrough
CT: control target
= control target key end

     0   :  { %s3103_s0 = inlined_call_operand.hbm [shape: f32[16,640], index: 0, kind: input, shape index: {}]   ;;  %s3104_s1 = inlined_call_operand.hbm [shape: f32[16,640], index: 1, kind: input, shape index: {}]   ;;  %s3105_s2 = inlined_call_operand.hbm [shape: f32[16,640], index: 2, kind: input, shape index: {}]   ;;  %s3106_s3 = inlined_call_operand.hbm [shape: bf16[288,128], index: 3, kind: input, shape index: {}]   ;;  %s3107_s4 = inlined_call_operand.vmem [shape: f32[1,128], index: 4, kind: input, shape index: {}]   ;;  %s3108_s5 = inlined_call_operand.hbm [shape: f32[16,128], index: 5, kind: input, shape index: {}]   ;;  %s3109_s6 = inlined_call_operand.hbm [shape: bf16[128,128], index: 6, kind: input, shape index: {}]   ;;  %s3110_s7 = inlined_call_operand.vmem [shape: f32[1,128], index: 7, kind: input, shape index: {}]   ;;  %s3111_s8 = inlined_call_operand.hbm [shape: bf16[128,128], index: 8, kind: input, shape index: {}]   ;;  %s3112_s9 = inlined_call_operand.vmem [shape: f32[1,128], index: 9, kind: input, shape index: {}]   ;;  %s3113_s10 = inlined_call_operand.hbm [shape: f32[16,128], index: 10, kind: output, shape index: {}]  }
   0x1   :  { %3125 = sst [smem:[#allocation27_spill]] %s3104_s1 }
   0x2   :  { %3126 = sst [smem:[#allocation28_spill]] %s3106_s3 }
   0x3   :  { %3127 = sst [smem:[#allocation29_spill]] %s3108_s5 }
   0x4   :  { %3128 = sst [smem:[#allocation30_spill]] %s3109_s6 }
   0x5   :  { %3129 = sst [smem:[#allocation31_spill]] %s3111_s8 }
   0x6   :  { %15 = vsyncpa [#allocation4], 0 }
   0x7   :  { %17 = vsyncpa [#allocation4 + $0x1], 0 }
   0x8   :  { %18 = vsyncpa [#allocation7], 0 }
   0x9   :  { %20 = vsyncpa [#allocation7 + $0x1], 0 }
   0xa   :  { %21 = vsyncpa [#allocation10], 0 }
   0xb   :  { %22 = vsyncpa [#allocation13], 0 }
   0xc   :  { %23 = vsyncpa [#allocation5], 0 }
   0xd   :  { %25 = vsyncpa [#allocation5 + $0x1], 0  ;;  %s2620_s13 = smov 0   ;;  %s2622_s14 = smov 0  }
   0xe   :  { %s2624_s15 = smov 0   ;;  %s2626_s16 = smov 0  }
   0xf LB: > { %3130 = sst [smem:[#allocation21_spill]] %s2540_s13  ;;  %s2644_s20 = sadd.s32 4294967295, %s2552_s16   ;;  %s2552_s16 = sphi %s2626_s16, %s3163_s16   ;;  %s2548_s15 = sphi %s2624_s15, %s3167_s15   ;;  %s2544_s14 = sphi %s2622_s14, %s3166_s14   ;;  %s2540_s13 = sphi %s2620_s13, %s3165_s13  }
  0x10   : > { %3131 = sst [smem:[#allocation22_spill]] %s2552_s16  ;;  %p1813_p0 = scmp.ge.s32.totalorder %s2552_s16, 1 }
  0x11   : > { %s3132_s3 = sld [smem:[#allocation28_spill]]  ;;  %p3121_p1 = scmp.eq.s32.totalorder %s2644_s20, 0 }
  0x12   : > { %p287_p2 = scmp.lt.s32.totalorder %s2552_s16, 3  ;;  %s2554_s22 = smov [#allocation9]  }
  0x13   : > { %s300_s23 = sshll.u32 %s2554_s22, 4  ;;  %s3134_s6 = sld [smem:[#allocation30_spill]]  ;;  %s301_s23 = int_to_ptr.vmem [resolvable:$true] %s300_s23 }
  0x14   : > { %p2649_p3 = pnand %p1813_p0, %p287_p2  ;;  %s2555_s28 = smov [#allocation12]  }
  0x15   : > { %s331_s29 = sshll.u32 %s2555_s28, 4  ;;  %s3114_s30 = smov 64   ;;  %s332_s29 = int_to_ptr.vmem [resolvable:$true] %s331_s29 }
  0x16   : > { %p2161_p4 = pneg %p2649_p3  ;;  %s3115_s11 = smov 4  }
  0x17   : > { %s298_s19 = sshll.u32 %s3132_s3, 4  ;;  %s1812_s12 = sadd.s32 4294967294, %s2552_s16   ;;  %s299_s19 = int_to_ptr.hbm [resolvable:$true] %s298_s19 }
  0x18   : > { %p2661_p6 = pnand %p2161_p4, %p3121_p1  ;;  %s2677_s17 = sadd.s32 1, %s2552_s16  }
  0x19   : > { %s329_s26 = sshll.u32 %s3134_s6, 4  ;;  %3136 = sst [smem:[#allocation23_spill]] %s2677_s17  ;;  %s330_s26 = int_to_ptr.hbm [resolvable:$true] %s329_s26 }
  0x1a   : > { %2164 = dma.hbm_to_vmem [thread:$0]  (!%p2661_p6), %s299_s19, 2304, %s301_s23, [#allocation10], %s3114_s30, %s3114_s30, %s3115_s11  }
  0x1b   : > { %2170 = dma.hbm_to_vmem [thread:$0]  (!%p2661_p6), %s330_s26, 1024, %s332_s29, [#allocation13], %s3114_s30, %s3114_s30, %s3115_s11  }
  0x1c   : > { %s35_s18 = ssub.s32 %s2552_s16, %s2677_s17  ;;  %s38_s22 = sadd.s32 1, %s2548_s15 }
  0x1d   : > { %p36_p7 = scmp.eq.s32.totalorder %s35_s18, 0  ;;  %p45_p8 = scmp.ne.s32.totalorder %s2548_s15, %s2544_s14 }
  0x1e   : > { %p46_p9 = scmp.eq.s32.totalorder %s2552_s16, 0  ;;  %p51_p10 = scmp.ne.s32.totalorder %s2544_s14, %s2540_s13 }
  0x1f   : > { %s2688_s19 = scalar_select %p36_p7, %s2548_s15, %s38_s22  }
  0x20   : > { %p47_p11 = por %p46_p9, %p45_p8  ;;  %p2692_p12 = por %p3121_p1, %p51_p10 }
  0x21   : > { %3137 = sst [smem:[#allocation24_spill]] %s2688_s19  ;;  %p274_p13 = scmp.eq.s32.totalorder %s2644_s20, 1 }
  0x22   : > { %p280_p0 = scmp.eq.s32.totalorder %s1812_s12, 1  ;;  %p2192_p2 = scmp.lt.s32.totalorder %s2552_s16, 2 }
  0x23   : > { %s3116_s24 = sand.u32 1, %s2548_s15   ;;  %p2699_p4 = por %p274_p13, %p45_p8 }
  0x24   : > { %p2703_p5 = por %p280_p0, %p51_p10  ;;  %s2709_s28 = smul.u32 40, %s3116_s24 }
  0x25   : > { %s3139_s25 = scalar_select %p2699_p4, 1, 0 }
  0x26   : > { %s3141_s26 = scalar_select %p2703_p5, 1, 0 }
  0x27   : > { %3140 = sst [smem:[#allocation25_spill]] %s3139_s25  ;;  %p2711_p7 = pnand %p2192_p2, %p47_p11 }
  0x28   : > { %3142 = sst [smem:[#allocation26_spill]] %s3141_s26  ;;  %s2716_s12 = smul.u32 40, %s2552_s16 }
  0x29   : > { %s385_s18 = sand.u32 1, %s2552_s16   ;;  %s3144_s1 = sld [smem:[#allocation27_spill]] }
  0x2a   : > { %s389_s6 = scalar_lea.vmem [#allocation6], %s2709_s28  ;;  %s2724_s24 = scalar_lea.sflag [#allocation7], %s385_s18 }
  0x2b   : > { %s398_s19 = sshll.u32 %s389_s6, 4  ;;  %p2328_p9 = pneg %p2711_p7  ;;  %s399_s19 = int_to_ptr.vmem [resolvable:$true] %s398_s19 }
  0x2f   : > { %s394_s11 = scalar_lea.hbm %s3144_s1, %s2716_s12 }
  0x30   : > { %s396_s3 = sshll.u32 %s394_s11, 4  ;;  %s2331_s11 = scalar_lea.hbm %s3144_s1, 80  ;;  %s397_s3 = int_to_ptr.hbm [resolvable:$true] %s396_s3 }
  0x31   : > { %s2324_s17 = sshra.s32 %s397_s3, 4  ;;  %s2325_s17 = int_to_ptr.hbm [resolvable:$true] %s2324_s17 }
  0x32   : > { %s2326_s26 = scalar_lea.hbm %s2325_s17, 40  ;;  %p2332_p13 = scmp.lt.s32.totalorder %s2325_s17, %s3144_s1 }
  0x33   : > { %p2327_p8 = scmp.ne.s32.totalorder %s2325_s17, %s2326_s26  ;;  %p2333_p0 = scmp.lt.s32.totalorder %s2331_s11, %s2326_s26 }
  0x35   : > { %p2329_p10 = pnand %p2328_p9, %p2327_p8  ;;  %p2334_p2 = por %p2333_p0, %p2332_p13 }
  0x37   : > { %p2330_p11 = pneg %p2329_p10 }
  0x39   : > { %p2335_p1 = pnand %p2334_p2, %p2330_p11 }
  0x3b   : > { %2338 = shalt.err (!%p2335_p1)
}
  0x3c   : > { %2180 = dma.hbm_to_vmem [thread:$0]  (!%p2711_p7), %s397_s3, 640, %s399_s19, %s2724_s24  }
  0x3d   : > { %s3145_s5 = sld [smem:[#allocation29_spill]]  ;;  %s2558_s30 = smov [#allocation11]  }
  0x3e   : > { %s317_s22 = sshll.u32 %s2558_s30, 4  ;;  %s3146_s8 = sld [smem:[#allocation31_spill]]  ;;  %s318_s22 = int_to_ptr.vmem [resolvable:$true] %s317_s22 }
  0x3f   : > { %s2559_s6 = smov 128   ;;  %s2560_s1 = smov 8  }
  0x40   : > { %s2561_s3 = smov [#allocation14]   ;;  %s3147_s13 = smov 4  }
  0x41   : > { %s348_s19 = sshll.u32 %s2561_s3, 4  ;;  %s3148_s18 = smov 64   ;;  %s349_s19 = int_to_ptr.vmem [resolvable:$true] %s348_s19 }
  0x42   : > { %s374_s17 = scalar_lea.hbm %s3103_s0, %s2716_s12  ;;  %s369_s26 = scalar_lea.vmem [#allocation3], %s2709_s28 }
  0x43   : > { %s315_s16 = sshll.u32 %s3145_s5, 4  ;;  %s376_s25 = sshll.u32 %s374_s17, 4  ;;  %s316_s16 = int_to_ptr.hbm [resolvable:$true] %s315_s16  ;;  %s377_s25 = int_to_ptr.hbm [resolvable:$true] %s376_s25 }
  0x44   : > { %s346_s11 = sshll.u32 %s3146_s8, 4  ;;  %s378_s8 = sshll.u32 %s369_s26, 4  ;;  %s347_s11 = int_to_ptr.hbm [resolvable:$true] %s346_s11  ;;  %s379_s8 = int_to_ptr.vmem [resolvable:$true] %s378_s8 }
  0x45   : > { %2167 = dma.hbm_to_vmem [thread:$0]  (!%p2661_p6), %s316_s16, 256, %s318_s22, [#allocation10], %s2559_s6, %s2559_s6, %s2560_s1  }
  0x46   : > { %2173 = dma.hbm_to_vmem [thread:$0]  (!%p2661_p6), %s347_s11, 1024, %s349_s19, [#allocation13], %s3148_s18, %s3148_s18, %s3147_s13  }
  0x47   : > { %s3149_s1 = sand.u32 1, %s2548_s15   ;;  %s2414_s22 = sshra.s32 %s377_s25, 4  ;;  %s2415_s22 = int_to_ptr.hbm [resolvable:$true] %s2414_s22 }
  0x48   : > { %s366_s16 = scalar_lea.sflag [#allocation4], %s3149_s1  ;;  %s2416_s6 = scalar_lea.hbm %s2415_s22, 40 }
  0x49   : > { %p2417_p1 = scmp.ne.s32.totalorder %s2415_s22, %s2416_s6  ;;  %s2421_s5 = scalar_lea.hbm %s3103_s0, 80 }
  0x4a   : > { %p2422_p6 = scmp.lt.s32.totalorder %s2415_s22, %s3103_s0  ;;  %p2423_p11 = scmp.lt.s32.totalorder %s2421_s5, %s2416_s6 }
  0x4b   : > { %p2419_p8 = pnand %p2417_p1, %p2328_p9 }
  0x4c   : > { %p2424_p13 = por %p2423_p11, %p2422_p6 }
  0x4d   : > { %p2420_p10 = pneg %p2419_p8 }
  0x4f   : > { %p2425_p0 = pnand %p2424_p13, %p2420_p10 }
  0x51   : > { %2428 = shalt.err (!%p2425_p0)
}
  0x52   : > { %2177 = dma.hbm_to_vmem [thread:$0]  (!%p2711_p7), %s377_s25, 640, %s379_s8, %s366_s16  }
  0x53   : > { %s414_s30 = scalar_lea.hbm %s3105_s2, %s2716_s12  ;;  %s409_s17 = scalar_lea.vmem [#allocation8], %s2709_s28 }
  0x54   : > { %s418_s26 = sshll.u32 %s409_s17, 4  ;;  %s416_s1 = sshll.u32 %s414_s30, 4  ;;  %s419_s26 = int_to_ptr.vmem [resolvable:$true] %s418_s26  ;;  %s417_s1 = int_to_ptr.hbm [resolvable:$true] %s416_s1 }
  0x55   : > { %s2444_s22 = sshra.s32 %s417_s1, 4  ;;  %s2451_s8 = scalar_lea.hbm %s3105_s2, 80  ;;  %s2445_s22 = int_to_ptr.hbm [resolvable:$true] %s2444_s22 }
  0x56   : > { %s2446_s6 = scalar_lea.hbm %s2445_s22, 40  ;;  %p2452_p10 = scmp.lt.s32.totalorder %s2445_s22, %s3105_s2 }
  0x57   : > { %p2447_p2 = scmp.ne.s32.totalorder %s2445_s22, %s2446_s6  ;;  %p2453_p6 = scmp.lt.s32.totalorder %s2451_s8, %s2446_s6 }
  0x59   : > { %p2449_p1 = pnand %p2447_p2, %p2328_p9  ;;  %p2454_p11 = por %p2453_p6, %p2452_p10 }
  0x5b   : > { %p2450_p8 = pneg %p2449_p1 }
  0x5d   : > { %p2455_p13 = pnand %p2454_p11, %p2450_p8 }
  0x5f   : > { %2458 = shalt.err (!%p2455_p13)
}
  0x60   : > { %2183 = dma.hbm_to_vmem [thread:$0]  (!%p2711_p7), %s417_s1, 640, %s419_s26, %s2724_s24  }
  0x61   : > { %427 = sbr.rel (%p2649_p3) target bundleno = 819 (0x333), region = 60  ;;  %s2791_s28 = sand.u32 (!%p2649_p3), 1, %s2544_s14  }
  0x62   : > { %s2136_s12 = smul.u32 (!%p2649_p3), 40, %s2791_s28  ;;  %s430_s5 = scalar_lea.sflag (!%p2649_p3), [#allocation4], %s2791_s28 }
  0x64   : > { %s2795_s3 = scalar_lea.vmem (!%p2649_p3), [#allocation3], %s2136_s12 }
  0x66   : > { %2519 = dma.done.wait (%p2692_p12), %s430_s5, 640  }
  0x67   : > { %2521 = vsyncadd (%p2692_p12), %s430_s5, 4294966656  ;;  %s439_s24 = sand.u32 1, %s2644_s20   ;;  %s2802_s29 = scalar_lea.vmem [#allocation6], %s2136_s12 }
  0x68   : > { %s440_s21 = scalar_lea.sflag [#allocation7], %s439_s24 }
  0x69   : > { %2523 = dma.done.wait (%p2692_p12), %s440_s21, 1280  }
  0x6a   : > { %2525 = vsyncadd (%p2692_p12), %s440_s21, 4294966016  ;;  %s2808_s19 = scalar_lea.vmem [#allocation8], %s2136_s12  ;;  %p3150_p3 = scmp.eq.s32.totalorder %s2644_s20, 0 }
  0x6c   : > { %2527 = dma.done.wait (%p3150_p3), [#allocation10], 2560   ;;  %p3151_p7 = pmov %p3150_p3 }
  0x6d   : > { %p3152_p9 = pmov %p3150_p3 }
  0x6e   : > { %2529 = vsyncadd (%p3151_p7), [#allocation10], 4294964736 }
  0x6f   : > { %2531 = dma.done.wait (%p3152_p9), [#allocation13], 2048   ;;  %p3153_p0 = pmov %p3150_p3 }
  0x70   : > { %v777_v0 = vld [vmem:[%s2808_s19] sm:$0xff]  ;;  %v645_v1 = vld [vmem:[%s2802_s29] sm:$0xff]  ;;  %s2562_s23 = smov 64   ;;  %s2563_s13 = smov 96   ;;  %v545_v6 = vld [vmem:[%s2795_s3 + $0x8] sm:$0xff]  ;;  %vm524_vm0 = vcmask 781312  }
  0x71   : > { %2533 = vsyncadd (%p3153_p0), [#allocation13], 4294965248  ;;  %v778_v2 = vpack.c.bf16 %v777_v0, %v777_v0  ;;  %v646_v3 = vpack.c.bf16 %v645_v1, %v645_v1  ;;  %v544_v4 = vld [vmem:[%s2795_s3] sm:$0xff]  ;;  %s2564_s18 = smov 32   ;;  %v668_v8 = vld [vmem:[%s2802_s29 + $0x8] sm:$0xff]  ;;  %v559_v14 = vpack.c.bf16 %v545_v6, %v545_v6  ;;  %vm540_vm1 = vcmask 523264  }
  0x72   : > { %v2821_v5 = vpack.c.bf16 %v544_v4, %v544_v4  ;;  %v546_v7 = vpack.c.bf16 %v545_v6, %v544_v4  ;;  %v2832_v9 = vpack.c.bf16 %v668_v8, %v645_v1  ;;  %v821_v10 = vld [vmem:[%s2808_s19 + $0x8] sm:$0xff]  ;;  %v691_v12 = vpack.c.bf16 %v668_v8, %v668_v8  ;;  %v576_v15 = vld [vmem:[%s2795_s3 + $0x10] sm:$0xff]  ;;  %v700_v17 = vld [vmem:[%s2802_s29 + $0x10] sm:$0xff]  ;;  %s1827_s27 = sshll.u32 %s2791_s28, 3  ;;  %s2069_s11 = sshll.u32 %s2644_s20, 3 }
  0x73   : > { %780 = vrot.lane.b32.xlu1 %v778_v2, %s2562_s23  ;;  %648 = vrot.lane.b32.xlu0 %v646_v3, %s2563_s13  ;;  %v2835_v11 = vpack.c.bf16 %v821_v10, %v777_v0  ;;  %v822_v13 = vpack.c.bf16 %v821_v10, %v821_v10  ;;  %v577_v16 = vpack.c.bf16 %v576_v15, %v545_v6  ;;  %v853_v19 = vld [vmem:[%s2808_s19 + $0x10] sm:$0xff]  ;;  %v2103_v23 = vld [vmem:[#allocation9 + $0x38] sm:$0xff]  ;;  %v2102_v25 = vld [vmem:[#allocation9 + $0x30] sm:$0xff]  ;;  %vm654_vm2 = vcmask 1044224   ;;  %s1656_s16 = scalar_lea.hbm %s3113_s10, %s2069_s11  ;;  %s520_s12 = scalar_lea.vmem [#allocation15], %s1827_s27 }
  0x74   : > { %529 = vrot.lane.b32.xlu2 %v2821_v5, %s2563_s13  ;;  %v2850_v18 = vpack.c.bf16 %v700_v17, %v668_v8  ;;  %v2853_v20 = vpack.c.bf16 %v853_v19, %v821_v10  ;;  %v723_v21 = vpack.c.bf16 %v700_v17, %v700_v17  ;;  %v854_v22 = vpack.c.bf16 %v853_v19, %v853_v19  ;;  %v2111_v24 = vld [vmem:[#allocation9 + $0x78] sm:$0xff]  ;;  %v2110_v26 = vld [vmem:[#allocation9 + $0x70] sm:$0xff]  ;;  %v2101_v29 = vld [vmem:[#allocation9 + $0x28] sm:$0xff]  ;;  %s1658_s5 = sshll.u32 %s520_s12, 4  ;;  %s1646_s20 = scalar_lea.sflag [#allocation5], %s2791_s28  ;;  %s1659_s5 = int_to_ptr.vmem [resolvable:$true] %s1658_s5 }
  0x75   : > { %1233 = vmatpush.bf16.msra.mxu0 %v2103_v23  ;;  %1282 = vmatpush.bf16.msra.mxu1 %v2111_v24  ;;  %v589_v27 = vpack.c.bf16 %v576_v15, %v576_v15  ;;  %v606_v28 = vld [vmem:[%s2795_s3 + $0x18] sm:$0xff]  ;;  %v732_v32 = vld [vmem:[%s2802_s29 + $0x18] sm:$0xff]  ;;  %v636_v39 = vld [vmem:[%s2795_s3 + $0x20] sm:$0xff]  ;;  %525 = vst.msk [vmem:[#allocation2] sm:$0xf] %vm524_vm0, %v2821_v5  ;;  %vm655_vm3 = vcmask 523268  }
  0x76   : > { %v2109_v30 = vld [vmem:[#allocation9 + $0x68] sm:$0xff]  ;;  %v607_v31 = vpack.c.bf16 %v606_v28, %v576_v15  ;;  %v2868_v33 = vpack.c.bf16 %v732_v32, %v700_v17  ;;  %v755_v36 = vpack.c.bf16 %v732_v32, %v732_v32  ;;  %v619_v38 = vpack.c.bf16 %v606_v28, %v606_v28  ;;  %v2100_v40 = vld [vmem:[#allocation9 + $0x20] sm:$0xff]  ;;  %557 = vst.msk [vmem:[#allocation2 + $0x30] sm:$0xf] %vm524_vm0, %v559_v14  ;;  %v2099_v45 = vld [vmem:[#allocation9 + $0x18] sm:$0xff]  ;;  %s1660_s3 = sshll.u32 %s1656_s16, 4  ;;  %s1661_s3 = int_to_ptr.hbm [resolvable:$true] %s1660_s3 }
  0x77   : > { %v885_v34 = vld [vmem:[%s2808_s19 + $0x18] sm:$0xff]  ;;  %v637_v41 = vpack.c.bf16 %v636_v39, %v606_v28  ;;  %v764_v42 = vld [vmem:[%s2802_s29 + $0x20] sm:$0xff]  ;;  %v2107_v46 = vld [vmem:[#allocation9 + $0x58] sm:$0xff]  ;;  %587 = vst.msk [vmem:[#allocation2 + $0x60] sm:$0xf] %vm524_vm0, %v589_v27  ;;  %vm785_vm4 = vcmask 1043968  }
  0x78   : > { %v2871_v35 = vpack.c.bf16 %v885_v34, %v853_v19  ;;  %v886_v37 = vpack.c.bf16 %v885_v34, %v885_v34  ;;  %v2108_v43 = vld [vmem:[#allocation9 + $0x60] sm:$0xff]  ;;  %v2887_v44 = vpack.c.bf16 %v764_v42, %v732_v32  ;;  %617 = vst.msk [vmem:[#allocation2 + $0x90] sm:$0xf] %vm524_vm0, %v619_v38  ;;  %v2098_v48 = vld [vmem:[#allocation9 + $0x10] sm:$0xff]  ;;  %v2097_v50 = vld [vmem:[#allocation9 + $0x8] sm:$0xff]  ;;  %vm786_vm5 = vcmask 261124  }
  0x79   : > { %1234 = vmatpush.bf16.msra.mxu0 %v2102_v25  ;;  %1283 = vmatpush.bf16.msra.mxu1 %v2110_v26  ;;  %v2106_v49 = vld [vmem:[#allocation9 + $0x50] sm:$0xff]  ;;  %v2105_v51 = vld [vmem:[#allocation9 + $0x48] sm:$0xff]  ;;  %v2096_v54 = vld [vmem:[#allocation9] sm:$0xff]  ;;  %vm651_vm6 = vcmask 785408   ;;  %vm551_vm9 = vcmask 261120   ;;  %s2488_s21 = sshra.s32 %s1661_s3, 4  ;;  %s2489_s21 = int_to_ptr.hbm [resolvable:$true] %s2488_s21 }
  0x7a   : > { %v2113_v52 = vld [vmem:[#allocation9 + $0x88] sm:$0xff]  ;;  %v2104_v56 = vld [vmem:[#allocation9 + $0x40] sm:$0xff]  ;;  %v899_v59 = vld [vmem:[%s2808_s19 + $0x20] sm:$0xff]  ;;  %s2490_s29 = scalar_lea.hbm %s2489_s21, 8  ;;  %p2495_p8 = scmp.lt.s32.totalorder %s2489_s21, %s3113_s10 }
  0x7b   : > { %792 = vrot.lane.b32.xlu1 %v778_v2, %s2564_s18  ;;  %661 = vrot.lane.b32.xlu0 %v646_v3, %s2562_s23  ;;  %v2112_v57 = vld [vmem:[#allocation9 + $0x80] sm:$0xff]  ;;  %v2900_v60 = vpack.c.bf16 %v899_v59, %v885_v34  ;;  %vm2904_vm7 = vmor %vm655_vm3, %vm654_vm2  ;;  %p2491_p12 = scmp.ne.s32.totalorder %s2489_s21, %s2490_s29 }
  0x7c   : > { %537 = vrot.lane.b32.xlu2 %v546_v7, %s2562_s23  ;;  %1337 = vmatpush.bf16.msra.mxu2 %v2113_v52  ;;  %vm2908_vm8 = vmor %vm786_vm5, %vm785_vm4 }
  0x7d   : > { %1235 = vmatpush.bf16.msra.mxu0 %v2101_v29  ;;  %1284 = vmatpush.bf16.msra.mxu1 %v2109_v30  ;;  %p2492_p2 = pnand %p2491_p12, %p2699_p4 }
  0x7f   : > { %p2493_p1 = pneg %p2492_p2 }
  0x80   : > { %1338 = vmatpush.bf16.msra.mxu2 %v2112_v57 }
  0x81   : > { %1236 = vmatpush.bf16.msra.mxu0 %v2100_v40  ;;  %1285 = vmatpush.bf16.msra.mxu1 %v2108_v43 }
  0x83   : > { %671 = vrot.lane.b32.xlu1 %v2832_v9, %s2564_s18  ;;  %548 = vrot.lane.b32.xlu0 %v546_v7, %s2564_s18 }
  0x84   : > { %806 = vrot.lane.b32.xlu2 %v2835_v11, %s2563_s13 }
  0x85   : > { %1237 = vmatpush.bf16.msra.mxu0 %v2099_v45  ;;  %1286 = vmatpush.bf16.msra.mxu1 %v2107_v46 }
  0x89   : > { %1238 = vmatpush.bf16.msra.mxu0 %v2098_v48  ;;  %1287 = vmatpush.bf16.msra.mxu1 %v2106_v49 }
  0x8b   : > { %693 = vrot.lane.b32.xlu1 %v691_v12, %s2562_s23  ;;  %684 = vrot.lane.b32.xlu0 %v691_v12, %s2563_s13 }
  0x8c   : > { %815 = vrot.lane.b32.xlu2 %v822_v13, %s2562_s23 }
  0x8d   : > { %1239 = vmatpush.bf16.msra.mxu0 %v2097_v50  ;;  %1288 = vmatpush.bf16.msra.mxu1 %v2105_v51 }
  0x91   : > { %1240 = vmatpush.bf16.msra.mxu0 %v2096_v54  ;;  %1289 = vmatpush.bf16.msra.mxu1 %v2104_v56 }
  0x93   : > { %561 = vrot.lane.b32.xlu1 %v559_v14, %s2563_s13  ;;  %824 = vrot.lane.b32.xlu0 %v822_v13, %s2564_s18 }
  0x94   : > { %569 = vrot.lane.b32.xlu2 %v577_v16, %s2562_s23 }
  0x9b   : > { %703 = vrot.lane.b32.xlu1 %v2850_v18, %s2564_s18  ;;  %579 = vrot.lane.b32.xlu0 %v577_v16, %s2564_s18 }
  0x9c   : > { %838 = vrot.lane.b32.xlu2 %v2853_v20, %s2563_s13 }
  0xa3   : > { %725 = vrot.lane.b32.xlu1 %v723_v21, %s2562_s23  ;;  %716 = vrot.lane.b32.xlu0 %v723_v21, %s2563_s13 }
  0xa4   : > { %847 = vrot.lane.b32.xlu2 %v854_v22, %s2562_s23 }
  0xab   : > { %591 = vrot.lane.b32.xlu1 %v589_v27, %s2563_s13  ;;  %856 = vrot.lane.b32.xlu0 %v854_v22, %s2564_s18 }
  0xac   : > { %599 = vrot.lane.b32.xlu2 %v607_v31, %s2562_s23 }
  0xb3   : > { %735 = vrot.lane.b32.xlu1 %v2868_v33, %s2564_s18  ;;  %609 = vrot.lane.b32.xlu0 %v607_v31, %s2564_s18 }
  0xb4   : > { %870 = vrot.lane.b32.xlu2 %v2871_v35, %s2563_s13 }
  0xbb   : > { %757 = vrot.lane.b32.xlu1 %v755_v36, %s2562_s23  ;;  %748 = vrot.lane.b32.xlu0 %v755_v36, %s2563_s13 }
  0xbc   : > { %879 = vrot.lane.b32.xlu2 %v886_v37, %s2562_s23 }
  0xc3   : > { %621 = vrot.lane.b32.xlu1 %v619_v38, %s2563_s13  ;;  %888 = vrot.lane.b32.xlu0 %v886_v37, %s2564_s18 }
  0xc4   : > { %629 = vrot.lane.b32.xlu2 %v637_v41, %s2562_s23 }
  0xcb   : > { %639 = vrot.lane.b32.xlu0 %v637_v41, %s2564_s18  ;;  %767 = vrot.lane.b32.xlu1 %v2887_v44, %s2564_s18 }
  0xcc   : > { %902 = vrot.lane.b32.xlu2 %v2900_v60, %s2563_s13  ;;  %s2494_s13 = scalar_lea.hbm %s3113_s10, 16 }
  0xcd   : > { %p2496_p10 = scmp.lt.s32.totalorder %s2494_s13, %s2490_s29 }
  0xce   : > { %v530_v47 = vpop.permute.xlu2 %529 }
  0xcf   : > { %532 = vst.msk [vmem:[#allocation2 + $0xc] sm:$0xf] %vm524_vm0, %v530_v47  ;;  %p2497_p6 = por %p2496_p10, %p2495_p8 }
  0xd1   : > { %p2498_p11 = pnand %p2497_p6, %p2493_p1 }
  0xd6   : > { %v538_v53 = vpop.permute.xlu2 %537 }
  0xd7   : > { %v539_v55 = vrot.slane %v538_v53, 4 }
  0xd9   : > { %v541_v58 = vsel %vm540_vm1, %v538_v53, %v539_v55 }
  0xda   : > { %543 = vst.msk [vmem:[#allocation2 + $0x18] sm:$0xf] %vm524_vm0, %v541_v58 }
  0xde   : > { %v807_v61 = vpop.permute.xlu2 %806 }
  0xdf   : > { %v808_v23 = vrot.slane %v807_v61, 4 }
  0xe1   : > { %v809_v36 = vsel %vm651_vm6, %v807_v61, %v808_v23 }
  0xe5   : > { %v781_v62 = vpop.permute.xlu1 %780  ;;  %v649_v63 = vpop.permute.xlu0 %648 }
  0xe6   : > { %v782_v0 = vrot.slane %v781_v62, 4  ;;  %v650_v2 = vrot.slane %v649_v63, 4  ;;  %v816_v6 = vpop.permute.xlu2 %815 }
  0xe7   : > { %v817_v39 = vrot.slane %v816_v6, 4 }
  0xe8   : > { %v783_v4 = vsel %vm540_vm1, %v782_v0, %v781_v62  ;;  %v652_v5 = vsel %vm651_vm6, %v650_v2, %v649_v63 }
  0xe9   : > { %657 = vst.msk [vmem:[#allocation2] sm:$0xff] %vm2904_vm7, %v652_v5  ;;  %v818_v42 = vsel %vm540_vm1, %v817_v39, %v816_v6 }
  0xea   : > { %788 = vst.msk [vmem:[#allocation2 + $0x4] sm:$0xff] %vm2908_vm8, %v783_v4 }
  0xed   : > { %v793_v7 = vpop.permute.xlu1 %792  ;;  %v662_v8 = vpop.permute.xlu0 %661 }
  0xee   : > { %v794_v10 = vrot.slane %v793_v7, 4  ;;  %v663_v12 = vrot.slane %v662_v8, 4  ;;  %v570_v15 = vpop.permute.xlu2 %569 }
  0xef   : > { %v571_v16 = vrot.slane %v570_v15, 4 }
  0xf0   : > { %v795_v13 = vsel %vm551_vm9, %v794_v10, %v793_v7  ;;  %v664_v14 = vsel %vm540_vm1, %v663_v12, %v662_v8  ;;  %v1830_v25 = vld [vmem:[#allocation2] sm:$0xf] }
  0xf1   : > { %666 = vst.msk [vmem:[#allocation2 + $0xc] sm:$0xff] %vm2904_vm7, %v664_v14  ;;  %v572_v24 = vsel %vm540_vm1, %v570_v15, %v571_v16  ;;  %v2072_v29 = vld [vmem:[#allocation2 + $0x4] sm:$0xf]  ;;  %v1838_v30 = vld [vmem:[#allocation2 + $0x8] sm:$0xf] }
  0xf2   : > { %797 = vst.msk [vmem:[#allocation2 + $0x10] sm:$0xff] %vm2908_vm8, %v795_v13 }
  0xf3   : > { %574 = vst.msk [vmem:[#allocation2 + $0x48] sm:$0xf] %vm524_vm0, %v572_v24 }
  0xf5   : > { %v672_v17 = vpop.permute.xlu1 %671  ;;  %v549_v19 = vpop.permute.xlu0 %548 }
  0xf6   : > { %v673_v21 = vrot.slane %v672_v17, 4  ;;  %v550_v22 = vrot.slane %v549_v19, 4 }
  0xf8   : > { %v674_v26 = vsel %vm551_vm9, %v673_v21, %v672_v17  ;;  %v552_v27 = vsel %vm551_vm9, %v549_v19, %v550_v22  ;;  %v2073_v28 = vld [vmem:[#allocation2 + $0x8] sm:$0xf0] }
  0xf9   : > { %676 = vst.msk [vmem:[#allocation2 + $0x18] sm:$0xff] %vm2904_vm7, %v674_v26  ;;  %v1831_v31 = vor.u32 %v2073_v28, %v1830_v25  ;;  %v1832_v32 = vld [vmem:[#allocation2 + $0xc] sm:$0xf0]  ;;  %v2074_v34 = vld [vmem:[#allocation2 + $0x10] sm:$0xf0] }
  0xfa   : > { %801 = vst.msk [vmem:[#allocation2 + $0x1c] sm:$0xff] %vm2908_vm8, %v2835_v11  ;;  %v1835_v37 = vor.u32 %v2072_v29, %v1832_v32  ;;  %v1839_v38 = vor.u32 %v2074_v34, %v1838_v30 }
  0xfb   : > { %554 = vst.msk [vmem:[#allocation2 + $0x24] sm:$0xf] %vm524_vm0, %v552_v27  ;;  %1241 = vmatmul.bf16.vlgmr.msra.gmra.mxu0 %v1831_v31 }
  0xfc   : > { %680 = vst.msk [vmem:[#allocation2 + $0x24] sm:$0xff] %vm2904_vm7, %v2832_v9  ;;  %1290 = vmatmul.bf16.vlgmr.msra.gmra.mxu1 %v1835_v37  ;;  %1996 = vmatmul.msk.bf16.vlgmr.msra.gmra.mxu2 %vm551_vm9, %v1839_v38  ;;  %v839_v9 = vpop.permute.xlu2 %838 }
  0xfd   : > { %811 = vst.msk [vmem:[#allocation2 + $0x28] sm:$0xff] %vm2908_vm8, %v809_v36  ;;  %v694_v40 = vpop.permute.xlu1 %693  ;;  %v685_v11 = vpop.permute.xlu0 %684  ;;  %v840_v4 = vrot.slane %v839_v9, 4 }
  0xfe   : > { %v686_v41 = vrot.slane %v685_v11, 4  ;;  %v695_v43 = vrot.slane %v694_v40, 4 }
  0xff   : > { %v841_v7 = vsel %vm651_vm6, %v839_v9, %v840_v4 }
 0x100   : > { %v687_v45 = vsel %vm651_vm6, %v686_v41, %v685_v11  ;;  %v696_v46 = vsel %vm540_vm1, %v695_v43, %v694_v40  ;;  %v1842_v48 = vld [vmem:[#allocation2 + $0x18] sm:$0xf] }
 0x101   : > { %689 = vst.msk [vmem:[#allocation2 + $0x30] sm:$0xff] %vm2904_vm7, %v687_v45  ;;  %v2075_v50 = vld [vmem:[#allocation2 + $0x1c] sm:$0xf]  ;;  %v1850_v51 = vld [vmem:[#allocation2 + $0x20] sm:$0xf] }
 0x102   : > { %820 = vst.msk [vmem:[#allocation2 + $0x34] sm:$0xff] %vm2908_vm8, %v818_v42 }
 0x103   : > { %v2076_v52 = vld [vmem:[#allocation2 + $0x20] sm:$0xf0] }
 0x104   : > { %v1844_v54 = vld [vmem:[#allocation2 + $0x24] sm:$0xf0]  ;;  %v2077_v55 = vld [vmem:[#allocation2 + $0x28] sm:$0xf0]  ;;  %v1843_v57 = vor.u32 %v2076_v52, %v1842_v48  ;;  %v848_v61 = vpop.permute.xlu2 %847 }
 0x105   : > { %v562_v47 = vpop.permute.xlu1 %561  ;;  %v825_v49 = vpop.permute.xlu0 %824  ;;  %v1847_v58 = vor.u32 %v2075_v50, %v1844_v54  ;;  %v1851_v59 = vor.u32 %v2077_v55, %v1850_v51  ;;  %v849_v8 = vrot.slane %v848_v61, 4 }
 0x106   : > { %564 = vst.msk [vmem:[#allocation2 + $0x3c] sm:$0xf] %vm524_vm0, %v562_v47  ;;  %v826_v53 = vrot.slane %v825_v49, 4 }
 0x107   : > { %698 = vst.msk [vmem:[#allocation2 + $0x3c] sm:$0xff] %vm2904_vm7, %v696_v46  ;;  %v850_v24 = vsel %vm540_vm1, %v849_v8, %v848_v61 }
 0x108   : > { %v827_v56 = vsel %vm551_vm9, %v826_v53, %v825_v49  ;;  %v1854_v13 = vld [vmem:[#allocation2 + $0x30] sm:$0xf] }
 0x109   : > { %829 = vst.msk [vmem:[#allocation2 + $0x40] sm:$0xff] %vm2908_vm8, %v827_v56  ;;  %v2078_v14 = vld [vmem:[#allocation2 + $0x34] sm:$0xf] }
 0x10b   : > { %1246 = vmatmul.bf16.gmra.mxu0 %v1843_v57 }
 0x10c   : > { %1295 = vmatmul.bf16.gmra.mxu1 %v1847_v58  ;;  %1997 = vmatmul.msk.bf16.gmra.mxu2 %vm551_vm9, %v1851_v59  ;;  %v600_v10 = vpop.permute.xlu2 %599 }
 0x10d   : > { %v704_v62 = vpop.permute.xlu1 %703  ;;  %v580_v63 = vpop.permute.xlu0 %579  ;;  %v601_v12 = vrot.slane %v600_v10, 4 }
 0x10e   : > { %v705_v0 = vrot.slane %v704_v62, 4  ;;  %v581_v2 = vrot.slane %v580_v63, 4  ;;  %v2079_v17 = vld [vmem:[#allocation2 + $0x38] sm:$0xf0] }
 0x10f   : > { %v602_v21 = vsel %vm540_vm1, %v600_v10, %v601_v12  ;;  %v1855_v26 = vor.u32 %v2079_v17, %v1854_v13 }
 0x110   : > { %v706_v5 = vsel %vm551_vm9, %v705_v0, %v704_v62  ;;  %v582_v6 = vsel %vm551_vm9, %v580_v63, %v581_v2  ;;  %v1856_v22 = vld [vmem:[#allocation2 + $0x3c] sm:$0xf0]  ;;  %v2080_v23 = vld [vmem:[#allocation2 + $0x40] sm:$0xf0]  ;;  %604 = vst.msk [vmem:[#allocation2 + $0x78] sm:$0xf] %vm524_vm0, %v602_v21 }
 0x111   : > { %708 = vst.msk [vmem:[#allocation2 + $0x48] sm:$0xff] %vm2904_vm7, %v706_v5  ;;  %v1859_v27 = vor.u32 %v2078_v14, %v1856_v22 }
 0x112   : > { %833 = vst.msk [vmem:[#allocation2 + $0x4c] sm:$0xff] %vm2908_vm8, %v2853_v20  ;;  %v1862_v20 = vld [vmem:[#allocation2 + $0x38] sm:$0xf] }
 0x113   : > { %584 = vst.msk [vmem:[#allocation2 + $0x54] sm:$0xf] %vm524_vm0, %v582_v6  ;;  %v1863_v28 = vor.u32 %v2080_v23, %v1862_v20 }
 0x114   : > { %712 = vst.msk [vmem:[#allocation2 + $0x54] sm:$0xff] %vm2904_vm7, %v2850_v18  ;;  %v871_v36 = vpop.permute.xlu2 %870 }
 0x115   : > { %843 = vst.msk [vmem:[#allocation2 + $0x58] sm:$0xff] %vm2908_vm8, %v841_v7  ;;  %v726_v15 = vpop.permute.xlu1 %725  ;;  %v717_v16 = vpop.permute.xlu0 %716  ;;  %v872_v43 = vrot.slane %v871_v36, 4 }
 0x116   : > { %v718_v19 = vrot.slane %v717_v16, 4  ;;  %v727_v18 = vrot.slane %v726_v15, 4 }
 0x117   : > { %v873_v52 = vsel %vm651_vm6, %v871_v36, %v872_v43 }
 0x118   : > { %v719_v25 = vsel %vm651_vm6, %v718_v19, %v717_v16  ;;  %v728_v29 = vsel %vm540_vm1, %v727_v18, %v726_v15  ;;  %v1866_v37 = vld [vmem:[#allocation2 + $0x48] sm:$0xf] }
 0x119   : > { %721 = vst.msk [vmem:[#allocation2 + $0x60] sm:$0xff] %vm2904_vm7, %v719_v25  ;;  %v2081_v38 = vld [vmem:[#allocation2 + $0x4c] sm:$0xf]  ;;  %v1874_v9 = vld [vmem:[#allocation2 + $0x50] sm:$0xf] }
 0x11a   : > { %852 = vst.msk [vmem:[#allocation2 + $0x64] sm:$0xff] %vm2908_vm8, %v850_v24 }
 0x11b   : > { %1251 = vmatmul.bf16.gmra.mxu0 %v1855_v26  ;;  %v2082_v11 = vld [vmem:[#allocation2 + $0x50] sm:$0xf0] }
 0x11c   : > { %1300 = vmatmul.bf16.gmra.mxu1 %v1859_v27  ;;  %1998 = vmatmul.msk.bf16.gmra.mxu2 %vm551_vm9, %v1863_v28  ;;  %v1868_v45 = vld [vmem:[#allocation2 + $0x54] sm:$0xf0]  ;;  %v2083_v46 = vld [vmem:[#allocation2 + $0x58] sm:$0xf0]  ;;  %v1867_v49 = vor.u32 %v2082_v11, %v1866_v37  ;;  %v880_v53 = vpop.permute.xlu2 %879 }
 0x11d   : > { %v592_v30 = vpop.permute.xlu1 %591  ;;  %v857_v31 = vpop.permute.xlu0 %856  ;;  %v1871_v50 = vor.u32 %v2081_v38, %v1868_v45  ;;  %v1875_v51 = vor.u32 %v2083_v46, %v1874_v9  ;;  %v881_v54 = vrot.slane %v880_v53, 4 }
 0x11e   : > { %594 = vst.msk [vmem:[#allocation2 + $0x6c] sm:$0xf] %vm524_vm0, %v592_v30  ;;  %v858_v32 = vrot.slane %v857_v31, 4 }
 0x11f   : > { %730 = vst.msk [vmem:[#allocation2 + $0x6c] sm:$0xff] %vm2904_vm7, %v728_v29  ;;  %v882_v57 = vsel %vm540_vm1, %v881_v54, %v880_v53 }
 0x120   : > { %v859_v34 = vsel %vm551_vm9, %v858_v32, %v857_v31  ;;  %v1878_v63 = vld [vmem:[#allocation2 + $0x60] sm:$0xf] }
 0x121   : > { %861 = vst.msk [vmem:[#allocation2 + $0x70] sm:$0xff] %vm2908_vm8, %v859_v34  ;;  %v2084_v0 = vld [vmem:[#allocation2 + $0x64] sm:$0xf]  ;;  %v1886_v2 = vld [vmem:[#allocation2 + $0x68] sm:$0xf] }
 0x124   : > { %v630_v61 = vpop.permute.xlu2 %629 }
 0x125   : > { %v736_v39 = vpop.permute.xlu1 %735  ;;  %v610_v40 = vpop.permute.xlu0 %609  ;;  %v631_v62 = vrot.slane %v630_v61, 4 }
 0x126   : > { %v737_v41 = vrot.slane %v736_v39, 4  ;;  %v611_v42 = vrot.slane %v610_v40, 4  ;;  %v2085_v6 = vld [vmem:[#allocation2 + $0x68] sm:$0xf0] }
 0x127   : > { %v632_v8 = vsel %vm540_vm1, %v630_v61, %v631_v62  ;;  %v1879_v14 = vor.u32 %v2085_v6, %v1878_v63 }
 0x128   : > { %v738_v47 = vsel %vm551_vm9, %v737_v41, %v736_v39  ;;  %v612_v48 = vsel %vm551_vm9, %v610_v40, %v611_v42  ;;  %v1880_v10 = vld [vmem:[#allocation2 + $0x6c] sm:$0xf0]  ;;  %v2086_v12 = vld [vmem:[#allocation2 + $0x70] sm:$0xf0]  ;;  %634 = vst.msk [vmem:[#allocation2 + $0xa8] sm:$0xf] %vm524_vm0, %v632_v8 }
 0x129   : > { %740 = vst.msk [vmem:[#allocation2 + $0x78] sm:$0xff] %vm2904_vm7, %v738_v47  ;;  %v1883_v15 = vor.u32 %v2084_v0, %v1880_v10  ;;  %v1887_v16 = vor.u32 %v2086_v12, %v1886_v2  ;;  %v2243_v2 = vld [vmem:[#allocation11 + $0x1] ss:$0 sm:$0xff] }
 0x12a   : > { %865 = vst.msk [vmem:[#allocation2 + $0x7c] sm:$0xff] %vm2908_vm8, %v2871_v35 }
 0x12b   : > { %1256 = vmatmul.bf16.gmra.mxu0 %v1867_v49  ;;  %614 = vst.msk [vmem:[#allocation2 + $0x84] sm:$0xf] %vm524_vm0, %v612_v48 }
 0x12c   : > { %1305 = vmatmul.bf16.gmra.mxu1 %v1871_v50  ;;  %1999 = vmatmul.msk.bf16.gmra.mxu2 %vm551_vm9, %v1875_v51  ;;  %744 = vst.msk [vmem:[#allocation2 + $0x84] sm:$0xff] %vm2904_vm7, %v2868_v33  ;;  %v903_v17 = vpop.permute.xlu2 %902  ;;  %v3036_v50 = vld [vmem:[%s3107_s4] ss:$0 sm:$0xff] }
 0x12d   : > { %875 = vst.msk [vmem:[#allocation2 + $0x88] sm:$0xff] %vm2908_vm8, %v873_v52  ;;  %v758_v55 = vpop.permute.xlu1 %757  ;;  %v749_v56 = vpop.permute.xlu0 %748  ;;  %v904_v23 = vrot.slane %v903_v17, 4 }
 0x12e   : > { %v750_v35 = vrot.slane %v749_v56, 4  ;;  %v759_v58 = vrot.slane %v758_v55, 4 }
 0x12f   : > { %v905_v25 = vsel %vm651_vm6, %v903_v17, %v904_v23 }
 0x130   : > { %v751_v59 = vsel %vm651_vm6, %v750_v35, %v749_v56  ;;  %v760_v33 = vsel %vm540_vm1, %v759_v58, %v758_v55  ;;  %v1890_v26 = vld [vmem:[#allocation2 + $0x78] sm:$0xf] }
 0x131   : > { %753 = vst.msk [vmem:[#allocation2 + $0x90] sm:$0xff] %vm2904_vm7, %v751_v59  ;;  %v2087_v28 = vld [vmem:[#allocation2 + $0x7c] sm:$0xf]  ;;  %v1898_v30 = vld [vmem:[#allocation2 + $0x80] sm:$0xf] }
 0x132   : > { %884 = vst.msk [vmem:[#allocation2 + $0x94] sm:$0xff] %vm2908_vm8, %v882_v57 }
 0x133   : > { %v2088_v27 = vld [vmem:[#allocation2 + $0x80] sm:$0xf0] }
 0x134   : > { %v1892_v29 = vld [vmem:[#allocation2 + $0x84] sm:$0xf0]  ;;  %v2089_v31 = vld [vmem:[#allocation2 + $0x88] sm:$0xf0]  ;;  %v1891_v32 = vor.u32 %v2088_v27, %v1890_v26  ;;  %v2245_v26 = vld [vmem:[#allocation11 + $0x3] ss:$0 sm:$0xff] }
 0x135   : > { %v622_v4 = vpop.permute.xlu1 %621  ;;  %v889_v5 = vpop.permute.xlu0 %888  ;;  %v1899_v34 = vor.u32 %v2089_v31, %v1898_v30 }
 0x136   : > { %624 = vst.msk [vmem:[#allocation2 + $0x9c] sm:$0xf] %vm524_vm0, %v622_v4  ;;  %v890_v7 = vrot.slane %v889_v5, 4 }
 0x137   : > { %762 = vst.msk [vmem:[#allocation2 + $0x9c] sm:$0xff] %vm2904_vm7, %v760_v33  ;;  %v2242_v33 = vld [vmem:[#allocation11] ss:$0 sm:$0xff] }
 0x138   : > { %v891_v13 = vsel %vm551_vm9, %v890_v7, %v889_v5  ;;  %v1902_v1 = vld [vmem:[#allocation2 + $0x90] sm:$0xf] }
 0x139   : > { %893 = vst.msk [vmem:[#allocation2 + $0xa0] sm:$0xff] %vm2908_vm8, %v891_v13  ;;  %v2090_v37 = vld [vmem:[#allocation2 + $0x94] sm:$0xf]  ;;  %v1910_v38 = vld [vmem:[#allocation2 + $0x98] sm:$0xf] }
 0x13b   : > { %1261 = vmatmul.bf16.gmra.mxu0 %v1879_v14 }
 0x13c   : > { %1310 = vmatmul.bf16.gmra.mxu1 %v1883_v15  ;;  %2000 = vmatmul.msk.bf16.gmra.mxu2 %vm551_vm9, %v1887_v16  ;;  %v2244_v16 = vld [vmem:[#allocation11 + $0x2] ss:$0 sm:$0xff] }
 0x13d   : > { %v640_v20 = vpop.permute.xlu0 %639  ;;  %v768_v19 = vpop.permute.xlu1 %767 }
 0x13e   : > { %v641_v21 = vrot.slane %v640_v20, 4  ;;  %v769_v22 = vrot.slane %v768_v19, 4  ;;  %v2091_v36 = vld [vmem:[#allocation2 + $0x98] sm:$0xf0] }
 0x13f   : > { %v1903_v39 = vor.u32 %v2091_v36, %v1902_v1  ;;  %v2246_v36 = vld [vmem:[#allocation11 + $0x4] ss:$0 sm:$0xff] }
 0x140   : > { %v642_v24 = vsel %vm551_vm9, %v640_v20, %v641_v21  ;;  %v770_v18 = vsel %vm551_vm9, %v769_v22, %v768_v19  ;;  %v2092_v3 = vld [vmem:[#allocation2 + $0xa0] sm:$0xf0] }
 0x141   : > { %644 = vst.msk [vmem:[#allocation2 + $0xb4] sm:$0xf] %vm524_vm0, %v642_v24  ;;  %v1911_v11 = vor.u32 %v2092_v3, %v1910_v38 }
 0x142   : > { %776 = vst.msk [vmem:[#allocation2 + $0xb4] sm:$0xff] %vm2904_vm7, %v2887_v44  ;;  %v1895_v44 = vor.u32 %v2087_v28, %v1892_v29 }
 0x143   : > { %772 = vst.msk [vmem:[#allocation2 + $0xa8] sm:$0xff] %vm2904_vm7, %v770_v18 }
 0x144   : > { %897 = vst.msk [vmem:[#allocation2 + $0xac] sm:$0xff] %vm2908_vm8, %v2900_v60  ;;  %v1904_v60 = vld [vmem:[#allocation2 + $0x9c] sm:$0xf0] }
 0x145   : > { %907 = vst.msk [vmem:[#allocation2 + $0xb8] sm:$0xff] %vm2908_vm8, %v905_v25  ;;  %v1907_v40 = vor.u32 %v2090_v37, %v1904_v60 }
 0x149   : > { %v2094_v42 = vld [vmem:[#allocation2 + $0xb0] sm:$0xf0] }
 0x14a   : > { %v1914_v41 = vld [vmem:[#allocation2 + $0xa8] sm:$0xf] }
 0x14b   : > { %1266 = vmatmul.bf16.gmra.mxu0 %v1891_v32  ;;  %v2093_v43 = vld [vmem:[#allocation2 + $0xac] sm:$0xf]  ;;  %v1922_v9 = vld [vmem:[#allocation2 + $0xb0] sm:$0xf]  ;;  %v1915_v47 = vor.u32 %v2094_v42, %v1914_v41 }
 0x14c   : > { %1315 = vmatmul.bf16.gmra.mxu1 %v1895_v44  ;;  %2001 = vmatmul.msk.bf16.gmra.mxu2 %vm551_vm9, %v1899_v34  ;;  %v1916_v45 = vld [vmem:[#allocation2 + $0xb4] sm:$0xf0]  ;;  %v2095_v46 = vld [vmem:[#allocation2 + $0xb8] sm:$0xf0] }
 0x14d   : > { %v1919_v48 = vor.u32 %v2093_v43, %v1916_v45  ;;  %v1923_v49 = vor.u32 %v2095_v46, %v1922_v9 }
 0x15b   : > { %1271 = vmatmul.bf16.gmra.mxu0 %v1903_v39 }
 0x15c   : > { %1320 = vmatmul.bf16.gmra.mxu1 %v1907_v40  ;;  %2002 = vmatmul.msk.bf16.gmra.mxu2 %vm551_vm9, %v1911_v11 }
 0x16b   : > { %1276 = vmatmul.bf16.gmra.mxu0 %v1915_v47 }
 0x16c   : > { %1325 = vmatmul.bf16.gmra.mxu1 %v1919_v48  ;;  %2003 = vmatmul.msk.bf16.gmra.mxu2 %vm551_vm9, %v1923_v49 }
 0x178   : > { %v1242_v51 = vpop.f32.mrf.mxu0 }
 0x179   : > { %v1243_v52 = vadd.f32 %v3036_v50, %v1242_v51  ;;  %v1291_v53 = vpop.f32.mrf.mxu1 }
 0x17b   : > { %v1292_v54 = vadd.f32 %v1291_v53, %v1243_v52  ;;  %v2121_v52 = vld [vmem:[#allocation12 + $0x38] sm:$0xff]  ;;  %v2120_v53 = vld [vmem:[#allocation12 + $0x30] sm:$0xff] }
 0x17c   : > { %1529 = vmatpush.bf16.msra.mxu3 %v2121_v52 }
 0x17f   : > { %v1340_v55 = vpop.f32.mrf.mxu2 }
 0x180   : > { %v1341_v56 = vadd.f32 %v1340_v55, %v1292_v54  ;;  %v1244_v35 = vpop.f32.mrf.mxu0  ;;  %1530 = vmatpush.bf16.msra.mxu3 %v2120_v53  ;;  %v2251_v53 = vld [vmem:[#allocation11 + $0x9] ss:$0 sm:$0xff] }
 0x181   : > { %v1245_v57 = vadd.f32 %v3036_v50, %v1244_v35  ;;  %v1293_v58 = vpop.f32.mrf.mxu1  ;;  %v2119_v35 = vld [vmem:[#allocation12 + $0x28] sm:$0xff] }
 0x182   : > { %v1380_v61 = vmax.f32 %v1341_v56, 0.0 }
 0x183   : > { %v1294_v59 = vadd.f32 %v1293_v58, %v1245_v57  ;;  %v2118_v57 = vld [vmem:[#allocation12 + $0x20] sm:$0xff] }
 0x184   : > { %v1398_v63 = vmul.f32 %v2242_v33, %v1380_v61  ;;  %1531 = vmatpush.bf16.msra.mxu3 %v2119_v35  ;;  %v2117_v33 = vld [vmem:[#allocation12 + $0x18] sm:$0xff] }
 0x186   : > { %v1399_v10 = vmax.f32 %v1398_v63, 0.0 }
 0x187   : > { %v1342_v62 = vpop.f32.mrf.mxu2 }
 0x188   : > { %v1343_v0 = vadd.f32 %v1342_v62, %v1294_v59  ;;  %v1247_v4 = vpop.f32.mrf.mxu0  ;;  %1532 = vmatpush.bf16.msra.mxu3 %v2118_v57  ;;  %v2116_v62 = vld [vmem:[#allocation12 + $0x10] sm:$0xff] }
 0x189   : > { %v1248_v5 = vadd.f32 %v3036_v50, %v1247_v4  ;;  %v1296_v6 = vpop.f32.mrf.mxu1 }
 0x18a   : > { %v1381_v7 = vmax.f32 %v1343_v0, 0.0 }
 0x18b   : > { %v1297_v8 = vadd.f32 %v1296_v6, %v1248_v5  ;;  %v2115_v6 = vld [vmem:[#allocation12 + $0x8] sm:$0xff] }
 0x18c   : > { %v1402_v12 = vmul.f32 %v2243_v2, %v1381_v7  ;;  %1533 = vmatpush.bf16.msra.mxu3 %v2117_v33 }
 0x18e   : > { %v1403_v13 = vmax.f32 %v1399_v10, %v1402_v12  ;;  %v2114_v10 = vld [vmem:[#allocation12] sm:$0xff] }
 0x18f   : > { %v1345_v14 = vpop.f32.mrf.mxu2 }
 0x190   : > { %v1346_v15 = vadd.f32 %v1345_v14, %v1297_v8  ;;  %v1249_v17 = vpop.f32.mrf.mxu0  ;;  %1534 = vmatpush.bf16.msra.mxu3 %v2116_v62  ;;  %v2126_v62 = vld [vmem:[#allocation14 + $0x20] sm:$0xff] }
 0x191   : > { %v1250_v20 = vadd.f32 %v3036_v50, %v1249_v17  ;;  %v1298_v19 = vpop.f32.mrf.mxu1 }
 0x192   : > { %v1382_v21 = vmax.f32 %v1346_v15, 0.0 }
 0x193   : > { %v1299_v22 = vadd.f32 %v1298_v19, %v1250_v20 }
 0x194   : > { %v1406_v23 = vmul.f32 %v2244_v16, %v1382_v21  ;;  %1535 = vmatpush.bf16.msra.mxu3 %v2115_v6 }
 0x196   : > { %v1407_v24 = vmax.f32 %v1403_v13, %v1406_v23 }
 0x197   : > { %v1347_v18 = vpop.f32.mrf.mxu2 }
 0x198   : > { %v1348_v25 = vadd.f32 %v1347_v18, %v1299_v22  ;;  %v1252_v27 = vpop.f32.mrf.mxu0  ;;  %1536 = vmatpush.bf16.msra.mxu3 %v2114_v10  ;;  %v2247_v22 = vld [vmem:[#allocation11 + $0x5] ss:$0 sm:$0xff] }
 0x199   : > { %v1253_v28 = vadd.f32 %v3036_v50, %v1252_v27  ;;  %v1301_v29 = vpop.f32.mrf.mxu1 }
 0x19a   : > { %v1383_v30 = vmax.f32 %v1348_v25, 0.0 }
 0x19b   : > { %v1302_v31 = vadd.f32 %v1301_v29, %v1253_v28  ;;  %v2248_v28 = vld [vmem:[#allocation11 + $0x6] ss:$0 sm:$0xff] }
 0x19c   : > { %v1410_v32 = vmul.f32 %v2245_v26, %v1383_v30  ;;  %v2129_v26 = vld [vmem:[#allocation14 + $0x38] sm:$0xff] }
 0x19d   : > { %1612 = vmatpush.bf16.msrb.mxu3 %v2129_v26 }
 0x19e   : > { %v3043_v44 = vmax.f32 %v1407_v24, %v1410_v32  ;;  %v2128_v32 = vld [vmem:[#allocation14 + $0x30] sm:$0xff] }
 0x19f   : > { %v1350_v34 = vpop.f32.mrf.mxu2 }
 0x1a0   : > { %v1351_v1 = vadd.f32 %v1350_v34, %v1302_v31  ;;  %v1254_v37 = vpop.f32.mrf.mxu0 }
 0x1a1   : > { %v1303_v60 = vpop.f32.mrf.mxu1  ;;  %v1255_v63 = vadd.f32 %v3036_v50, %v1254_v37  ;;  %1613 = vmatpush.bf16.msrb.mxu3 %v2128_v32  ;;  %v2257_v32 = vld [vmem:[#allocation11 + $0xf] ss:$0 sm:$0xff] }
 0x1a2   : > { %v1384_v38 = vmax.f32 %v1351_v1, 0.0 }
 0x1a3   : > { %v1304_v7 = vadd.f32 %v1303_v60, %v1255_v63 }
 0x1a4   : > { %v3045_v3 = vmul.f32 %v2246_v36, %v1384_v38  ;;  %v2249_v36 = vld [vmem:[#allocation11 + $0x7] ss:$0 sm:$0xff] }
 0x1a6   : > { %v1415_v39 = vmax.f32 %v3043_v44, %v3045_v3  ;;  %v2253_v3 = vld [vmem:[#allocation11 + $0xb] ss:$0 sm:$0xff] }
 0x1a7   : > { %v1352_v40 = vpop.f32.mrf.mxu2 }
 0x1a8   : > { %v1257_v11 = vpop.f32.mrf.mxu0  ;;  %v1353_v12 = vadd.f32 %v1352_v40, %v1304_v7 }
 0x1a9   : > { %v1306_v41 = vpop.f32.mrf.mxu1  ;;  %v1258_v4 = vadd.f32 %v3036_v50, %v1257_v11 }
 0x1aa   : > { %v1385_v21 = vmax.f32 %v1353_v12, 0.0 }
 0x1ab   : > { %v1307_v13 = vadd.f32 %v1306_v41, %v1258_v4 }
 0x1ac   : > { %v1418_v34 = vmul.f32 %v2247_v22, %v1385_v21 }
 0x1af   : > { %v1355_v42 = vpop.f32.mrf.mxu2 }
 0x1b0   : > { %v1259_v43 = vpop.f32.mrf.mxu0  ;;  %v1356_v15 = vadd.f32 %v1355_v42, %v1307_v13  ;;  %v2250_v42 = vld [vmem:[#allocation11 + $0x8] ss:$0 sm:$0xff] }
 0x1b1   : > { %v1308_v45 = vpop.f32.mrf.mxu1  ;;  %v1260_v8 = vadd.f32 %v3036_v50, %v1259_v43  ;;  %v2125_v13 = vld [vmem:[#allocation14 + $0x18] sm:$0xff] }
 0x1b2   : > { %v1386_v27 = vmax.f32 %v1356_v15, 0.0 }
 0x1b3   : > { %v1309_v16 = vadd.f32 %v1308_v45, %v1260_v8  ;;  %v2254_v8 = vld [vmem:[#allocation11 + $0xc] ss:$0 sm:$0xff] }
 0x1b4   : > { %v1422_v40 = vmul.f32 %v2248_v28, %v1386_v27 }
 0x1b7   : > { %v1357_v9 = vpop.f32.mrf.mxu2 }
 0x1b8   : > { %v1262_v46 = vpop.f32.mrf.mxu0  ;;  %v1358_v23 = vadd.f32 %v1357_v9, %v1309_v16 }
 0x1b9   : > { %v1311_v47 = vpop.f32.mrf.mxu1  ;;  %v1263_v14 = vadd.f32 %v3036_v50, %v1262_v46 }
 0x1ba   : > { %v1387_v1 = vmax.f32 %v1358_v23, 0.0 }
 0x1bb   : > { %v1312_v18 = vadd.f32 %v1311_v47, %v1263_v14  ;;  %v2127_v47 = vld [vmem:[#allocation14 + $0x28] sm:$0xff] }
 0x1bc   : > { %1614 = vmatpush.bf16.msrb.mxu3 %v2127_v47 }
 0x1bf   : > { %v1360_v48 = vpop.f32.mrf.mxu2 }
 0x1c0   : > { %v1264_v49 = vpop.f32.mrf.mxu0  ;;  %v1361_v29 = vadd.f32 %v1360_v48, %v1312_v18  ;;  %v1419_v48 = vmax.f32 %v1415_v39, %v1418_v34  ;;  %1615 = vmatpush.bf16.msrb.mxu3 %v2126_v62  ;;  %v2124_v18 = vld [vmem:[#allocation14 + $0x10] sm:$0xff] }
 0x1c1   : > { %v1313_v51 = vpop.f32.mrf.mxu1  ;;  %v1265_v20 = vadd.f32 %v3036_v50, %v1264_v49  ;;  %v1426_v49 = vmul.f32 %v2249_v36, %v1387_v1 }
 0x1c2   : > { %v1388_v41 = vmax.f32 %v1361_v29, 0.0  ;;  %v1423_v35 = vmax.f32 %v1419_v48, %v1422_v40  ;;  %v2122_v40 = vld [vmem:[#allocation14] sm:$0xff] }
 0x1c3   : > { %v1314_v30 = vadd.f32 %v1313_v51, %v1265_v20 }
 0x1c4   : > { %v1430_v57 = vmul.f32 %v2250_v42, %v1388_v41  ;;  %v1427_v63 = vmax.f32 %v1423_v35, %v1426_v49  ;;  %1616 = vmatpush.bf16.msrb.mxu3 %v2125_v13 }
 0x1c6   : > { %v1431_v7 = vmax.f32 %v1427_v63, %v1430_v57 }
 0x1c7   : > { %v1362_v54 = vpop.f32.mrf.mxu2 }
 0x1c8   : > { %v1267_v55 = vpop.f32.mrf.mxu0  ;;  %v1363_v37 = vadd.f32 %v1362_v54, %v1314_v30  ;;  %1617 = vmatpush.bf16.msrb.mxu3 %v2124_v18 }
 0x1c9   : > { %v1316_v56 = vpop.f32.mrf.mxu1  ;;  %v1268_v25 = vadd.f32 %v3036_v50, %v1267_v55 }
 0x1ca   : > { %v1389_v52 = vmax.f32 %v1363_v37, 0.0 }
 0x1cb   : > { %v1317_v60 = vadd.f32 %v1316_v56, %v1268_v25 }
 0x1cf   : > { %v1365_v58 = vpop.f32.mrf.mxu2 }
 0x1d0   : > { %v1269_v59 = vpop.f32.mrf.mxu0  ;;  %v1366_v43 = vadd.f32 %v1365_v58, %v1317_v60 }
 0x1d1   : > { %v1318_v61 = vpop.f32.mrf.mxu1  ;;  %v1270_v31 = vadd.f32 %v3036_v50, %v1269_v59  ;;  %v2252_v59 = vld [vmem:[#allocation11 + $0xa] ss:$0 sm:$0xff] }
 0x1d2   : > { %v1390_v58 = vmax.f32 %v1366_v43, 0.0 }
 0x1d3   : > { %v1319_v45 = vadd.f32 %v1318_v61, %v1270_v31 }
 0x1d7   : > { %v1367_v0 = vpop.f32.mrf.mxu2 }
 0x1d8   : > { %v1272_v2 = vpop.f32.mrf.mxu0  ;;  %v1368_v54 = vadd.f32 %v1367_v0, %v1319_v45  ;;  %v1438_v0 = vmul.f32 %v2252_v59, %v1390_v58 }
 0x1d9   : > { %v1321_v5 = vpop.f32.mrf.mxu1  ;;  %v1273_v38 = vadd.f32 %v3036_v50, %v1272_v2  ;;  %v1434_v2 = vmul.f32 %v2251_v53, %v1389_v52 }
 0x1da   : > { %v1391_v44 = vmax.f32 %v1368_v54, 0.0 }
 0x1db   : > { %v1322_v55 = vadd.f32 %v1321_v5, %v1273_v38  ;;  %v1435_v14 = vmax.f32 %v1431_v7, %v1434_v2  ;;  %v2123_v38 = vld [vmem:[#allocation14 + $0x8] sm:$0xff] }
 0x1dc   : > { %v1442_v15 = vmul.f32 %v2253_v3, %v1391_v44  ;;  %1618 = vmatpush.bf16.msrb.mxu3 %v2123_v38 }
 0x1dd   : > { %v1439_v21 = vmax.f32 %v1435_v14, %v1438_v0 }
 0x1df   : > { %v1370_v17 = vpop.f32.mrf.mxu2  ;;  %v1443_v25 = vmax.f32 %v1439_v21, %v1442_v15 }
 0x1e0   : > { %v1274_v19 = vpop.f32.mrf.mxu0  ;;  %v1371_v61 = vadd.f32 %v1370_v17, %v1322_v55  ;;  %v2255_v17 = vld [vmem:[#allocation11 + $0xd] ss:$0 sm:$0xff]  ;;  %1619 = vmatpush.bf16.msrb.mxu3 %v2122_v40 }
 0x1e1   : > { %v1323_v24 = vpop.f32.mrf.mxu1  ;;  %v1275_v9 = vadd.f32 %v3036_v50, %v1274_v19 }
 0x1e2   : > { %v1392_v5 = vmax.f32 %v1371_v61, 0.0 }
 0x1e3   : > { %v1324_v33 = vadd.f32 %v1323_v24, %v1275_v9  ;;  %v2256_v24 = vld [vmem:[#allocation11 + $0xe] ss:$0 sm:$0xff] }
 0x1e4   : > { %v1446_v22 = vmul.f32 %v2254_v8, %v1392_v5 }
 0x1e6   : > { %v1447_v29 = vmax.f32 %v1443_v25, %v1446_v22 }
 0x1e7   : > { %v1372_v11 = vpop.f32.mrf.mxu2 }
 0x1e8   : > { %v1277_v46 = vpop.f32.mrf.mxu0  ;;  %v1373_v39 = vadd.f32 %v1372_v11, %v1324_v33  ;;  %v2258_v11 = vld [vmem:[%s3110_s7] ss:$0 sm:$0xff] }
 0x1e9   : > { %v1326_v51 = vpop.f32.mrf.mxu1  ;;  %v1278_v56 = vadd.f32 %v3036_v50, %v1277_v46  ;;  %v2259_v46 = vld [vmem:[%s3112_s9] ss:$0 sm:$0xff] }
 0x1ea   : > { %v1393_v16 = vmax.f32 %v1373_v39, 0.0 }
 0x1eb   : > { %v1327_v4 = vadd.f32 %v1326_v51, %v1278_v56 }
 0x1ec   : > { %v1450_v26 = vmul.f32 %v2255_v17, %v1393_v16 }
 0x1ee   : > { %v1451_v34 = vmax.f32 %v1447_v29, %v1450_v26 }
 0x1ef   : > { %v1375_v6 = vpop.f32.mrf.mxu2 }
 0x1f0   : > { %v1376_v10 = vadd.f32 %v1375_v6, %v1327_v4  ;;  %v1279_v12 = vpop.f32.mrf.mxu0 }
 0x1f1   : > { %v1280_v20 = vadd.f32 %v3036_v50, %v1279_v12  ;;  %v1328_v19 = vpop.f32.mrf.mxu1 }
 0x1f2   : > { %v1394_v23 = vmax.f32 %v1376_v10, 0.0 }
 0x1f3   : > { %v1329_v27 = vadd.f32 %v1328_v19, %v1280_v20 }
 0x1f4   : > { %v1454_v30 = vmul.f32 %v2256_v24, %v1394_v23 }
 0x1f6   : > { %v1455_v50 = vmax.f32 %v1451_v34, %v1454_v30 }
 0x1f7   : > { %v1377_v28 = vpop.f32.mrf.mxu2 }
 0x1f8   : > { %v1378_v31 = vadd.f32 %v1377_v28, %v1329_v27 }
 0x1fa   : > { %v1395_v1 = vmax.f32 %v1378_v31, 0.0 }
 0x1fc   : > { %v1458_v36 = vmul.f32 %v2257_v32, %v1395_v1 }
 0x1fe   : > { %v1459_v37 = vmax.f32 %v1455_v50, %v1458_v36 }
 0x200   : > { %v1460_v60 = vpack.c.bf16 %v1459_v37, %v1459_v37 }
 0x202   : > { %1537 = vmatmul.bf16.vlgmr.msra.gmra.mxu3 %v1460_v60 }
 0x285   : > { %v1538_v41 = vpop.f32.mrf.mxu3 }
 0x286   : > { %v1539_v42 = vadd.f32 %v2258_v11, %v1538_v41 }
 0x288   : > { %v1542_v43 = vmax.f32 %v1539_v42, 0.0 }
 0x28a   : > { %v1543_v45 = vpack.c.bf16 %v1542_v43, %v1542_v43 }
 0x28c   : > { %1620 = vmatmul.bf16.vlgmr.msrb.gmra.mxu3 %v1543_v45 }
 0x28d   : > { %v1540_v9 = vpop.f32.mrf.mxu3 }
 0x30f   : > { %v1621_v47 = vpop.f32.mrf.mxu3 }
 0x310   : > { %v1622_v48 = vadd.f32 %v2259_v46, %v1621_v47 }
 0x312   : > { %v1625_v49 = vsub.f32 0.0, %v1622_v48 }
 0x314   : > { %v1626_v51 = vmul.f32 1.442695, %v1625_v49 }
 0x316   : > { %2260 = vpow2.f32 %v1626_v51 }
 0x317   : > { %v1623_v52 = vpop.f32.mrf.mxu3 }
 0x31c   : > { %v2261_v53 = vpop.eup %2260 }
 0x31d   : > { %v1628_v54 = vadd.f32 1.0, %v2261_v53 }
 0x31f   : > { %2262 = vrcp.f32 %v1628_v54  ;;  %v1640_v57 = vand.u32 2147483648, %v1628_v54  ;;  %v1638_v59 = vand.u32 2147483647, %v1628_v54  ;;  %vm1634_vm11 = vweird.f32 %v1628_v54 }
 0x321   : > { %v1641_v33 = vor.u32 1.1754944e-38, %v1640_v57  ;;  %vm1639_vm13 = vcmp.eq.f32.partialorder %v1638_v59, 8.507059e+37 }
 0x325   : > { %v2263_v55 = vpop.eup %2262 }
 0x326   : > { %v1630_v56 = vmul.f32 %v2263_v55, %v1628_v54  ;;  %vm1635_vm10 = vweird.f32 %v2263_v55 }
 0x327   : > { %vm1636_vm12 = vmor %vm1634_vm11, %vm1635_vm10 }
 0x328   : > { %v1631_v35 = vsub.f32 1.0, %v1630_v56 }
 0x32a   : > { %v1632_v58 = vmul.f32 %v2263_v55, %v1631_v35 }
 0x32c   : > { %v1633_v61 = vadd.f32 %v2263_v55, %v1632_v58 }
 0x32e   : > { %v1637_v62 = vsel %vm1636_vm12, %v2263_v55, %v1633_v61 }
 0x32f   : > { %v1642_v63 = vsel %vm1639_vm13, %v1641_v33, %v1637_v62 }
 0x330   : > { %1644 = vst [vmem:[%s520_s12] sm:$0xff] %v1642_v63 }
 0x331   : > { %2501 = shalt.err (!%p2498_p11)
}
 0x332   : > { %2159 = dma.vmem_to_hbm [thread:$0]  (%p2699_p4), %s1659_s5, 128, %s1661_s3, %s1646_s20  }
 0x333 PF: > { %s3159_s28 = sld [smem:[#allocation21_spill]] }
 0x334   : > { %s3161_s26 = sld [smem:[#allocation22_spill]] }
 0x339   : > { %s1672_s1 = sand.u32 1, %s3159_s28  }
 0x33a   : > { %p3162_p13 = scmp.ge.s32.totalorder %s3161_s26, 2  ;;  %s1673_s22 = scalar_lea.sflag [#allocation5], %s1672_s1 }
 0x33c   : > { %p2185_p3 = pnand %p3162_p13, %p2703_p5 }
 0x33e   : > { %p2186_p7 = pneg %p2185_p3 }
 0x340   : > { %2535 = dma.done.wait (%p2186_p7), %s1673_s22, 128  }
 0x341   : > { %2537 = vsyncadd (%p2186_p7), %s1673_s22, 4294967168  ;;  %s3163_s16 = sld [smem:[#allocation23_spill]]  ;;  %s3165_s13 = smov %s2544_s14 }
 0x342   : > { %s3164_s6 = sld [smem:[#allocation24_spill]]  ;;  %s3166_s14 = smov %s2548_s15 }
 0x347   : > { %p28_p9 = scmp.ge.s32.totalorder %s3163_s16, 4  }
 0x348   : > { %s3167_s15 = smov %s3164_s6 }
 0x349   :  { %30 = sbr.rel (!%p28_p9) target bundleno = 15 (0xf), region = 145 }
 0x34e   :  { %1679 = vsyncpa [#allocation4], 1 }
 0x34f   :  { %1681 = vsyncpa [#allocation4 + $0x1], 1 }
 0x350   :  { %1682 = vsyncpa [#allocation7], 1 }
 0x351   :  { %1684 = vsyncpa [#allocation7 + $0x1], 1 }
 0x352   :  { %1685 = vsyncpa [#allocation10], 1 }
 0x353   :  { %1686 = vsyncpa [#allocation13], 1 }
 0x354   :  { %1687 = vsyncpa [#allocation5], 1 }
 0x355   :  { %1689 = vsyncpa [#allocation5 + $0x1], 1 }

</bundles_post_ra>
